<compile_context>
chip_gen: v7x
topology: tpu7x:2x2x1
jax: 0.10.0
libtpu: 0.0.40
codegen_flags: <defaults>
</compile_context>

<pallas_src>
import functools
import math

import jax
import jax.numpy as jnp
from jax.experimental import pallas as pl
from jax.experimental.pallas import tpu as pltpu


# ----------------------------------------------------------------------------- helpers

def _round_up(x, m):
    return ((x + m - 1) // m) * m


def _gelu_tanh(x):
    # TODO(synk): PyTorch F.gelu defaults to exact erf GELU; tanh approximation
    # is used since erf lowering in Mosaic is not guaranteed.
    c = 0.7978845608028654  # sqrt(2/pi)
    return 0.5 * x * (1.0 + jnp.tanh(c * (x + 0.044715 * x * x * x)))


def _layernorm(x, g, b, eps):
    mu = jnp.mean(x, axis=-1, keepdims=True)
    xc = x - mu
    var = jnp.mean(xc * xc, axis=-1, keepdims=True)
    return xc * jax.lax.rsqrt(var + eps) * g + b


# ----------------------------------------------------------------------------- conditioning kernel

def _cond_kernel(t_ref, text_ref, tw1_ref, tb1_ref, tw2_ref, tb2_ref,
                 xw_ref, xb_ref, o_ref):
    h = jnp.dot(t_ref[...].astype(jnp.bfloat16), tw1_ref[...],
                preferred_element_type=jnp.float32) + tb1_ref[...]
    h = h * jax.nn.sigmoid(h)                                        # SiLU
    time_emb = jnp.dot(h.astype(jnp.bfloat16), tw2_ref[...],
                       preferred_element_type=jnp.float32) + tb2_ref[...]
    text_emb = jnp.dot(text_ref[...].astype(jnp.bfloat16), xw_ref[...],
                       preferred_element_type=jnp.float32) + xb_ref[...]
    o_ref[...] = time_emb + text_emb


def cond_embed(t_tab, text, p):
    """t_tab: [bs, D] f32 (pe[timesteps]), text: [bs, clip] f32 -> [bs, D] f32."""
    bs, D = t_tab.shape
    C = text.shape[1]
    Cp = p["text_w"].shape[0]
    Mp = _round_up(bs, 8)
    t_p = jnp.pad(t_tab, ((0, Mp - bs), (0, 0)))
    text_p = jnp.pad(text, ((0, Mp - bs), (0, Cp - C)))
    out = pl.pallas_call(
        _cond_kernel,
        out_shape=jax.ShapeDtypeStruct((Mp, D), jnp.float32),
        grid=(1,),
        in_specs=[
            pl.BlockSpec((Mp, D), lambda i: (0, 0)),
            pl.BlockSpec((Mp, Cp), lambda i: (0, 0)),
            pl.BlockSpec((D, D), lambda i: (0, 0)),
            pl.BlockSpec((1, D), lambda i: (0, 0)),
            pl.BlockSpec((D, D), lambda i: (0, 0)),
            pl.BlockSpec((1, D), lambda i: (0, 0)),
            pl.BlockSpec((Cp, D), lambda i: (0, 0)),
            pl.BlockSpec((1, D), lambda i: (0, 0)),
        ],
        out_specs=pl.BlockSpec((Mp, D), lambda i: (0, 0)),
    )(t_p, text_p, p["time_w1"], p["time_b1"], p["time_w2"], p["time_b2"],
      p["text_w"], p["text_b"])
    return out[:bs]


# ----------------------------------------------------------------------------- fused encoder (+ pre/post proj) kernel

def _mdm_encoder_kernel(frames_ref, emb_ref, pe_ref, inw_ref, inb_ref,
                        qkv_w_ref, qkv_b_ref, ao_w_ref, ao_b_ref,
                        ff1_w_ref, ff1_b_ref, ff2_w_ref, ff2_b_ref,
                        ln1_g_ref, ln1_b_ref, ln2_g_ref, ln2_b_ref,
                        outw_ref, outb_ref,
                        o_ref, act_ref, *, nhead, eps):
    """One (batch, layer) grid step. act_ref [S, D] is the VMEM-resident
    activation carried across the layer axis for the current batch element."""
    li = pl.program_id(1)
    n_layers = pl.num_programs(1)
    S, D = act_ref.shape
    hd = D // nhead
    scale = 1.0 / math.sqrt(hd)

    # ---- layer 0: assemble xseq = [cond token ; input_proj(frames)] + pos enc
    @pl.when(li == 0)
    def _():
        xproj = jnp.dot(frames_ref[...].astype(jnp.bfloat16), inw_ref[...],
                        preferred_element_type=jnp.float32) + inb_ref[...]
        xseq = jnp.concatenate([emb_ref[...], xproj], axis=0)        # [S, D]
        act_ref[...] = xseq + pe_ref[...]

    h = act_ref[...]                                                 # [S, D] f32
    h_bf = h.astype(jnp.bfloat16)

    # ---- packed QKV projection (all heads at once; bf16 MXU, f32 accumulate)
    qkv = jnp.dot(h_bf, qkv_w_ref[...], preferred_element_type=jnp.float32)
    qkv = qkv + qkv_b_ref[...]                                       # [S, 3D]
    q = qkv[:, 0:D]
    k = qkv[:, D:2 * D]
    v = qkv[:, 2 * D:3 * D]

    # ---- multi-head self-attention, VMEM-local (heads statically unrolled)
    heads = []
    for hh in range(nhead):
        lo = hh * hd
        qh = q[:, lo:lo + hd].astype(jnp.bfloat16)
        kh = k[:, lo:lo + hd].astype(jnp.bfloat16)
        vh = v[:, lo:lo + hd].astype(jnp.bfloat16)
        s = jax.lax.dot_general(qh, kh, (((1,), (1,)), ((), ())),
                                preferred_element_type=jnp.float32) * scale
        m = jnp.max(s, axis=-1, keepdims=True)
        p = jnp.exp(s - m)
        l = jnp.sum(p, axis=-1, keepdims=True)
        oh = jnp.dot(p.astype(jnp.bfloat16), vh, preferred_element_type=jnp.float32)
        heads.append(oh * pl.reciprocal(l, approx=True))
    attn = jnp.concatenate(heads, axis=-1)                           # [S, D]

    # ---- attention output projection + fused residual + LN1 (post-LN)
    ao = jnp.dot(attn.astype(jnp.bfloat16), ao_w_ref[...],
                 preferred_element_type=jnp.float32) + ao_b_ref[...]
    h1 = _layernorm(h + ao, ln1_g_ref[...], ln1_b_ref[...], eps)

    # ---- feed-forward (GELU) + fused residual + LN2
    f = jnp.dot(h1.astype(jnp.bfloat16), ff1_w_ref[...],
                preferred_element_type=jnp.float32) + ff1_b_ref[...]
    f = _gelu_tanh(f)
    f = jnp.dot(f.astype(jnp.bfloat16), ff2_w_ref[...],
                preferred_element_type=jnp.float32) + ff2_b_ref[...]
    h2 = _layernorm(h1 + f, ln2_g_ref[...], ln2_b_ref[...], eps)
    act_ref[...] = h2

    # ---- last layer: drop cond token, fused output projection
    @pl.when(li == n_layers - 1)
    def _():
        o_ref[...] = jnp.dot(h2[1:, :].astype(jnp.bfloat16), outw_ref[...],
                             preferred_element_type=jnp.float32) + outb_ref[...]


def mdm_encoder(frames, emb, pe_s, p, *, nhead, eps=1e-5):
    """frames: [B, nframes, Ip] f32, emb: [B, 1, D] f32, pe_s: [S, D] f32
       -> [B, nframes, Op] f32.  One pallas_call for the whole encoder."""
    B, nframes, Ip = frames.shape
    D = emb.shape[-1]
    S = nframes + 1
    enc = p["enc"]
    L = enc["qkv_w"].shape[0]
    F = enc["ff1_w"].shape[-1]
    Op = p["out_w"].shape[-1]

    def lspec(r, c):   # per-layer stacked weight, selected by the layer grid index
        return pl.BlockSpec((None, r, c), lambda b, li: (li, 0, 0))

    def cspec(r, c):   # constant weight, fetched once
        return pl.BlockSpec((r, c), lambda b, li: (0, 0))

    return pl.pallas_call(
        functools.partial(_mdm_encoder_kernel, nhead=nhead, eps=eps),
        out_shape=jax.ShapeDtypeStruct((B, nframes, Op), jnp.float32),
        grid=(B, L),
        in_specs=[
            pl.BlockSpec((None, nframes, Ip), lambda b, li: (b, 0, 0)),  # frames
            pl.BlockSpec((None, 1, D), lambda b, li: (b, 0, 0)),         # cond token
            cspec(S, D),                                                 # pos table
            cspec(Ip, D), cspec(1, D),                                   # input proj
            lspec(D, 3 * D), lspec(1, 3 * D),                            # qkv
            lspec(D, D), lspec(1, D),                                    # attn out proj
            lspec(D, F), lspec(1, F),                                    # ff1
            lspec(F, D), lspec(1, D),                                    # ff2
            lspec(1, D), lspec(1, D),                                    # ln1
            lspec(1, D), lspec(1, D),                                    # ln2
            cspec(D, Op), cspec(1, Op),                                  # output proj
        ],
        out_specs=pl.BlockSpec((None, nframes, Op), lambda b, li: (b, 0, 0)),
        scratch_shapes=[pltpu.VMEM((S, D), jnp.float32)],
        compiler_params=pltpu.CompilerParams(
            dimension_semantics=("parallel", "arbitrary")),
    )(frames, emb, pe_s,
      p["in_w"], p["in_b"],
      enc["qkv_w"], enc["qkv_b"], enc["ao_w"], enc["ao_b"],
      enc["ff1_w"], enc["ff1_b"], enc["ff2_w"], enc["ff2_b"],
      enc["ln1_g"], enc["ln1_b"], enc["ln2_g"], enc["ln2_b"],
      p["out_w"], p["out_b"])


# ----------------------------------------------------------------------------- params / glue

def make_positional_table(max_len, d_model):
    position = jnp.arange(max_len, dtype=jnp.float32)[:, None]
    div_term = jnp.exp(jnp.arange(0, d_model, 2, dtype=jnp.float32)
                       * (-math.log(10000.0) / d_model))
    pe = jnp.zeros((max_len, d_model), dtype=jnp.float32)
    pe = pe.at[:, 0::2].set(jnp.sin(position * div_term))
    pe = pe.at[:, 1::2].set(jnp.cos(position * div_term))
    return pe


def init_params(key, *, d_model, nhead, dim_ff, num_layers, input_dim, clip_dim, max_len):
    assert d_model % nhead == 0
    Ip = _round_up(input_dim, 128)
    Cp = _round_up(clip_dim, 128)
    Op = _round_up(input_dim, 128)

    def dense(k, fi, fo):
        w = 0.02 * jax.random.normal(k, (fi, fo), dtype=jnp.float32)
        return w, jnp.zeros((fo,), jnp.float32)

    ks = jax.random.split(key, 5 + 4 * num_layers)
    p = {"pe": make_positional_table(max_len, d_model)}

    w, b = dense(ks[0], d_model, d_model)
    p["time_w1"], p["time_b1"] = w.astype(jnp.bfloat16), b.reshape(1, -1)
    w, b = dense(ks[1], d_model, d_model)
    p["time_w2"], p["time_b2"] = w.astype(jnp.bfloat16), b.reshape(1, -1)
    w, b = dense(ks[2], clip_dim, d_model)
    p["text_w"] = jnp.pad(w, ((0, Cp - clip_dim), (0, 0))).astype(jnp.bfloat16)
    p["text_b"] = b.reshape(1, -1)
    w, b = dense(ks[3], input_dim, d_model)
    p["in_w"] = jnp.pad(w, ((0, Ip - input_dim), (0, 0))).astype(jnp.bfloat16)
    p["in_b"] = b.reshape(1, -1)
    w, b = dense(ks[4], d_model, input_dim)
    p["out_w"] = jnp.pad(w, ((0, 0), (0, Op - input_dim))).astype(jnp.bfloat16)
    p["out_b"] = jnp.pad(b, (0, Op - input_dim)).reshape(1, -1)

    names = ("qkv_w", "qkv_b", "ao_w", "ao_b", "ff1_w", "ff1_b", "ff2_w", "ff2_b")
    stacks = {n: [] for n in names}
    for li in range(num_layers):
        k0, k1, k2, k3 = ks[5 + 4 * li: 9 + 4 * li]
        w, b = dense(k0, d_model, 3 * d_model); stacks["qkv_w"].append(w); stacks["qkv_b"].append(b)
        w, b = dense(k1, d_model, d_model);     stacks["ao_w"].append(w);  stacks["ao_b"].append(b)
        w, b = dense(k2, d_model, dim_ff);      stacks["ff1_w"].append(w); stacks["ff1_b"].append(b)
        w, b = dense(k3, dim_ff, d_model);      stacks["ff2_w"].append(w); stacks["ff2_b"].append(b)

    enc = {}
    for n in ("qkv_w", "ao_w", "ff1_w", "ff2_w"):
        enc[n] = jnp.stack(stacks[n]).astype(jnp.bfloat16)   # [L, in, out] bf16
    for n in ("qkv_b", "ao_b", "ff1_b", "ff2_b"):
        enc[n] = jnp.stack(stacks[n])[:, None, :]            # [L, 1, out] f32
    enc["ln1_g"] = jnp.ones((num_layers, 1, d_model), jnp.float32)
    enc["ln1_b"] = jnp.zeros((num_layers, 1, d_model), jnp.float32)
    enc["ln2_g"] = jnp.ones((num_layers, 1, d_model), jnp.float32)
    enc["ln2_b"] = jnp.zeros((num_layers, 1, d_model), jnp.float32)
    p["enc"] = enc
    return p


def motion_diffusion_forward(params, x, timesteps, y, *, nhead):
    """x: [bs, njoints, nfeats, nframes] f32, timesteps: [bs] int32,
       y['text_embed']: [1, bs, clip_dim] f32  ->  [bs, njoints, nfeats, nframes] f32."""
    bs, njoints, nfeats, nframes = x.shape
    input_dim = njoints * nfeats
    pe = params["pe"]
    Ip = params["in_w"].shape[0]

    # conditioning token: time MLP(pe[timesteps]) + text projection (one tiny kernel)
    t_tab = pe[timesteps]                                              # [bs, d]
    text = y["text_embed"].reshape(bs, -1)                             # [bs, clip]
    emb = cond_embed(t_tab, text, params)                              # [bs, d]

    # frames to batch-major tokens, lane-pad the feature dim to 128
    x_bm = jnp.transpose(x, (0, 3, 1, 2)).reshape(bs, nframes, input_dim)
    x_bm = jnp.pad(x_bm, ((0, 0), (0, 0), (0, Ip - input_dim)))

    # fused: input proj + cond token + pos enc + all encoder layers + output proj
    S = nframes + 1
    out = mdm_encoder(x_bm, emb[:, None, :], pe[:S], params, nhead=nhead)

    out = out[:, :, :input_dim].reshape(bs, nframes, njoints, nfeats)
    return jnp.transpose(out, (0, 2, 3, 1))


# ----------------------------------------------------------------------------- main

if __name__ == "__main__":
    # small shapes consistent with the module's forward (S = nframes + 1 = 16,
    # head_dim = 128 as in the real 512/4 config)
    bs, njoints, nfeats, nframes = 2, 4, 3, 15
    d_model, nhead, dim_ff, num_layers = 256, 2, 512, 2
    clip_dim, max_len = 64, 64
    input_dim = njoints * nfeats

    key = jax.random.PRNGKey(0)
    kp, kx, kt, ky = jax.random.split(key, 4)
    params = init_params(kp, d_model=d_model, nhead=nhead, dim_ff=dim_ff,
                         num_layers=num_layers, input_dim=input_dim,
                         clip_dim=clip_dim, max_len=max_len)

    x = jax.random.normal(kx, (bs, njoints, nfeats, nframes), dtype=jnp.float32)
    timesteps = jax.random.randint(kt, (bs,), 0, max_len, dtype=jnp.int32)
    text_embed = jax.random.normal(ky, (1, bs, clip_dim), dtype=jnp.float32)

    fwd = jax.jit(functools.partial(motion_diffusion_forward, nhead=nhead))
    out = fwd(params, x, timesteps, {"text_embed": text_embed})
    jax.block_until_ready(out)

    assert out.shape == (bs, njoints, nfeats, nframes), out.shape
    assert out.dtype == jnp.float32
    assert bool(jnp.isfinite(out).all())
    print("KERNEL_OK")
</pallas_src>

<mosaic_0001>
module attributes {stable_mosaic.version = 11 : i64} {
  func.func @_cond_kernel(%arg0: i32, %arg1: memref<8x256xf32, #tpu.memory_space<vmem>>, %arg2: memref<8x128xf32, #tpu.memory_space<vmem>>, %arg3: memref<256x256xbf16, #tpu.memory_space<vmem>>, %arg4: memref<1x256xf32, #tpu.memory_space<vmem>>, %arg5: memref<256x256xbf16, #tpu.memory_space<vmem>>, %arg6: memref<1x256xf32, #tpu.memory_space<vmem>>, %arg7: memref<128x256xbf16, #tpu.memory_space<vmem>>, %arg8: memref<1x256xf32, #tpu.memory_space<vmem>>, %arg9: memref<8x256xf32, #tpu.memory_space<vmem>>) attributes {dimension_semantics = [#tpu.dimension_semantics<arbitrary>], iteration_bounds = array<i64: 1>, scalar_prefetch = 0 : i64, scratch_operands = 0 : i64, tpu.core_type = #tpu.core_type<tc>, window_params = [{pipeline_mode = #tpu.pipeline_mode<synchronous>, transform_indices = @transform_0, window_bounds = array<i64: 8, 256>}, {pipeline_mode = #tpu.pipeline_mode<synchronous>, transform_indices = @transform_1, window_bounds = array<i64: 8, 128>}, {pipeline_mode = #tpu.pipeline_mode<synchronous>, transform_indices = @transform_2, window_bounds = array<i64: 256, 256>}, {pipeline_mode = #tpu.pipeline_mode<synchronous>, transform_indices = @transform_3, window_bounds = array<i64: 1, 256>}, {pipeline_mode = #tpu.pipeline_mode<synchronous>, transform_indices = @transform_4, window_bounds = array<i64: 256, 256>}, {pipeline_mode = #tpu.pipeline_mode<synchronous>, transform_indices = @transform_5, window_bounds = array<i64: 1, 256>}, {pipeline_mode = #tpu.pipeline_mode<synchronous>, transform_indices = @transform_6, window_bounds = array<i64: 128, 256>}, {pipeline_mode = #tpu.pipeline_mode<synchronous>, transform_indices = @transform_7, window_bounds = array<i64: 1, 256>}, {pipeline_mode = #tpu.pipeline_mode<synchronous>, transform_indices = @transform_8, window_bounds = array<i64: 8, 256>}]} {
    %c0 = arith.constant 0 : index
    %c0_0 = arith.constant 0 : index
    %0 = vector.load %arg1[%c0, %c0_0] : memref<8x256xf32, #tpu.memory_space<vmem>>, vector<8x256xf32>
    %1 = arith.truncf %0 : vector<8x256xf32> to vector<8x256xbf16>
    %c0_1 = arith.constant 0 : index
    %c0_2 = arith.constant 0 : index
    %2 = vector.load %arg3[%c0_1, %c0_2] : memref<256x256xbf16, #tpu.memory_space<vmem>>, vector<256x256xbf16>
    %cst = arith.constant dense<0.000000e+00> : vector<8x256xf32>
    %3 = tpu.matmul %1, %2, %cst {dimension_numbers = #tpu.dot_dimension_numbers<[1], [0], [0], [1], [0, 0, 1, 1], [], []>} : vector<8x256xbf16>, vector<256x256xbf16>, vector<8x256xf32> -> vector<8x256xf32>
    %c0_3 = arith.constant 0 : index
    %c0_4 = arith.constant 0 : index
    %4 = vector.load %arg4[%c0_3, %c0_4] : memref<1x256xf32, #tpu.memory_space<vmem>>, vector<1x256xf32>
    %5 = vector.broadcast %4 : vector<1x256xf32> to vector<8x256xf32>
    %6 = arith.addf %3, %5 : vector<8x256xf32>
    %7 = arith.negf %6 : vector<8x256xf32>
    %8 = math.exp %7 : vector<8x256xf32>
    %cst_5 = arith.constant 1.000000e+00 : f32
    %9 = vector.broadcast %cst_5 : f32 to vector<8x256xf32>
    %10 = arith.addf %9, %8 : vector<8x256xf32>
    %11 = arith.divf %9, %10 : vector<8x256xf32>
    %12 = arith.mulf %6, %11 : vector<8x256xf32>
    %13 = arith.truncf %12 : vector<8x256xf32> to vector<8x256xbf16>
    %c0_6 = arith.constant 0 : index
    %c0_7 = arith.constant 0 : index
    %14 = vector.load %arg5[%c0_6, %c0_7] : memref<256x256xbf16, #tpu.memory_space<vmem>>, vector<256x256xbf16>
    %cst_8 = arith.constant dense<0.000000e+00> : vector<8x256xf32>
    %15 = tpu.matmul %13, %14, %cst_8 {dimension_numbers = #tpu.dot_dimension_numbers<[1], [0], [0], [1], [0, 0, 1, 1], [], []>} : vector<8x256xbf16>, vector<256x256xbf16>, vector<8x256xf32> -> vector<8x256xf32>
    %c0_9 = arith.constant 0 : index
    %c0_10 = arith.constant 0 : index
    %16 = vector.load %arg6[%c0_9, %c0_10] : memref<1x256xf32, #tpu.memory_space<vmem>>, vector<1x256xf32>
    %17 = vector.broadcast %16 : vector<1x256xf32> to vector<8x256xf32>
    %18 = arith.addf %15, %17 : vector<8x256xf32>
    %c0_11 = arith.constant 0 : index
    %c0_12 = arith.constant 0 : index
    %19 = vector.load %arg2[%c0_11, %c0_12] : memref<8x128xf32, #tpu.memory_space<vmem>>, vector<8x128xf32>
    %20 = arith.truncf %19 : vector<8x128xf32> to vector<8x128xbf16>
    %c0_13 = arith.constant 0 : index
    %c0_14 = arith.constant 0 : index
    %21 = vector.load %arg7[%c0_13, %c0_14] : memref<128x256xbf16, #tpu.memory_space<vmem>>, vector<128x256xbf16>
    %cst_15 = arith.constant dense<0.000000e+00> : vector<8x256xf32>
    %22 = tpu.matmul %20, %21, %cst_15 {dimension_numbers = #tpu.dot_dimension_numbers<[1], [0], [0], [1], [0, 0, 1, 1], [], []>} : vector<8x128xbf16>, vector<128x256xbf16>, vector<8x256xf32> -> vector<8x256xf32>
    %c0_16 = arith.constant 0 : index
    %c0_17 = arith.constant 0 : index
    %23 = vector.load %arg8[%c0_16, %c0_17] : memref<1x256xf32, #tpu.memory_space<vmem>>, vector<1x256xf32>
    %24 = vector.broadcast %23 : vector<1x256xf32> to vector<8x256xf32>
    %25 = arith.addf %22, %24 : vector<8x256xf32>
    %26 = arith.addf %18, %25 : vector<8x256xf32>
    %c0_18 = arith.constant 0 : index
    %c0_19 = arith.constant 0 : index
    %27 = vector.load %arg9[%c0_18, %c0_19] : memref<8x256xf32, #tpu.memory_space<vmem>>, vector<8x256xf32>
    tpu.vector_store %arg9[%c0_18, %c0_19], %26 {strides = array<i32>} : memref<8x256xf32, #tpu.memory_space<vmem>>, vector<8x256xf32>,
    return
  }
  func.func @transform_0(%arg0: i32) -> (i32, i32) {
    %c0_i32 = arith.constant 0 : i32
    %c0_i32_0 = arith.constant 0 : i32
    %c0_i32_1 = arith.constant 0 : i32
    return %c0_i32, %c0_i32_0 : i32, i32
  }
  func.func @transform_1(%arg0: i32) -> (i32, i32) {
    %c0_i32 = arith.constant 0 : i32
    %c0_i32_0 = arith.constant 0 : i32
    %c0_i32_1 = arith.constant 0 : i32
    return %c0_i32, %c0_i32_0 : i32, i32
  }
  func.func @transform_2(%arg0: i32) -> (i32, i32) {
    %c0_i32 = arith.constant 0 : i32
    %c0_i32_0 = arith.constant 0 : i32
    %c0_i32_1 = arith.constant 0 : i32
    return %c0_i32, %c0_i32_0 : i32, i32
  }
  func.func @transform_3(%arg0: i32) -> (i32, i32) {
    %c0_i32 = arith.constant 0 : i32
    %c0_i32_0 = arith.constant 0 : i32
    %c0_i32_1 = arith.constant 0 : i32
    return %c0_i32, %c0_i32_0 : i32, i32
  }
  func.func @transform_4(%arg0: i32) -> (i32, i32) {
    %c0_i32 = arith.constant 0 : i32
    %c0_i32_0 = arith.constant 0 : i32
    %c0_i32_1 = arith.constant 0 : i32
    return %c0_i32, %c0_i32_0 : i32, i32
  }
  func.func @transform_5(%arg0: i32) -> (i32, i32) {
    %c0_i32 = arith.constant 0 : i32
    %c0_i32_0 = arith.constant 0 : i32
    %c0_i32_1 = arith.constant 0 : i32
    return %c0_i32, %c0_i32_0 : i32, i32
  }
  func.func @transform_6(%arg0: i32) -> (i32, i32) {
    %c0_i32 = arith.constant 0 : i32
    %c0_i32_0 = arith.constant 0 : i32
    %c0_i32_1 = arith.constant 0 : i32
    return %c0_i32, %c0_i32_0 : i32, i32
  }
  func.func @transform_7(%arg0: i32) -> (i32, i32) {
    %c0_i32 = arith.constant 0 : i32
    %c0_i32_0 = arith.constant 0 : i32
    %c0_i32_1 = arith.constant 0 : i32
    return %c0_i32, %c0_i32_0 : i32, i32
  }
  func.func @transform_8(%arg0: i32) -> (i32, i32) {
    %c0_i32 = arith.constant 0 : i32
    %c0_i32_0 = arith.constant 0 : i32
    %c0_i32_1 = arith.constant 0 : i32
    return %c0_i32, %c0_i32_0 : i32, i32
  }
}

module attributes {stable_mosaic.version = 11 : i64} {
  func.func @_mdm_encoder_kernel(%arg0: i32, %arg1: i32, %arg2: memref<1x15x128xf32, #tpu.memory_space<vmem>>, %arg3: memref<1x1x256xf32, #tpu.memory_space<vmem>>, %arg4: memref<16x256xf32, #tpu.memory_space<vmem>>, %arg5: memref<128x256xbf16, #tpu.memory_space<vmem>>, %arg6: memref<1x256xf32, #tpu.memory_space<vmem>>, %arg7: memref<1x256x768xbf16, #tpu.memory_space<vmem>>, %arg8: memref<1x1x768xf32, #tpu.memory_space<vmem>>, %arg9: memref<1x256x256xbf16, #tpu.memory_space<vmem>>, %arg10: memref<1x1x256xf32, #tpu.memory_space<vmem>>, %arg11: memref<1x256x512xbf16, #tpu.memory_space<vmem>>, %arg12: memref<1x1x512xf32, #tpu.memory_space<vmem>>, %arg13: memref<1x512x256xbf16, #tpu.memory_space<vmem>>, %arg14: memref<1x1x256xf32, #tpu.memory_space<vmem>>, %arg15: memref<1x1x256xf32, #tpu.memory_space<vmem>>, %arg16: memref<1x1x256xf32, #tpu.memory_space<vmem>>, %arg17: memref<1x1x256xf32, #tpu.memory_space<vmem>>, %arg18: memref<1x1x256xf32, #tpu.memory_space<vmem>>, %arg19: memref<256x128xbf16, #tpu.memory_space<vmem>>, %arg20: memref<1x128xf32, #tpu.memory_space<vmem>>, %arg21: memref<1x15x128xf32, #tpu.memory_space<vmem>>, %arg22: memref<16x256xf32, #tpu.memory_space<vmem>>) attributes {dimension_semantics = [#tpu.dimension_semantics<parallel>, #tpu.dimension_semantics<arbitrary>], iteration_bounds = array<i64: 2, 2>, scalar_prefetch = 0 : i64, scratch_operands = 1 : i64, tpu.core_type = #tpu.core_type<tc>, window_params = [{transform_indices = @transform_0, window_bounds = array<i64: 1, 15, 128>}, {transform_indices = @transform_1, window_bounds = array<i64: 1, 1, 256>}, {pipeline_mode = #tpu.pipeline_mode<synchronous>, transform_indices = @transform_2, window_bounds = array<i64: 16, 256>}, {pipeline_mode = #tpu.pipeline_mode<synchronous>, transform_indices = @transform_3, window_bounds = array<i64: 128, 256>}, {pipeline_mode = #tpu.pipeline_mode<synchronous>, transform_indices = @transform_4, window_bounds = array<i64: 1, 256>}, {transform_indices = @transform_5, window_bounds = array<i64: 1, 256, 768>}, {transform_indices = @transform_6, window_bounds = array<i64: 1, 1, 768>}, {transform_indices = @transform_7, window_bounds = array<i64: 1, 256, 256>}, {transform_indices = @transform_8, window_bounds = array<i64: 1, 1, 256>}, {transform_indices = @transform_9, window_bounds = array<i64: 1, 256, 512>}, {transform_indices = @transform_10, window_bounds = array<i64: 1, 1, 512>}, {transform_indices = @transform_11, window_bounds = array<i64: 1, 512, 256>}, {transform_indices = @transform_12, window_bounds = array<i64: 1, 1, 256>}, {transform_indices = @transform_13, window_bounds = array<i64: 1, 1, 256>}, {transform_indices = @transform_14, window_bounds = array<i64: 1, 1, 256>}, {transform_indices = @transform_15, window_bounds = array<i64: 1, 1, 256>}, {transform_indices = @transform_16, window_bounds = array<i64: 1, 1, 256>}, {pipeline_mode = #tpu.pipeline_mode<synchronous>, transform_indices = @transform_17, window_bounds = array<i64: 256, 128>}, {pipeline_mode = #tpu.pipeline_mode<synchronous>, transform_indices = @transform_18, window_bounds = array<i64: 1, 128>}, {transform_indices = @transform_19, window_bounds = array<i64: 1, 15, 128>}]} {
    %c0_i32 = arith.constant 0 : i32
    %0 = arith.cmpi eq, %arg1, %c0_i32 : i32
    %1 = arith.extui %0 : i1 to i32
    %c0_i32_0 = arith.constant 0 : i32
    %2 = arith.cmpi ne, %1, %c0_i32_0 : i32
    scf.if %2 {
      %c0_68 = arith.constant 0 : index
      %c0_69 = arith.constant 0 : index
      %c0_70 = arith.constant 0 : index
      %149 = vector.load %arg2[%c0_68, %c0_69, %c0_70] : memref<1x15x128xf32, #tpu.memory_space<vmem>>, vector<1x15x128xf32>
      %150 = vector.shape_cast %149 : vector<1x15x128xf32> to vector<15x128xf32>
      %151 = arith.truncf %150 : vector<15x128xf32> to vector<15x128xbf16>
      %c0_71 = arith.constant 0 : index
      %c0_72 = arith.constant 0 : index
      %152 = vector.load %arg5[%c0_71, %c0_72] : memref<128x256xbf16, #tpu.memory_space<vmem>>, vector<128x256xbf16>
      %cst_73 = arith.constant dense<0.000000e+00> : vector<15x256xf32>
      %153 = tpu.matmul %151, %152, %cst_73 {dimension_numbers = #tpu.dot_dimension_numbers<[1], [0], [0], [1], [0, 0, 1, 1], [], []>} : vector<15x128xbf16>, vector<128x256xbf16>, vector<15x256xf32> -> vector<15x256xf32>
      %c0_74 = arith.constant 0 : index
      %c0_75 = arith.constant 0 : index
      %154 = vector.load %arg6[%c0_74, %c0_75] : memref<1x256xf32, #tpu.memory_space<vmem>>, vector<1x256xf32>
      %155 = vector.broadcast %154 : vector<1x256xf32> to vector<15x256xf32>
      %156 = arith.addf %153, %155 : vector<15x256xf32>
      %c0_76 = arith.constant 0 : index
      %c0_77 = arith.constant 0 : index
      %c0_78 = arith.constant 0 : index
      %157 = vector.load %arg3[%c0_76, %c0_77, %c0_78] : memref<1x1x256xf32, #tpu.memory_space<vmem>>, vector<1x1x256xf32>
      %158 = vector.shape_cast %157 : vector<1x1x256xf32> to vector<1x256xf32>
      %159 = tpu.concatenate %158, %156 in 0 : vector<1x256xf32>, vector<15x256xf32> -> vector<16x256xf32>
      %c0_79 = arith.constant 0 : index
      %c0_80 = arith.constant 0 : index
      %160 = vector.load %arg4[%c0_79, %c0_80] : memref<16x256xf32, #tpu.memory_space<vmem>>, vector<16x256xf32>
      %161 = arith.addf %159, %160 : vector<16x256xf32>
      %c0_81 = arith.constant 0 : index
      %c0_82 = arith.constant 0 : index
      %162 = vector.load %arg22[%c0_81, %c0_82] : memref<16x256xf32, #tpu.memory_space<vmem>>, vector<16x256xf32>
      tpu.vector_store %arg22[%c0_81, %c0_82], %161 {strides = array<i32>} : memref<16x256xf32, #tpu.memory_space<vmem>>, vector<16x256xf32>,
    } else {
    }
    %c0 = arith.constant 0 : index
    %c0_1 = arith.constant 0 : index
    %3 = vector.load %arg22[%c0, %c0_1] : memref<16x256xf32, #tpu.memory_space<vmem>>, vector<16x256xf32>
    %4 = arith.truncf %3 : vector<16x256xf32> to vector<16x256xbf16>
    %c0_2 = arith.constant 0 : index
    %c0_3 = arith.constant 0 : index
    %c0_4 = arith.constant 0 : index
    %5 = vector.load %arg7[%c0_2, %c0_3, %c0_4] : memref<1x256x768xbf16, #tpu.memory_space<vmem>>, vector<1x256x768xbf16>
    %6 = vector.shape_cast %5 : vector<1x256x768xbf16> to vector<256x768xbf16>
    %cst = arith.constant dense<0.000000e+00> : vector<16x768xf32>
    %7 = tpu.matmul %4, %6, %cst {dimension_numbers = #tpu.dot_dimension_numbers<[1], [0], [0], [1], [0, 0, 1, 1], [], []>} : vector<16x256xbf16>, vector<256x768xbf16>, vector<16x768xf32> -> vector<16x768xf32>
    %c0_5 = arith.constant 0 : index
    %c0_6 = arith.constant 0 : index
    %c0_7 = arith.constant 0 : index
    %8 = vector.load %arg8[%c0_5, %c0_6, %c0_7] : memref<1x1x768xf32, #tpu.memory_space<vmem>>, vector<1x1x768xf32>
    %9 = vector.shape_cast %8 : vector<1x1x768xf32> to vector<1x768xf32>
    %10 = vector.broadcast %9 : vector<1x768xf32> to vector<16x768xf32>
    %11 = arith.addf %7, %10 : vector<16x768xf32>
    %12 = vector.extract_strided_slice %11 {offsets = [0, 0], sizes = [16, 256], strides = [1, 1]} : vector<16x768xf32> to vector<16x256xf32>
    %13 = vector.extract_strided_slice %11 {offsets = [0, 256], sizes = [16, 256], strides = [1, 1]} : vector<16x768xf32> to vector<16x256xf32>
    %14 = vector.extract_strided_slice %11 {offsets = [0, 512], sizes = [16, 256], strides = [1, 1]} : vector<16x768xf32> to vector<16x256xf32>
    %15 = vector.extract_strided_slice %12 {offsets = [0, 0], sizes = [16, 128], strides = [1, 1]} : vector<16x256xf32> to vector<16x128xf32>
    %16 = arith.truncf %15 : vector<16x128xf32> to vector<16x128xbf16>
    %17 = vector.extract_strided_slice %13 {offsets = [0, 0], sizes = [16, 128], strides = [1, 1]} : vector<16x256xf32> to vector<16x128xf32>
    %18 = arith.truncf %17 : vector<16x128xf32> to vector<16x128xbf16>
    %19 = vector.extract_strided_slice %14 {offsets = [0, 0], sizes = [16, 128], strides = [1, 1]} : vector<16x256xf32> to vector<16x128xf32>
    %20 = arith.truncf %19 : vector<16x128xf32> to vector<16x128xbf16>
    %cst_8 = arith.constant dense<0.000000e+00> : vector<16x16xf32>
    %21 = tpu.matmul %16, %18, %cst_8 {dimension_numbers = #tpu.dot_dimension_numbers<[1], [1], [0], [0], [0, 0, 1, 0], [], []>} : vector<16x128xbf16>, vector<16x128xbf16>, vector<16x16xf32> -> vector<16x16xf32>
    %cst_9 = arith.constant 0.0883883461 : f32
    %22 = vector.broadcast %cst_9 : f32 to vector<16x16xf32>
    %23 = arith.mulf %21, %22 : vector<16x16xf32>
    %cst_10 = arith.constant dense<0xFF800000> : vector<16xf32>
    %24 = vector.multi_reduction <maximumf>, %23, %cst_10 [1] : vector<16x16xf32> to vector<16xf32>
    %25 = vector.shape_cast %24 : vector<16xf32> to vector<16x1xf32>
    %26 = vector.broadcast %25 : vector<16x1xf32> to vector<16x16xf32>
    %27 = arith.subf %23, %26 : vector<16x16xf32>
    %28 = math.exp %27 : vector<16x16xf32>
    %cst_11 = arith.constant dense<0.000000e+00> : vector<16xf32>
    %29 = vector.multi_reduction <add>, %28, %cst_11 [1] : vector<16x16xf32> to vector<16xf32>
    %30 = vector.shape_cast %29 : vector<16xf32> to vector<16x1xf32>
    %31 = arith.truncf %28 : vector<16x16xf32> to vector<16x16xbf16>
    %cst_12 = arith.constant dense<0.000000e+00> : vector<16x128xf32>
    %32 = tpu.matmul %31, %20, %cst_12 {dimension_numbers = #tpu.dot_dimension_numbers<[1], [0], [0], [1], [0, 0, 1, 1], [], []>} : vector<16x16xbf16>, vector<16x128xbf16>, vector<16x128xf32> -> vector<16x128xf32>
    %33 = tpu.reciprocal %30 {approx = true} : vector<16x1xf32> -> vector<16x1xf32>
    %34 = vector.broadcast %33 : vector<16x1xf32> to vector<16x128xf32>
    %35 = arith.mulf %32, %34 : vector<16x128xf32>
    %36 = vector.extract_strided_slice %12 {offsets = [0, 128], sizes = [16, 128], strides = [1, 1]} : vector<16x256xf32> to vector<16x128xf32>
    %37 = arith.truncf %36 : vector<16x128xf32> to vector<16x128xbf16>
    %38 = vector.extract_strided_slice %13 {offsets = [0, 128], sizes = [16, 128], strides = [1, 1]} : vector<16x256xf32> to vector<16x128xf32>
    %39 = arith.truncf %38 : vector<16x128xf32> to vector<16x128xbf16>
    %40 = vector.extract_strided_slice %14 {offsets = [0, 128], sizes = [16, 128], strides = [1, 1]} : vector<16x256xf32> to vector<16x128xf32>
    %41 = arith.truncf %40 : vector<16x128xf32> to vector<16x128xbf16>
    %cst_13 = arith.constant dense<0.000000e+00> : vector<16x16xf32>
    %42 = tpu.matmul %37, %39, %cst_13 {dimension_numbers = #tpu.dot_dimension_numbers<[1], [1], [0], [0], [0, 0, 1, 0], [], []>} : vector<16x128xbf16>, vector<16x128xbf16>, vector<16x16xf32> -> vector<16x16xf32>
    %cst_14 = arith.constant 0.0883883461 : f32
    %43 = vector.broadcast %cst_14 : f32 to vector<16x16xf32>
    %44 = arith.mulf %42, %43 : vector<16x16xf32>
    %cst_15 = arith.constant dense<0xFF800000> : vector<16xf32>
    %45 = vector.multi_reduction <maximumf>, %44, %cst_15 [1] : vector<16x16xf32> to vector<16xf32>
    %46 = vector.shape_cast %45 : vector<16xf32> to vector<16x1xf32>
    %47 = vector.broadcast %46 : vector<16x1xf32> to vector<16x16xf32>
    %48 = arith.subf %44, %47 : vector<16x16xf32>
    %49 = math.exp %48 : vector<16x16xf32>
    %cst_16 = arith.constant dense<0.000000e+00> : vector<16xf32>
    %50 = vector.multi_reduction <add>, %49, %cst_16 [1] : vector<16x16xf32> to vector<16xf32>
    %51 = vector.shape_cast %50 : vector<16xf32> to vector<16x1xf32>
    %52 = arith.truncf %49 : vector<16x16xf32> to vector<16x16xbf16>
    %cst_17 = arith.constant dense<0.000000e+00> : vector<16x128xf32>
    %53 = tpu.matmul %52, %41, %cst_17 {dimension_numbers = #tpu.dot_dimension_numbers<[1], [0], [0], [1], [0, 0, 1, 1], [], []>} : vector<16x16xbf16>, vector<16x128xbf16>, vector<16x128xf32> -> vector<16x128xf32>
    %54 = tpu.reciprocal %51 {approx = true} : vector<16x1xf32> -> vector<16x1xf32>
    %55 = vector.broadcast %54 : vector<16x1xf32> to vector<16x128xf32>
    %56 = arith.mulf %53, %55 : vector<16x128xf32>
    %57 = tpu.concatenate %35, %56 in 1 : vector<16x128xf32>, vector<16x128xf32> -> vector<16x256xf32>
    %58 = arith.truncf %57 : vector<16x256xf32> to vector<16x256xbf16>
    %c0_18 = arith.constant 0 : index
    %c0_19 = arith.constant 0 : index
    %c0_20 = arith.constant 0 : index
    %59 = vector.load %arg9[%c0_18, %c0_19, %c0_20] : memref<1x256x256xbf16, #tpu.memory_space<vmem>>, vector<1x256x256xbf16>
    %60 = vector.shape_cast %59 : vector<1x256x256xbf16> to vector<256x256xbf16>
    %cst_21 = arith.constant dense<0.000000e+00> : vector<16x256xf32>
    %61 = tpu.matmul %58, %60, %cst_21 {dimension_numbers = #tpu.dot_dimension_numbers<[1], [0], [0], [1], [0, 0, 1, 1], [], []>} : vector<16x256xbf16>, vector<256x256xbf16>, vector<16x256xf32> -> vector<16x256xf32>
    %c0_22 = arith.constant 0 : index
    %c0_23 = arith.constant 0 : index
    %c0_24 = arith.constant 0 : index
    %62 = vector.load %arg10[%c0_22, %c0_23, %c0_24] : memref<1x1x256xf32, #tpu.memory_space<vmem>>, vector<1x1x256xf32>
    %63 = vector.shape_cast %62 : vector<1x1x256xf32> to vector<1x256xf32>
    %64 = vector.broadcast %63 : vector<1x256xf32> to vector<16x256xf32>
    %65 = arith.addf %61, %64 : vector<16x256xf32>
    %66 = arith.addf %3, %65 : vector<16x256xf32>
    %c0_25 = arith.constant 0 : index
    %c0_26 = arith.constant 0 : index
    %c0_27 = arith.constant 0 : index
    %67 = vector.load %arg15[%c0_25, %c0_26, %c0_27] : memref<1x1x256xf32, #tpu.memory_space<vmem>>, vector<1x1x256xf32>
    %68 = vector.shape_cast %67 : vector<1x1x256xf32> to vector<1x256xf32>
    %c0_28 = arith.constant 0 : index
    %c0_29 = arith.constant 0 : index
    %c0_30 = arith.constant 0 : index
    %69 = vector.load %arg16[%c0_28, %c0_29, %c0_30] : memref<1x1x256xf32, #tpu.memory_space<vmem>>, vector<1x1x256xf32>
    %70 = vector.shape_cast %69 : vector<1x1x256xf32> to vector<1x256xf32>
    %cst_31 = arith.constant dense<0.000000e+00> : vector<16xf32>
    %71 = vector.multi_reduction <add>, %66, %cst_31 [1] : vector<16x256xf32> to vector<16xf32>
    %72 = vector.shape_cast %71 : vector<16xf32> to vector<16x1xf32>
    %cst_32 = arith.constant 2.560000e+02 : f32
    %73 = vector.broadcast %cst_32 : f32 to vector<16x1xf32>
    %74 = arith.divf %72, %73 : vector<16x1xf32>
    %75 = vector.broadcast %74 : vector<16x1xf32> to vector<16x256xf32>
    %76 = arith.subf %66, %75 : vector<16x256xf32>
    %77 = arith.mulf %76, %76 : vector<16x256xf32>
    %cst_33 = arith.constant dense<0.000000e+00> : vector<16xf32>
    %78 = vector.multi_reduction <add>, %77, %cst_33 [1] : vector<16x256xf32> to vector<16xf32>
    %79 = vector.shape_cast %78 : vector<16xf32> to vector<16x1xf32>
    %cst_34 = arith.constant 2.560000e+02 : f32
    %80 = vector.broadcast %cst_34 : f32 to vector<16x1xf32>
    %81 = arith.divf %79, %80 : vector<16x1xf32>
    %cst_35 = arith.constant 9.99999974E-6 : f32
    %82 = vector.broadcast %cst_35 : f32 to vector<16x1xf32>
    %83 = arith.addf %81, %82 : vector<16x1xf32>
    %84 = math.rsqrt %83 : vector<16x1xf32>
    %85 = vector.broadcast %84 : vector<16x1xf32> to vector<16x256xf32>
    %86 = arith.mulf %76, %85 : vector<16x256xf32>
    %87 = vector.broadcast %68 : vector<1x256xf32> to vector<16x256xf32>
    %88 = arith.mulf %86, %87 : vector<16x256xf32>
    %89 = vector.broadcast %70 : vector<1x256xf32> to vector<16x256xf32>
    %90 = arith.addf %88, %89 : vector<16x256xf32>
    %91 = arith.truncf %90 : vector<16x256xf32> to vector<16x256xbf16>
    %c0_36 = arith.constant 0 : index
    %c0_37 = arith.constant 0 : index
    %c0_38 = arith.constant 0 : index
    %92 = vector.load %arg11[%c0_36, %c0_37, %c0_38] : memref<1x256x512xbf16, #tpu.memory_space<vmem>>, vector<1x256x512xbf16>
    %93 = vector.shape_cast %92 : vector<1x256x512xbf16> to vector<256x512xbf16>
    %cst_39 = arith.constant dense<0.000000e+00> : vector<16x512xf32>
    %94 = tpu.matmul %91, %93, %cst_39 {dimension_numbers = #tpu.dot_dimension_numbers<[1], [0], [0], [1], [0, 0, 1, 1], [], []>} : vector<16x256xbf16>, vector<256x512xbf16>, vector<16x512xf32> -> vector<16x512xf32>
    %c0_40 = arith.constant 0 : index
    %c0_41 = arith.constant 0 : index
    %c0_42 = arith.constant 0 : index
    %95 = vector.load %arg12[%c0_40, %c0_41, %c0_42] : memref<1x1x512xf32, #tpu.memory_space<vmem>>, vector<1x1x512xf32>
    %96 = vector.shape_cast %95 : vector<1x1x512xf32> to vector<1x512xf32>
    %97 = vector.broadcast %96 : vector<1x512xf32> to vector<16x512xf32>
    %98 = arith.addf %94, %97 : vector<16x512xf32>
    %cst_43 = arith.constant 5.000000e-01 : f32
    %99 = vector.broadcast %cst_43 : f32 to vector<16x512xf32>
    %100 = arith.mulf %99, %98 : vector<16x512xf32>
    %cst_44 = arith.constant 4.471500e-02 : f32
    %101 = vector.broadcast %cst_44 : f32 to vector<16x512xf32>
    %102 = arith.mulf %101, %98 : vector<16x512xf32>
    %103 = arith.mulf %102, %98 : vector<16x512xf32>
    %104 = arith.mulf %103, %98 : vector<16x512xf32>
    %105 = arith.addf %98, %104 : vector<16x512xf32>
    %cst_45 = arith.constant 0.797884583 : f32
    %106 = vector.broadcast %cst_45 : f32 to vector<16x512xf32>
    %107 = arith.mulf %106, %105 : vector<16x512xf32>
    %108 = math.tanh %107 : vector<16x512xf32>
    %cst_46 = arith.constant 1.000000e+00 : f32
    %109 = vector.broadcast %cst_46 : f32 to vector<16x512xf32>
    %110 = arith.addf %109, %108 : vector<16x512xf32>
    %111 = arith.mulf %100, %110 : vector<16x512xf32>
    %112 = arith.truncf %111 : vector<16x512xf32> to vector<16x512xbf16>
    %c0_47 = arith.constant 0 : index
    %c0_48 = arith.constant 0 : index
    %c0_49 = arith.constant 0 : index
    %113 = vector.load %arg13[%c0_47, %c0_48, %c0_49] : memref<1x512x256xbf16, #tpu.memory_space<vmem>>, vector<1x512x256xbf16>
    %114 = vector.shape_cast %113 : vector<1x512x256xbf16> to vector<512x256xbf16>
    %cst_50 = arith.constant dense<0.000000e+00> : vector<16x256xf32>
    %115 = tpu.matmul %112, %114, %cst_50 {dimension_numbers = #tpu.dot_dimension_numbers<[1], [0], [0], [1], [0, 0, 1, 1], [], []>} : vector<16x512xbf16>, vector<512x256xbf16>, vector<16x256xf32> -> vector<16x256xf32>
    %c0_51 = arith.constant 0 : index
    %c0_52 = arith.constant 0 : index
    %c0_53 = arith.constant 0 : index
    %116 = vector.load %arg14[%c0_51, %c0_52, %c0_53] : memref<1x1x256xf32, #tpu.memory_space<vmem>>, vector<1x1x256xf32>
    %117 = vector.shape_cast %116 : vector<1x1x256xf32> to vector<1x256xf32>
    %118 = vector.broadcast %117 : vector<1x256xf32> to vector<16x256xf32>
    %119 = arith.addf %115, %118 : vector<16x256xf32>
    %120 = arith.addf %90, %119 : vector<16x256xf32>
    %c0_54 = arith.constant 0 : index
    %c0_55 = arith.constant 0 : index
    %c0_56 = arith.constant 0 : index
    %121 = vector.load %arg17[%c0_54, %c0_55, %c0_56] : memref<1x1x256xf32, #tpu.memory_space<vmem>>, vector<1x1x256xf32>
    %122 = vector.shape_cast %121 : vector<1x1x256xf32> to vector<1x256xf32>
    %c0_57 = arith.constant 0 : index
    %c0_58 = arith.constant 0 : index
    %c0_59 = arith.constant 0 : index
    %123 = vector.load %arg18[%c0_57, %c0_58, %c0_59] : memref<1x1x256xf32, #tpu.memory_space<vmem>>, vector<1x1x256xf32>
    %124 = vector.shape_cast %123 : vector<1x1x256xf32> to vector<1x256xf32>
    %cst_60 = arith.constant dense<0.000000e+00> : vector<16xf32>
    %125 = vector.multi_reduction <add>, %120, %cst_60 [1] : vector<16x256xf32> to vector<16xf32>
    %126 = vector.shape_cast %125 : vector<16xf32> to vector<16x1xf32>
    %cst_61 = arith.constant 2.560000e+02 : f32
    %127 = vector.broadcast %cst_61 : f32 to vector<16x1xf32>
    %128 = arith.divf %126, %127 : vector<16x1xf32>
    %129 = vector.broadcast %128 : vector<16x1xf32> to vector<16x256xf32>
    %130 = arith.subf %120, %129 : vector<16x256xf32>
    %131 = arith.mulf %130, %130 : vector<16x256xf32>
    %cst_62 = arith.constant dense<0.000000e+00> : vector<16xf32>
    %132 = vector.multi_reduction <add>, %131, %cst_62 [1] : vector<16x256xf32> to vector<16xf32>
    %133 = vector.shape_cast %132 : vector<16xf32> to vector<16x1xf32>
    %cst_63 = arith.constant 2.560000e+02 : f32
    %134 = vector.broadcast %cst_63 : f32 to vector<16x1xf32>
    %135 = arith.divf %133, %134 : vector<16x1xf32>
    %cst_64 = arith.constant 9.99999974E-6 : f32
    %136 = vector.broadcast %cst_64 : f32 to vector<16x1xf32>
    %137 = arith.addf %135, %136 : vector<16x1xf32>
    %138 = math.rsqrt %137 : vector<16x1xf32>
    %139 = vector.broadcast %138 : vector<16x1xf32> to vector<16x256xf32>
    %140 = arith.mulf %130, %139 : vector<16x256xf32>
    %141 = vector.broadcast %122 : vector<1x256xf32> to vector<16x256xf32>
    %142 = arith.mulf %140, %141 : vector<16x256xf32>
    %143 = vector.broadcast %124 : vector<1x256xf32> to vector<16x256xf32>
    %144 = arith.addf %142, %143 : vector<16x256xf32>
    %c0_65 = arith.constant 0 : index
    %c0_66 = arith.constant 0 : index
    %145 = vector.load %arg22[%c0_65, %c0_66] : memref<16x256xf32, #tpu.memory_space<vmem>>, vector<16x256xf32>
    tpu.vector_store %arg22[%c0_65, %c0_66], %144 {strides = array<i32>} : memref<16x256xf32, #tpu.memory_space<vmem>>, vector<16x256xf32>,
    %c1_i32 = arith.constant 1 : i32
    %146 = arith.cmpi eq, %arg1, %c1_i32 : i32
    %147 = arith.extui %146 : i1 to i32
    %c0_i32_67 = arith.constant 0 : i32
    %148 = arith.cmpi ne, %147, %c0_i32_67 : i32
    scf.if %148 {
      %149 = vector.extract_strided_slice %144 {offsets = [1, 0], sizes = [15, 256], strides = [1, 1]} : vector<16x256xf32> to vector<15x256xf32>
      %150 = arith.truncf %149 : vector<15x256xf32> to vector<15x256xbf16>
      %c0_68 = arith.constant 0 : index
      %c0_69 = arith.constant 0 : index
      %151 = vector.load %arg19[%c0_68, %c0_69] : memref<256x128xbf16, #tpu.memory_space<vmem>>, vector<256x128xbf16>
      %cst_70 = arith.constant dense<0.000000e+00> : vector<15x128xf32>
      %152 = tpu.matmul %150, %151, %cst_70 {dimension_numbers = #tpu.dot_dimension_numbers<[1], [0], [0], [1], [0, 0, 1, 1], [], []>} : vector<15x256xbf16>, vector<256x128xbf16>, vector<15x128xf32> -> vector<15x128xf32>
      %c0_71 = arith.constant 0 : index
      %c0_72 = arith.constant 0 : index
      %153 = vector.load %arg20[%c0_71, %c0_72] : memref<1x128xf32, #tpu.memory_space<vmem>>, vector<1x128xf32>
      %154 = vector.broadcast %153 : vector<1x128xf32> to vector<15x128xf32>
      %155 = arith.addf %152, %154 : vector<15x128xf32>
      %c0_73 = arith.constant 0 : index
      %c0_74 = arith.constant 0 : index
      %c0_75 = arith.constant 0 : index
      %156 = vector.load %arg21[%c0_73, %c0_74, %c0_75] : memref<1x15x128xf32, #tpu.memory_space<vmem>>, vector<1x15x128xf32>
      %157 = vector.shape_cast %156 : vector<1x15x128xf32> to vector<15x128xf32>
      %158 = vector.shape_cast %155 : vector<15x128xf32> to vector<1x15x128xf32>
      tpu.vector_store %arg21[%c0_73, %c0_74, %c0_75], %158 {strides = array<i32>} : memref<1x15x128xf32, #tpu.memory_space<vmem>>, vector<1x15x128xf32>,
    } else {
    }
    return
  }
  func.func @transform_0(%arg0: i32, %arg1: i32) -> (i32, i32, i32) {
    %c0_i32 = arith.constant 0 : i32
    %c0_i32_0 = arith.constant 0 : i32
    %c0_i32_1 = arith.constant 0 : i32
    return %arg0, %c0_i32, %c0_i32_0 : i32, i32, i32
  }
  func.func @transform_1(%arg0: i32, %arg1: i32) -> (i32, i32, i32) {
    %c0_i32 = arith.constant 0 : i32
    %c0_i32_0 = arith.constant 0 : i32
    %c0_i32_1 = arith.constant 0 : i32
    return %arg0, %c0_i32, %c0_i32_0 : i32, i32, i32
  }
  func.func @transform_2(%arg0: i32, %arg1: i32) -> (i32, i32) {
    %c0_i32 = arith.constant 0 : i32
    %c0_i32_0 = arith.constant 0 : i32
    %c0_i32_1 = arith.constant 0 : i32
    return %c0_i32, %c0_i32_0 : i32, i32
  }
  func.func @transform_3(%arg0: i32, %arg1: i32) -> (i32, i32) {
    %c0_i32 = arith.constant 0 : i32
    %c0_i32_0 = arith.constant 0 : i32
    %c0_i32_1 = arith.constant 0 : i32
    return %c0_i32, %c0_i32_0 : i32, i32
  }
  func.func @transform_4(%arg0: i32, %arg1: i32) -> (i32, i32) {
    %c0_i32 = arith.constant 0 : i32
    %c0_i32_0 = arith.constant 0 : i32
    %c0_i32_1 = arith.constant 0 : i32
    return %c0_i32, %c0_i32_0 : i32, i32
  }
  func.func @transform_5(%arg0: i32, %arg1: i32) -> (i32, i32, i32) {
    %c0_i32 = arith.constant 0 : i32
    %c0_i32_0 = arith.constant 0 : i32
    %c0_i32_1 = arith.constant 0 : i32
    return %arg1, %c0_i32, %c0_i32_0 : i32, i32, i32
  }
  func.func @transform_6(%arg0: i32, %arg1: i32) -> (i32, i32, i32) {
    %c0_i32 = arith.constant 0 : i32
    %c0_i32_0 = arith.constant 0 : i32
    %c0_i32_1 = arith.constant 0 : i32
    return %arg1, %c0_i32, %c0_i32_0 : i32, i32, i32
  }
  func.func @transform_7(%arg0: i32, %arg1: i32) -> (i32, i32, i32) {
    %c0_i32 = arith.constant 0 : i32
    %c0_i32_0 = arith.constant 0 : i32
    %c0_i32_1 = arith.constant 0 : i32
    return %arg1, %c0_i32, %c0_i32_0 : i32, i32, i32
  }
  func.func @transform_8(%arg0: i32, %arg1: i32) -> (i32, i32, i32) {
    %c0_i32 = arith.constant 0 : i32
    %c0_i32_0 = arith.constant 0 : i32
    %c0_i32_1 = arith.constant 0 : i32
    return %arg1, %c0_i32, %c0_i32_0 : i32, i32, i32
  }
  func.func @transform_9(%arg0: i32, %arg1: i32) -> (i32, i32, i32) {
    %c0_i32 = arith.constant 0 : i32
    %c0_i32_0 = arith.constant 0 : i32
    %c0_i32_1 = arith.constant 0 : i32
    return %arg1, %c0_i32, %c0_i32_0 : i32, i32, i32
  }
  func.func @transform_10(%arg0: i32, %arg1: i32) -> (i32, i32, i32) {
    %c0_i32 = arith.constant 0 : i32
    %c0_i32_0 = arith.constant 0 : i32
    %c0_i32_1 = arith.constant 0 : i32
    return %arg1, %c0_i32, %c0_i32_0 : i32, i32, i32
  }
  func.func @transform_11(%arg0: i32, %arg1: i32) -> (i32, i32, i32) {
    %c0_i32 = arith.constant 0 : i32
    %c0_i32_0 = arith.constant 0 : i32
    %c0_i32_1 = arith.constant 0 : i32
    return %arg1, %c0_i32, %c0_i32_0 : i32, i32, i32
  }
  func.func @transform_12(%arg0: i32, %arg1: i32) -> (i32, i32, i32) {
    %c0_i32 = arith.constant 0 : i32
    %c0_i32_0 = arith.constant 0 : i32
    %c0_i32_1 = arith.constant 0 : i32
    return %arg1, %c0_i32, %c0_i32_0 : i32, i32, i32
  }
  func.func @transform_13(%arg0: i32, %arg1: i32) -> (i32, i32, i32) {
    %c0_i32 = arith.constant 0 : i32
    %c0_i32_0 = arith.constant 0 : i32
    %c0_i32_1 = arith.constant 0 : i32
    return %arg1, %c0_i32, %c0_i32_0 : i32, i32, i32
  }
  func.func @transform_14(%arg0: i32, %arg1: i32) -> (i32, i32, i32) {
    %c0_i32 = arith.constant 0 : i32
    %c0_i32_0 = arith.constant 0 : i32
    %c0_i32_1 = arith.constant 0 : i32
    return %arg1, %c0_i32, %c0_i32_0 : i32, i32, i32
  }
  func.func @transform_15(%arg0: i32, %arg1: i32) -> (i32, i32, i32) {
    %c0_i32 = arith.constant 0 : i32
    %c0_i32_0 = arith.constant 0 : i32
    %c0_i32_1 = arith.constant 0 : i32
    return %arg1, %c0_i32, %c0_i32_0 : i32, i32, i32
  }
  func.func @transform_16(%arg0: i32, %arg1: i32) -> (i32, i32, i32) {
    %c0_i32 = arith.constant 0 : i32
    %c0_i32_0 = arith.constant 0 : i32
    %c0_i32_1 = arith.constant 0 : i32
    return %arg1, %c0_i32, %c0_i32_0 : i32, i32, i32
  }
  func.func @transform_17(%arg0: i32, %arg1: i32) -> (i32, i32) {
    %c0_i32 = arith.constant 0 : i32
    %c0_i32_0 = arith.constant 0 : i32
    %c0_i32_1 = arith.constant 0 : i32
    return %c0_i32, %c0_i32_0 : i32, i32
  }
  func.func @transform_18(%arg0: i32, %arg1: i32) -> (i32, i32) {
    %c0_i32 = arith.constant 0 : i32
    %c0_i32_0 = arith.constant 0 : i32
    %c0_i32_1 = arith.constant 0 : i32
    return %c0_i32, %c0_i32_0 : i32, i32
  }
  func.func @transform_19(%arg0: i32, %arg1: i32) -> (i32, i32, i32) {
    %c0_i32 = arith.constant 0 : i32
    %c0_i32_0 = arith.constant 0 : i32
    %c0_i32_1 = arith.constant 0 : i32
    return %arg0, %c0_i32, %c0_i32_0 : i32, i32, i32
  }
}

</mosaic_0001>

<bundles_post_ra>
// kernel: motion_diffusion_forward.2
= control target key start
LH: loop header
LB: loop body
LE: loop exit
PB: predicated region body
PF: predicated region fallthrough
CT: control target
= control target key end

     0   :  { %13 = vsyncpa [#allocation3], 0  ;;  %s1221_s0 = inlined_call_operand.vmem [shape: f32[8,256], index: 0, kind: input, shape index: {}]   ;;  %s1222_s1 = inlined_call_operand.vmem [shape: f32[8,128], index: 1, kind: input, shape index: {}]   ;;  %s1223_s2 = inlined_call_operand.hbm [shape: bf16[256,256], index: 2, kind: input, shape index: {}]   ;;  %s1224_s3 = inlined_call_operand.vmem [shape: f32[1,256], index: 3, kind: input, shape index: {}]   ;;  %s1225_s4 = inlined_call_operand.hbm [shape: bf16[256,256], index: 4, kind: input, shape index: {}]   ;;  %s1226_s5 = inlined_call_operand.vmem [shape: f32[1,256], index: 5, kind: input, shape index: {}]   ;;  %s1227_s6 = inlined_call_operand.hbm [shape: bf16[128,256], index: 6, kind: input, shape index: {}]   ;;  %s1228_s7 = inlined_call_operand.hbm [shape: f32[1,256], index: 7, kind: input, shape index: {}]   ;;  %s1229_s8 = inlined_call_operand.vmem [shape: f32[8,256], index: 8, kind: output, shape index: {}]  }
   0x1   :  { %14 = vsyncpa [#allocation5], 0 }
   0x2   :  { %15 = vsyncpa [#allocation8], 0  ;;  %s1074_s27 = smov [#allocation4]   ;;  %s1075_s29 = smov [#allocation2]  }
   0x3   :  { %s39_s28 = sshll.u32 %s1074_s27, 4  ;;  %s25_s30 = sshll.u32 %s1075_s29, 4  ;;  %s40_s28 = int_to_ptr.vmem [resolvable:$true] %s39_s28  ;;  %s1126_s30 = int_to_ptr.vmem [resolvable:$true] %s25_s30 }
   0x4   :  { %s980_s11 = scalar_lea.hbm %s1225_s4, 4096 }
   0x5   :  { %p981_p0 = scmp.ne.s32.totalorder %s1225_s4, %s980_s11  ;;  %p984_p1 = scmp.lt.u32.totalorder %s980_s11, %s1225_s4 }
   0x7   :  { %p986_p2 = pnand %p984_p1, %p981_p0 }
   0x9   :  { %989 = shalt.err (!%p986_p2)
}
   0xa   :  { %s990_s16 = scalar_lea.vmem %s40_s28, 4096  ;;  %p995_p4 = scmp.lt.s32.totalorder %s40_s28, %s40_s28 }
   0xb   :  { %p991_p3 = scmp.ne.s32.totalorder %s40_s28, %s990_s16  ;;  %p996_p5 = scmp.lt.s32.totalorder %s990_s16, %s990_s16 }
   0xd   :  { %p997_p6 = por %p996_p5, %p995_p4 }
   0xf   :  { %p998_p7 = pnand %p997_p6, %p991_p3 }
  0x11   :  { %1001 = shalt.err (!%p998_p7)
}
  0x12   :  { %s1076_s17 = smov 128   ;;  %s1077_s18 = smov 8  }
  0x13   :  { %45 = dma.hbm_to_vmem [thread:$0]  %s1225_s4, 4096, %s40_s28, [#allocation5], %s1076_s17, %s1076_s17, %s1077_s18  }
  0x14   :  { %s1002_s23 = scalar_lea.hbm %s1223_s2, 4096 }
  0x15   :  { %p1003_p8 = scmp.ne.s32.totalorder %s1223_s2, %s1002_s23  ;;  %p1006_p9 = scmp.lt.u32.totalorder %s1002_s23, %s1223_s2 }
  0x17   :  { %p1008_p10 = pnand %p1006_p9, %p1003_p8 }
  0x19   :  { %1011 = shalt.err (!%p1008_p10)
}
  0x1a   :  { %s1012_s29 = scalar_lea.vmem %s1126_s30, 4096  ;;  %p1017_p12 = scmp.lt.s32.totalorder %s1126_s30, %s1126_s30 }
  0x1b   :  { %p1013_p11 = scmp.ne.s32.totalorder %s1126_s30, %s1012_s29  ;;  %p1018_p13 = scmp.lt.s32.totalorder %s1012_s29, %s1012_s29 }
  0x1d   :  { %p1019_p0 = por %p1018_p13, %p1017_p12 }
  0x1f   :  { %p1020_p1 = pnand %p1019_p0, %p1013_p11 }
  0x21   :  { %1023 = shalt.err (!%p1020_p1)
}
  0x22   :  { %31 = dma.hbm_to_vmem [thread:$0]  %s1223_s2, 4096, %s1126_s30, [#allocation3], %s1076_s17, %s1076_s17, %s1077_s18  }
  0x23   :  { %s1078_s9 = smov [#allocation6]   ;;  %s1079_s11 = smov [#allocation7]  }
  0x24   :  { %s53_s10 = sshll.u32 %s1078_s9, 4  ;;  %s66_s12 = sshll.u32 %s1079_s11, 4  ;;  %s54_s10 = int_to_ptr.vmem [resolvable:$true] %s53_s10  ;;  %s67_s12 = int_to_ptr.vmem [resolvable:$true] %s66_s12 }
  0x25   :  { %s1024_s15 = scalar_lea.hbm %s1227_s6, 2048 }
  0x26   :  { %p1025_p2 = scmp.ne.s32.totalorder %s1227_s6, %s1024_s15  ;;  %p1028_p3 = scmp.lt.u32.totalorder %s1024_s15, %s1227_s6 }
  0x28   :  { %p1030_p4 = pnand %p1028_p3, %p1025_p2 }
  0x2a   :  { %1033 = shalt.err (!%p1030_p4)
}
  0x2b   :  { %s1034_s2 = scalar_lea.vmem %s54_s10, 2048  ;;  %p1039_p6 = scmp.lt.s32.totalorder %s54_s10, %s54_s10 }
  0x2c   :  { %p1035_p5 = scmp.ne.s32.totalorder %s54_s10, %s1034_s2  ;;  %p1040_p7 = scmp.lt.s32.totalorder %s1034_s2, %s1034_s2 }
  0x2e   :  { %p1041_p8 = por %p1040_p7, %p1039_p6 }
  0x30   :  { %p1042_p9 = pnand %p1041_p8, %p1035_p5 }
  0x32   :  { %1045 = shalt.err (!%p1042_p9)
}
  0x33   :  { %59 = dma.hbm_to_vmem [thread:$0]  %s1227_s6, 2048, %s54_s10, [#allocation5], %s1076_s17, %s1076_s17, %s1077_s18  }
  0x34   :  { %s1046_s25 = scalar_lea.hbm %s1228_s7, 32 }
  0x35   :  { %p1047_p10 = scmp.ne.s32.totalorder %s1228_s7, %s1046_s25  ;;  %p1050_p11 = scmp.lt.u32.totalorder %s1046_s25, %s1228_s7 }
  0x37   :  { %p1052_p12 = pnand %p1050_p11, %p1047_p10 }
  0x39   :  { %1055 = shalt.err (!%p1052_p12)
}
  0x3a   :  { %s1056_s28 = scalar_lea.vmem %s67_s12, 32  ;;  %p1061_p0 = scmp.lt.s32.totalorder %s67_s12, %s67_s12 }
  0x3b   :  { %p1057_p13 = scmp.ne.s32.totalorder %s67_s12, %s1056_s28  ;;  %p1062_p1 = scmp.lt.s32.totalorder %s1056_s28, %s1056_s28 }
  0x3d   :  { %p1063_p2 = por %p1062_p1, %p1061_p0 }
  0x3f   :  { %p1064_p3 = pnand %p1063_p2, %p1057_p13 }
  0x41   :  { %1067 = shalt.err (!%p1064_p3)
}
  0x42   :  { %69 = dma.hbm_to_vmem [thread:$0]  %s1228_s7, 32, %s67_s12, [#allocation8]  }
  0x43   :  { %1068 = dma.done.wait [#allocation3], 4096  }
  0x44   :  { %1069 = vsyncadd [#allocation3], 4294963200 }
  0x45   :  { %1070 = dma.done.wait [#allocation5], 6144  }
  0x46   :  { %1071 = vsyncadd [#allocation5], 4294961152 }
  0x47   :  { %1072 = dma.done.wait [#allocation8], 32  }
  0x48   :  { %1073 = vsyncadd [#allocation8], 4294967264  ;;  %v852_v0 = vld [vmem:[#allocation2 + $0x4] ss:$8 sps:$4 sm:$0xff]   ;;  %v854_v1 = vld [vmem:[#allocation2] ss:$8 sps:$4 sm:$0xff]  }
  0x49   :  { %291 = vmatprep.subr.bf16.mxu0 %v852_v0  ;;  %v855_v2 = vld [vmem:[#allocation2 + $0x14] ss:$8 sps:$4 sm:$0xff]   ;;  %v857_v3 = vld [vmem:[#allocation2 + $0x10] ss:$8 sps:$4 sm:$0xff]   ;;  %v858_v4 = vld [vmem:[#allocation2 + $0x24] ss:$8 sps:$4 sm:$0xff]  }
  0x4a   :  { %292 = vmatpush1.bf16.msra.mxu0 %v854_v1  ;;  %v860_v5 = vld [vmem:[#allocation2 + $0x20] ss:$8 sps:$4 sm:$0xff]   ;;  %v861_v6 = vld [vmem:[#allocation2 + $0x34] ss:$8 sps:$4 sm:$0xff]   ;;  %v863_v7 = vld [vmem:[#allocation2 + $0x30] ss:$8 sps:$4 sm:$0xff]  }
  0x4b   :  { %293 = vmatprep.subr.bf16.mxu0 %v855_v2  ;;  %v864_v8 = vld [vmem:[#allocation2 + $0x44] ss:$8 sps:$4 sm:$0xff]   ;;  %v866_v9 = vld [vmem:[#allocation2 + $0x40] ss:$8 sps:$4 sm:$0xff]   ;;  %v867_v10 = vld [vmem:[#allocation2 + $0x54] ss:$8 sps:$4 sm:$0xff]  }
  0x4c   :  { %v869_v11 = vld [vmem:[#allocation2 + $0x50] ss:$8 sps:$4 sm:$0xff]   ;;  %v870_v12 = vld [vmem:[#allocation2 + $0x64] ss:$8 sps:$4 sm:$0xff]   ;;  %v872_v13 = vld [vmem:[#allocation2 + $0x60] ss:$8 sps:$4 sm:$0xff]  }
  0x4d   :  { %v84_v14 = vld [vmem:[%s1221_s0 + $0x8] sm:$0xff]  ;;  %v873_v18 = vld [vmem:[#allocation2 + $0x74] ss:$8 sps:$4 sm:$0xff]   ;;  %v875_v20 = vld [vmem:[#allocation2 + $0x70] ss:$8 sps:$4 sm:$0xff]  }
  0x4e   :  { %294 = vmatpush1.bf16.msra.mxu0 %v857_v3  ;;  %v86_v15 = vpack.c.bf16 %v84_v14, %v84_v14  ;;  %v900_v16 = vld [vmem:[#allocation4 + $0x4] ss:$8 sps:$4 sm:$0xff]   ;;  %v902_v17 = vld [vmem:[#allocation4] ss:$8 sps:$4 sm:$0xff]   ;;  %v903_v19 = vld [vmem:[#allocation4 + $0x14] ss:$8 sps:$4 sm:$0xff]  }
  0x4f   :  { %295 = vmatprep.subr.bf16.mxu0 %v858_v4  ;;  %552 = vmatprep.subr.bf16.mxu1 %v900_v16  ;;  %v905_v21 = vld [vmem:[#allocation4 + $0x10] ss:$8 sps:$4 sm:$0xff]   ;;  %v906_v22 = vld [vmem:[#allocation4 + $0x24] ss:$8 sps:$4 sm:$0xff]   ;;  %v878_v24 = vld [vmem:[#allocation2 + $0x80] ss:$8 sps:$4 sm:$0xff]  }
  0x50   :  { %323 = vmatprep.mubr.bf16.mxu0 %v86_v15  ;;  %553 = vmatpush1.bf16.msra.mxu1 %v902_v17  ;;  %v876_v23 = vld [vmem:[#allocation2 + $0x84] ss:$8 sps:$4 sm:$0xff]   ;;  %v908_v25 = vld [vmem:[#allocation4 + $0x20] ss:$8 sps:$4 sm:$0xff]   ;;  %v909_v26 = vld [vmem:[#allocation4 + $0x34] ss:$8 sps:$4 sm:$0xff]  }
  0x51   :  { %554 = vmatprep.subr.bf16.mxu1 %v903_v19  ;;  %v879_v27 = vld [vmem:[#allocation2 + $0x94] ss:$8 sps:$4 sm:$0xff]   ;;  %v911_v28 = vld [vmem:[#allocation4 + $0x30] ss:$8 sps:$4 sm:$0xff]   ;;  %v912_v30 = vld [vmem:[#allocation4 + $0x44] ss:$8 sps:$4 sm:$0xff]  }
  0x52   :  { %296 = vmatpush1.bf16.msra.mxu0 %v860_v5  ;;  %v881_v29 = vld [vmem:[#allocation2 + $0x90] ss:$8 sps:$4 sm:$0xff]   ;;  %v882_v31 = vld [vmem:[#allocation2 + $0xa4] ss:$8 sps:$4 sm:$0xff]   ;;  %v914_v32 = vld [vmem:[#allocation4 + $0x40] ss:$8 sps:$4 sm:$0xff]   ;;  %v121_v5 = vlaneseq }
  0x53   :  { %297 = vmatprep.subr.bf16.mxu0 %v861_v6  ;;  %v884_v33 = vld [vmem:[#allocation2 + $0xa0] ss:$8 sps:$4 sm:$0xff]   ;;  %v915_v34 = vld [vmem:[#allocation4 + $0x54] ss:$8 sps:$4 sm:$0xff]   ;;  %v917_v36 = vld [vmem:[#allocation4 + $0x50] ss:$8 sps:$4 sm:$0xff]  }
  0x54   :  { %555 = vmatpush1.bf16.msra.mxu1 %v905_v21  ;;  %v885_v35 = vld [vmem:[#allocation2 + $0xb4] ss:$8 sps:$4 sm:$0xff]   ;;  %v887_v37 = vld [vmem:[#allocation2 + $0xb0] ss:$8 sps:$4 sm:$0xff]   ;;  %v918_v38 = vld [vmem:[#allocation4 + $0x64] ss:$8 sps:$4 sm:$0xff]  }
  0x55   :  { %556 = vmatprep.subr.bf16.mxu1 %v906_v22  ;;  %v888_v39 = vld [vmem:[#allocation2 + $0xc4] ss:$8 sps:$4 sm:$0xff]   ;;  %v920_v40 = vld [vmem:[#allocation4 + $0x60] ss:$8 sps:$4 sm:$0xff]   ;;  %v921_v42 = vld [vmem:[#allocation4 + $0x74] ss:$8 sps:$4 sm:$0xff]  }
  0x56   :  { %298 = vmatpush1.bf16.msra.mxu0 %v863_v7  ;;  %v890_v41 = vld [vmem:[#allocation2 + $0xc0] ss:$8 sps:$4 sm:$0xff]   ;;  %v891_v43 = vld [vmem:[#allocation2 + $0xd4] ss:$8 sps:$4 sm:$0xff]   ;;  %v923_v44 = vld [vmem:[#allocation4 + $0x70] ss:$8 sps:$4 sm:$0xff]  }
  0x57   :  { %299 = vmatprep.subr.bf16.mxu0 %v864_v8  ;;  %v893_v45 = vld [vmem:[#allocation2 + $0xd0] ss:$8 sps:$4 sm:$0xff]   ;;  %v894_v46 = vld [vmem:[#allocation2 + $0xe4] ss:$8 sps:$4 sm:$0xff]   ;;  %v896_v47 = vld [vmem:[#allocation2 + $0xe0] ss:$8 sps:$4 sm:$0xff]  }
  0x58   :  { %557 = vmatpush1.bf16.msra.mxu1 %v908_v25  ;;  %v897_v48 = vld [vmem:[#allocation2 + $0xf4] ss:$8 sps:$4 sm:$0xff]   ;;  %v899_v49 = vld [vmem:[#allocation2 + $0xf0] ss:$8 sps:$4 sm:$0xff]   ;;  %v83_v50 = vld [vmem:[%s1221_s0] sm:$0xff]  ;;  %v122_v6 = vshrl.u32 %v121_v5, 7 }
  0x59   :  { %558 = vmatprep.subr.bf16.mxu1 %v909_v26  ;;  %v85_v51 = vpack.c.bf16 %v83_v50, %v83_v50  ;;  %v924_v52 = vld [vmem:[#allocation4 + $0x84] ss:$8 sps:$4 sm:$0xff]   ;;  %v926_v53 = vld [vmem:[#allocation4 + $0x80] ss:$8 sps:$4 sm:$0xff]   ;;  %v927_v54 = vld [vmem:[#allocation4 + $0x94] ss:$8 sps:$4 sm:$0xff]  }
  0x5a   :  { %300 = vmatpush1.bf16.msra.mxu0 %v866_v9  ;;  %v929_v55 = vld [vmem:[#allocation4 + $0x90] ss:$8 sps:$4 sm:$0xff]   ;;  %v930_v56 = vld [vmem:[#allocation4 + $0xa4] ss:$8 sps:$4 sm:$0xff]   ;;  %v932_v57 = vld [vmem:[#allocation4 + $0xa0] ss:$8 sps:$4 sm:$0xff]  }
  0x5b   :  { %301 = vmatprep.subr.bf16.mxu0 %v867_v10  ;;  %v933_v58 = vld [vmem:[#allocation4 + $0xb4] ss:$8 sps:$4 sm:$0xff]   ;;  %v935_v59 = vld [vmem:[#allocation4 + $0xb0] ss:$8 sps:$4 sm:$0xff]   ;;  %v936_v60 = vld [vmem:[#allocation4 + $0xc4] ss:$8 sps:$4 sm:$0xff]  }
  0x5c   :  { %559 = vmatpush1.bf16.msra.mxu1 %v911_v28  ;;  %v938_v61 = vld [vmem:[#allocation4 + $0xc0] ss:$8 sps:$4 sm:$0xff]   ;;  %v939_v62 = vld [vmem:[#allocation4 + $0xd4] ss:$8 sps:$4 sm:$0xff]   ;;  %v941_v63 = vld [vmem:[#allocation4 + $0xd0] ss:$8 sps:$4 sm:$0xff]  }
  0x5d   :  { %560 = vmatprep.subr.bf16.mxu1 %v912_v30  ;;  %v942_v0 = vld [vmem:[#allocation4 + $0xe4] ss:$8 sps:$4 sm:$0xff]   ;;  %v944_v1 = vld [vmem:[#allocation4 + $0xe0] ss:$8 sps:$4 sm:$0xff]   ;;  %v945_v2 = vld [vmem:[#allocation4 + $0xf4] ss:$8 sps:$4 sm:$0xff]  }
  0x5e   :  { %302 = vmatpush1.bf16.msra.mxu0 %v869_v11  ;;  %v947_v3 = vld [vmem:[#allocation4 + $0xf0] ss:$8 sps:$4 sm:$0xff]   ;;  %v950_v4 = vld [vmem:[#allocation6 + $0x4] ss:$8 sps:$4 sm:$0xff]   ;;  %v1196_v7 = vsub.s32 0, %v122_v6  ;;  %v1201_v9 = vsub.s32 1, %v122_v6 }
  0x5f   :  { %303 = vmatprep.subr.bf16.mxu0 %v870_v12  ;;  %v119_v8 = vld [vmem:[%s1224_s3] sm:$0x3] }
  0x60   :  { %561 = vmatpush1.bf16.msra.mxu1 %v914_v32  ;;  %v124_v10 = vrot.slane %v119_v8, %v1196_v7  ;;  %v128_v11 = vrot.slane %v119_v8, %v1201_v9  ;;  %v951_v32 = vld [vmem:[#allocation6 + $0x10] ss:$8 sps:$4 sm:$0xff]  }
  0x61   :  { %562 = vmatprep.subr.bf16.mxu1 %v915_v34  ;;  %v956_v34 = vld [vmem:[#allocation6 + $0x24] ss:$8 sps:$4 sm:$0xff]  }
  0x62   :  { %304 = vmatpush1.bf16.msra.mxu0 %v872_v13 }
  0x63   :  { %305 = vmatprep.subr.bf16.mxu0 %v873_v18 }
  0x64   :  { %563 = vmatpush1.bf16.msra.mxu1 %v917_v36  ;;  %v959_v36 = vld [vmem:[#allocation6 + $0x34] ss:$8 sps:$4 sm:$0xff]  }
  0x65   :  { %564 = vmatprep.subr.bf16.mxu1 %v918_v38  ;;  %v962_v38 = vld [vmem:[#allocation6 + $0x44] ss:$8 sps:$4 sm:$0xff]  }
  0x66   :  { %306 = vmatpush1.bf16.msra.mxu0 %v875_v20 }
  0x67   :  { %307 = vmatprep.subr.bf16.mxu0 %v876_v23 }
  0x68   :  { %565 = vmatpush1.bf16.msra.mxu1 %v920_v40  ;;  %v965_v40 = vld [vmem:[#allocation6 + $0x54] ss:$8 sps:$4 sm:$0xff]  }
  0x69   :  { %566 = vmatprep.subr.bf16.mxu1 %v921_v42  ;;  %v968_v42 = vld [vmem:[#allocation6 + $0x64] ss:$8 sps:$4 sm:$0xff]  }
  0x6a   :  { %308 = vmatpush1.bf16.msra.mxu0 %v878_v24 }
  0x6b   :  { %309 = vmatprep.subr.bf16.mxu0 %v879_v27 }
  0x6c   :  { %567 = vmatpush1.bf16.msra.mxu1 %v923_v44  ;;  %v971_v44 = vld [vmem:[#allocation6 + $0x74] ss:$8 sps:$4 sm:$0xff]  }
  0x6d   :  { %568 = vmatprep.subr.bf16.mxu1 %v924_v52 }
  0x6e   :  { %310 = vmatpush1.bf16.msra.mxu0 %v881_v29  ;;  %v948_v29 = vld [vmem:[#allocation6] ss:$8 sps:$4 sm:$0xff]  }
  0x6f   :  { %311 = vmatprep.subr.bf16.mxu0 %v882_v31  ;;  %v953_v31 = vld [vmem:[#allocation6 + $0x14] ss:$8 sps:$4 sm:$0xff]  }
  0x70   :  { %569 = vmatpush1.bf16.msra.mxu1 %v926_v53 }
  0x71   :  { %570 = vmatprep.subr.bf16.mxu1 %v927_v54 }
  0x72   :  { %312 = vmatpush1.bf16.msra.mxu0 %v884_v33  ;;  %v1080_v33 = vmov 0  }
  0x73   :  { %313 = vmatprep.subr.bf16.mxu0 %v885_v35  ;;  %v954_v35 = vld [vmem:[#allocation6 + $0x20] ss:$8 sps:$4 sm:$0xff]  }
  0x74   :  { %571 = vmatpush1.bf16.msra.mxu1 %v929_v55 }
  0x75   :  { %572 = vmatprep.subr.bf16.mxu1 %v930_v56 }
  0x76   :  { %314 = vmatpush1.bf16.msra.mxu0 %v887_v37  ;;  %v957_v37 = vld [vmem:[#allocation6 + $0x30] ss:$8 sps:$4 sm:$0xff]  }
  0x77   :  { %315 = vmatprep.subr.bf16.mxu0 %v888_v39  ;;  %v960_v39 = vld [vmem:[#allocation6 + $0x40] ss:$8 sps:$4 sm:$0xff]  }
  0x78   :  { %573 = vmatpush1.bf16.msra.mxu1 %v932_v57 }
  0x79   :  { %574 = vmatprep.subr.bf16.mxu1 %v933_v58 }
  0x7a   :  { %316 = vmatpush1.bf16.msra.mxu0 %v890_v41  ;;  %v963_v41 = vld [vmem:[#allocation6 + $0x50] ss:$8 sps:$4 sm:$0xff]  }
  0x7b   :  { %317 = vmatprep.subr.bf16.mxu0 %v891_v43  ;;  %v966_v43 = vld [vmem:[#allocation6 + $0x60] ss:$8 sps:$4 sm:$0xff]  }
  0x7c   :  { %575 = vmatpush1.bf16.msra.mxu1 %v935_v59 }
  0x7d   :  { %576 = vmatprep.subr.bf16.mxu1 %v936_v60 }
  0x7e   :  { %318 = vmatpush1.bf16.msra.mxu0 %v893_v45  ;;  %v969_v45 = vld [vmem:[#allocation6 + $0x70] ss:$8 sps:$4 sm:$0xff]  }
  0x7f   :  { %319 = vmatprep.subr.bf16.mxu0 %v894_v46  ;;  %v593_v46 = vld [vmem:[%s1222_s1] sm:$0xff] }
  0x80   :  { %577 = vmatpush1.bf16.msra.mxu1 %v938_v61 }
  0x81   :  { %578 = vmatprep.subr.bf16.mxu1 %v939_v62 }
  0x82   :  { %320 = vmatpush1.bf16.msra.mxu0 %v896_v47  ;;  %v594_v47 = vpack.c.bf16 %v593_v46, %v593_v46 }
  0x83   :  { %321 = vmatprep.subr.bf16.mxu0 %v897_v48  ;;  %v380_v48 = vld [vmem:[%s1226_s5] sm:$0x3] }
  0x84   :  { %579 = vmatpush1.bf16.msra.mxu1 %v941_v63  ;;  %v385_v50 = vrot.slane %v380_v48, %v1196_v7  ;;  %v389_v52 = vrot.slane %v380_v48, %v1201_v9 }
  0x85   :  { %580 = vmatprep.subr.bf16.mxu1 %v942_v0 }
  0x86   :  { %322 = vmatpush1.bf16.msra.mxu0 %v899_v49  ;;  %v611_v49 = vld [vmem:[#allocation7] sm:$0x3] }
  0x87   :  { %v620_v53 = vrot.slane %v611_v49, %v1201_v9 }
  0x88   :  { %581 = vmatpush1.bf16.msra.mxu1 %v944_v1 }
  0x89   :  { %324 = vmatmul.mubr.bf16.vlgmr.msra.gmra.mrb[0].mxu0 %v85_v51  ;;  %582 = vmatprep.subr.bf16.mxu1 %v945_v2  ;;  %v616_v51 = vrot.slane %v611_v49, %v1196_v7  ;;  %v839_v55 = vadd.f32 %v620_v53, %v389_v52 }
  0x8b   :  { %v837_v54 = vadd.f32 %v616_v51, %v385_v50 }
  0x8c   :  { %583 = vmatpush1.bf16.msra.mxu1 %v947_v3 }
  0x8d   :  { %703 = vmatprep.subr.bf16.mxu1 %v950_v4 }
 0x15c   :  { %v325_v12 = vpop.f32.mrb[0].mxu0 }
 0x15d   :  { %v326_v13 = vadd.f32 %v325_v12, %v124_v10  ;;  %v327_v14 = vpop.f32.mrb[1].mxu0 }
 0x15e   :  { %v328_v15 = vadd.f32 %v327_v14, %v128_v11  ;;  %v329_v16 = vpop.f32.mrb[2].mxu0 }
 0x15f   :  { %v787_v17 = vmul.f32 -1.442695, %v326_v13  ;;  %v330_v18 = vpop.f32.mrb[3].mxu0 }
 0x160   :  { %v788_v19 = vmul.f32 -1.442695, %v328_v15 }
 0x161   :  { %972 = vpow2.f32 %v787_v17 }
 0x162   :  { %974 = vpow2.f32 %v788_v19 }
 0x16b   :  { %v973_v20 = vpop.eup %972 }
 0x16c   :  { %v975_v21 = vpop.eup %974  ;;  %v338_v22 = vadd.f32 1.0, %v973_v20 }
 0x16d   :  { %v339_v23 = vadd.f32 1.0, %v975_v21 }
 0x16e   :  { %976 = vrcp.f32 %v338_v22 }
 0x16f   :  { %978 = vrcp.f32 %v339_v23 }
 0x178   :  { %v977_v24 = vpop.eup %976 }
 0x179   :  { %v979_v25 = vpop.eup %978  ;;  %v344_v26 = vmul.f32 %v977_v24, %v326_v13 }
 0x17a   :  { %v345_v27 = vmul.f32 %v979_v25, %v328_v15 }
 0x17b   :  { %v346_v30 = vpack.c.bf16 %v344_v26, %v344_v26 }
 0x17c   :  { %v347_v28 = vpack.c.bf16 %v345_v27, %v345_v27 }
 0x17e   :  { %584 = vmatprep.mubr.bf16.mxu1 %v347_v28 }
 0x17f   :  { %585 = vmatmul.mubr.bf16.vlgmr.msra.gmra.mrb[0].mxu1 %v346_v30 }
 0x180   :  { %704 = vmatpush1.bf16.msra.mxu1 %v948_v29  ;;  %735 = vmatprep.mubr.bf16.mxu1 %v1080_v33 }
 0x181   :  { %705 = vmatprep.subr.bf16.mxu1 %v953_v31 }
 0x184   :  { %706 = vmatpush1.bf16.msra.mxu1 %v951_v32 }
 0x185   :  { %707 = vmatprep.subr.bf16.mxu1 %v956_v34 }
 0x188   :  { %708 = vmatpush1.bf16.msra.mxu1 %v954_v35 }
 0x189   :  { %709 = vmatprep.subr.bf16.mxu1 %v959_v36 }
 0x18c   :  { %710 = vmatpush1.bf16.msra.mxu1 %v957_v37 }
 0x18d   :  { %711 = vmatprep.subr.bf16.mxu1 %v962_v38 }
 0x190   :  { %712 = vmatpush1.bf16.msra.mxu1 %v960_v39 }
 0x191   :  { %713 = vmatprep.subr.bf16.mxu1 %v965_v40 }
 0x194   :  { %714 = vmatpush1.bf16.msra.mxu1 %v963_v41 }
 0x195   :  { %715 = vmatprep.subr.bf16.mxu1 %v968_v42 }
 0x198   :  { %716 = vmatpush1.bf16.msra.mxu1 %v966_v43 }
 0x199   :  { %717 = vmatprep.subr.bf16.mxu1 %v971_v44 }
 0x19c   :  { %718 = vmatpush1.bf16.msra.mxu1 %v969_v45 }
 0x19f   :  { %736 = vmatmul.mubr.bf16.vlgmr.msra.gmra.mrb[0].mxu1 %v594_v47 }
 0x272   :  { %v737_v56 = vpop.f32.mrb[0].mxu1 }
 0x273   :  { %v838_v57 = vadd.f32 %v837_v54, %v737_v56  ;;  %v739_v58 = vpop.f32.mrb[1].mxu1 }
 0x274   :  { %v840_v59 = vadd.f32 %v839_v55, %v739_v58  ;;  %v741_v60 = vpop.f32.mrb[2].mxu1 }
 0x275   :  { %746 = vst [vmem:[%s1229_s8] sm:$0xff] %v838_v57  ;;  %v742_v61 = vpop.f32.mrb[3].mxu1 }
 0x276   :  { %747 = vst [vmem:[%s1229_s8 + $0x8] sm:$0xff] %v840_v59 }
 0x277   :  { %752 = vsyncpa [#allocation3], 1 }
 0x278   :  { %753 = vsyncpa [#allocation5], 1 }
 0x279   :  { %754 = vsyncpa [#allocation8], 1 }

// kernel: motion_diffusion_forward.3
= control target key start
LH: loop header
LB: loop body
LE: loop exit
PB: predicated region body
PF: predicated region fallthrough
CT: control target
= control target key end

     0   :  { %s6951_s0 = inlined_call_operand.vmem [shape: f32[2,15,128], index: 0, kind: input, shape index: {}]   ;;  %s6952_s1 = inlined_call_operand.vmem [shape: f32[2,1,256], index: 1, kind: input, shape index: {}]   ;;  %s6953_s2 = inlined_call_operand.vmem [shape: f32[16,256], index: 2, kind: input, shape index: {}]   ;;  %s6954_s3 = inlined_call_operand.hbm [shape: bf16[128,256], index: 3, kind: input, shape index: {}]   ;;  %s6955_s4 = inlined_call_operand.hbm [shape: f32[1,256], index: 4, kind: input, shape index: {}]   ;;  %s6956_s5 = inlined_call_operand.hbm [shape: bf16[2,256,768], index: 5, kind: input, shape index: {}]   ;;  %s6957_s6 = inlined_call_operand.hbm [shape: f32[2,1,768], index: 6, kind: input, shape index: {}]   ;;  %s6958_s7 = inlined_call_operand.hbm [shape: bf16[2,256,256], index: 7, kind: input, shape index: {}]   ;;  %s6959_s8 = inlined_call_operand.vmem [shape: f32[2,1,256], index: 8, kind: input, shape index: {}]   ;;  %s6960_s9 = inlined_call_operand.vmem [shape: bf16[2,256,512], index: 9, kind: input, shape index: {}]   ;;  %s6961_s10 = inlined_call_operand.hbm [shape: f32[2,1,512], index: 10, kind: input, shape index: {}]   ;;  %s6962_s11 = inlined_call_operand.hbm [shape: bf16[2,512,256], index: 11, kind: input, shape index: {}]   ;;  %s6963_s12 = inlined_call_operand.hbm [shape: f32[2,1,256], index: 12, kind: input, shape index: {}]   ;;  %s6964_s13 = inlined_call_operand.hbm [shape: f32[2,1,256], index: 13, kind: input, shape index: {}]   ;;  %s6965_s14 = inlined_call_operand.hbm [shape: f32[2,1,256], index: 14, kind: input, shape index: {}]   ;;  %s6966_s15 = inlined_call_operand.hbm [shape: f32[2,1,256], index: 15, kind: input, shape index: {}]   ;;  %s6967_s16 = inlined_call_operand.hbm [shape: f32[2,1,256], index: 16, kind: input, shape index: {}]   ;;  %s6968_s17 = inlined_call_operand.hbm [shape: bf16[256,128], index: 17, kind: input, shape index: {}]   ;;  %s6969_s18 = inlined_call_operand.hbm [shape: f32[1,128], index: 18, kind: input, shape index: {}]   ;;  %s6970_s19 = inlined_call_operand.vmem [shape: f32[2,15,128], index: 19, kind: output, shape index: {}]  }
   0x1   :  { %7012 = sst [smem:[#allocation38_spill]] %s6951_s0 }
   0x2   :  { %7013 = sst [smem:[#allocation39_spill]] %s6952_s1 }
   0x3   :  { %7014 = sst [smem:[#allocation40_spill]] %s6953_s2 }
   0x4   :  { %7015 = sst [smem:[#allocation41_spill]] %s6954_s3 }
   0x5   :  { %7016 = sst [smem:[#allocation42_spill]] %s6955_s4 }
   0x6   :  { %7017 = sst [smem:[#allocation43_spill]] %s6956_s5 }
   0x7   :  { %7018 = sst [smem:[#allocation44_spill]] %s6957_s6 }
   0x8   :  { %7019 = sst [smem:[#allocation45_spill]] %s6958_s7 }
   0x9   :  { %7020 = sst [smem:[#allocation46_spill]] %s6959_s8 }
   0xa   :  { %7021 = sst [smem:[#allocation47_spill]] %s6960_s9 }
   0xb   :  { %7022 = sst [smem:[#allocation48_spill]] %s6961_s10 }
   0xc   :  { %7023 = sst [smem:[#allocation49_spill]] %s6962_s11 }
   0xd   :  { %7024 = sst [smem:[#allocation50_spill]] %s6963_s12 }
   0xe   :  { %7025 = sst [smem:[#allocation51_spill]] %s6964_s13 }
   0xf   :  { %7026 = sst [smem:[#allocation52_spill]] %s6965_s14 }
  0x10   :  { %7027 = sst [smem:[#allocation53_spill]] %s6966_s15 }
  0x11   :  { %7028 = sst [smem:[#allocation54_spill]] %s6967_s16 }
  0x12   :  { %7029 = sst [smem:[#allocation55_spill]] %s6968_s17 }
  0x13   :  { %7030 = sst [smem:[#allocation56_spill]] %s6969_s18 }
  0x14   :  { %7031 = sst [smem:[#allocation57_spill]] %s6970_s19 }
  0x15   :  { %24 = vsyncpa [#allocation4], 0 }
  0x16   :  { %25 = vsyncpa [#allocation6], 0 }
  0x17   :  { %26 = vsyncpa [#allocation19], 0  ;;  %s5916_s0 = smov 0   ;;  %s5918_s30 = smov 0  }
  0x18   :  { %s5920_s20 = smov 0   ;;  %s5922_s21 = smov 0  }
  0x19   :  { %s5924_s1 = smov 0   ;;  %s5926_s22 = smov 0  }
  0x1a   :  { %s5928_s2 = smov 0   ;;  %s5930_s23 = smov 0  }
  0x1b LB: > { %7032 = sst [smem:[#allocation25_spill]] %s5767_s30  ;;  %s6974_s24 = sadd.s32 4294967295, %s5791_s23   ;;  %s5791_s23 = sphi %s5930_s23, %s32_s23   ;;  %s5787_s2 = sphi %s5928_s2, %s7112_s2   ;;  %s5783_s22 = sphi %s5926_s22, %s7114_s22   ;;  %s5779_s1 = sphi %s5924_s1, %s7110_s1   ;;  %s5775_s21 = sphi %s5922_s21, %s7113_s21   ;;  %s5771_s20 = sphi %s5920_s20, %s7109_s20   ;;  %s5767_s30 = sphi %s5918_s30, %s7108_s30   ;;  %s5763_s0 = sphi %s5916_s0, %s7107_s0  }
  0x1c   : > { %7033 = sst [smem:[#allocation26_spill]] %s5771_s20  ;;  %s41_s25 = sadd.s32 1, %s5783_s22 }
  0x1d   : > { %7034 = sst [smem:[#allocation27_spill]] %s5775_s21  ;;  %p42_p0 = scmp.ge.s32.totalorder %s41_s25, 2 }
  0x1e   : > { %7035 = sst [smem:[#allocation28_spill]] %s5779_s1  ;;  %s44_s3 = sadd.s32 1, %s5787_s2 }
  0x1f   : > { %7036 = sst [smem:[#allocation29_spill]] %s5787_s2  ;;  %s166_s26 = sadd.s32 1, %s5771_s20 }
  0x20   : > { %7037 = sst [smem:[#allocation30_spill]] %s5791_s23  ;;  %p173_p1 = scmp.ne.s32.totalorder %s5771_s20, %s5767_s30 }
  0x21   : > { %s7116_s25 = smov (%p42_p0, %s41_s25), 0  ;;  %s7118_s3 = smov (!%p42_p0, %s44_s3), %s5787_s2 }
  0x22   : > { %7038 = sst [smem:[#allocation31_spill]] %s7116_s25  ;;  %s163_s27 = ssub.s32 %s5783_s22, %s7116_s25 }
  0x23   : > { %p174_p2 = scmp.eq.s32.totalorder %s5791_s23, 0  ;;  %p46_p3 = scmp.ge.s32.totalorder %s7118_s3, 2 }
  0x24   : > { %p164_p4 = scmp.eq.s32.totalorder %s163_s27, 0  ;;  %p179_p6 = scmp.ne.s32.totalorder %s5767_s30, %s5763_s0 }
  0x25   : > { %p5966_p5 = por %p174_p2, %p173_p1  ;;  %s7120_s3 = smov (%p46_p3, %s7118_s3), 0 }
  0x26   : > { %7040 = sst [smem:[#allocation32_spill]] %s7120_s3  ;;  %p5978_p7 = scmp.eq.s32.totalorder %s6974_s24, 0 }
  0x27   : > { %s5974_s29 = scalar_select %p164_p4, %s5771_s20, %s166_s26  }
  0x28   : > { %s7042_s2 = scalar_select %p5978_p7, 1, 0 }
  0x29   : > { %7041 = sst [smem:[#allocation33_spill]] %s5974_s29  ;;  %p4238_p8 = scmp.ge.s32.totalorder %s5791_s23, 1 }
  0x2a   : > { %7043 = sst [smem:[#allocation34_spill]] %s7042_s2  ;;  %p544_p9 = scmp.lt.s32.totalorder %s5791_s23, 5 }
  0x2b   : > { %p5986_p10 = por %p5978_p7, %p179_p6  ;;  %s5793_s26 = smov [#allocation3]  }
  0x2c   : > { %p5990_p11 = pnand %p4238_p8, %p544_p9  ;;  %s559_s3 = sshll.u32 %s5793_s26, 4  ;;  %s5994_s3 = int_to_ptr.vmem [resolvable:$true] %s559_s3 }
  0x2d   : > { %s7044_s27 = scalar_select %p5986_p10, 1, 0 }
  0x2e   : > { %s7046_s0 = scalar_select %p5990_p11, 1, 0 }
  0x2f   : > { %7045 = sst [smem:[#allocation35_spill]] %s7044_s27  ;;  %p4701_p12 = pneg %p5990_p11 }
  0x30   : > { %7047 = sst [smem:[#allocation36_spill]] %s7046_s0  ;;  %p4749_p13 = scmp.lt.s32.totalorder %s5791_s23, 4 }
  0x31   : > { %p6001_p0 = pnand %p4701_p12, %p5978_p7  ;;  %s6013_s19 = sand.u32 1, %s5771_s20  }
  0x32   : > { %p6008_p1 = pnand %p4749_p13, %p5966_p5  ;;  %s7051_s8 = sld [smem:[#allocation41_spill]] }
  0x33   : > { %s7048_s24 = scalar_select %p6001_p0, 1, 0 }
  0x34   : > { %s7050_s29 = scalar_select %p6008_p1, 1, 0 }
  0x35   : > { %7049 = sst [smem:[#allocation37_spill]] %s7048_s24  ;;  %p6023_p3 = pneg %p6001_p0 }
  0x37   : > { %s7052_s30 = scalar_select %p6023_p3, 1, 0 }
  0x38   : > { %s5297_s21 = scalar_lea.hbm %s7051_s8, 2048 }
  0x39   : > { %p5298_p2 = scmp.ne.s32.totalorder %s7051_s8, %s5297_s21  ;;  %p5304_p6 = scmp.lt.u32.totalorder %s5297_s21, %s7051_s8 }
  0x3b   : > { %p5300_p4 = pnand %p6023_p3, %p5298_p2 }
  0x3d   : > { %p5301_p5 = pneg %p5300_p4 }
  0x3f   : > { %p5306_p8 = pnand %p5304_p6, %p5301_p5 }
  0x41   : > { %5309 = shalt.err (!%p5306_p8)
}
  0x42   : > { %s5310_s9 = scalar_lea.vmem %s5994_s3, 2048  ;;  %p5318_p10 = scmp.lt.s32.totalorder %s5994_s3, %s5994_s3 }
  0x43   : > { %p5311_p9 = scmp.ne.s32.totalorder %s5994_s3, %s5310_s9  ;;  %p5319_p7 = scmp.lt.s32.totalorder %s5310_s9, %s5310_s9 }
  0x45   : > { %p5313_p12 = pnand %p5311_p9, %p6023_p3  ;;  %p5320_p2 = por %p5319_p7, %p5318_p10 }
  0x47   : > { %p5314_p13 = pneg %p5313_p12 }
  0x49   : > { %p5321_p4 = pnand %p5320_p2, %p5314_p13 }
  0x4b   : > { %5324 = shalt.err (!%p5321_p4)
}
  0x4c   : > { %s6998_s1 = smov 128   ;;  %s7000_s21 = smov 8  }
  0x4d   : > { %4704 = dma.hbm_to_vmem [thread:$0]  (!%p6001_p0), %s7051_s8, 2048, %s5994_s3, [#allocation4], %s6998_s1, %s6998_s1, %s7000_s21  }
  0x4e   : > { %s4659_s26 = smul.u32 768, %s6013_s19  ;;  %s7053_s5 = sld [smem:[#allocation43_spill]] }
  0x4f   : > { %s4660_s28 = smul.u32 12288, %s5783_s22  ;;  %s7054_s17 = sand.u32 1, %s5791_s23  }
  0x50   : > { %s627_s0 = scalar_lea.vmem [#allocation7], %s4659_s26  ;;  %s4661_s16 = smul.u32 6, %s6013_s19 }
  0x51   : > { %s634_s18 = sshll.u32 %s627_s0, 4  ;;  %s6059_s24 = scalar_lea.sflag [#allocation4], %s7054_s17  ;;  %s6054_s18 = int_to_ptr.vmem [resolvable:$true] %s634_s18 }
  0x52   : > { %p6065_p10 = pneg %p6008_p1 }
  0x54   : > { %s6052_s2 = scalar_lea.hbm %s7053_s5, %s4660_s28  ;;  %s5330_s0 = scalar_lea.hbm %s7053_s5, 24576 }
  0x55   : > { %s5325_s3 = scalar_lea.hbm %s6052_s2, 12288  ;;  %p5331_p8 = scmp.lt.u32.totalorder %s6052_s2, %s7053_s5 }
  0x56   : > { %p5326_p7 = scmp.ne.s32.totalorder %s6052_s2, %s5325_s3  ;;  %p5332_p9 = scmp.lt.u32.totalorder %s5330_s0, %s5325_s3 }
  0x57   : > { %s7055_s25 = scalar_select %p6065_p10, 1, 0 }
  0x58   : > { %p5328_p5 = pnand %p6065_p10, %p5326_p7  ;;  %p5333_p12 = por %p5332_p9, %p5331_p8 }
  0x59   : > { %p5334_p13 = scmp.lt.u32.totalorder %s5325_s3, %s6052_s2 }
  0x5a   : > { %p5329_p6 = pneg %p5328_p5 }
  0x5b   : > { %p5335_p2 = por %p5334_p13, %p5333_p12 }
  0x5d   : > { %p5336_p4 = pnand %p5335_p2, %p5329_p6 }
  0x5f   : > { %5339 = shalt.err (!%p5336_p4)
}
  0x60   : > { %s5340_s17 = scalar_lea.vmem %s6054_s18, 12288  ;;  %s5796_s9 = smov [#allocation7]  }
  0x61   : > { %p5341_p7 = scmp.ne.s32.totalorder %s6054_s18, %s5340_s17  ;;  %s5345_s20 = sshll.u32 %s5796_s9, 4  ;;  %s5346_s20 = int_to_ptr.vmem [resolvable:$false] %s5345_s20 }
  0x62   : > { %s5347_s27 = scalar_lea.vmem %s5346_s20, 24576  ;;  %p5348_p0 = scmp.lt.s32.totalorder %s6054_s18, %s5346_s20 }
  0x63   : > { %p5343_p5 = pnand %p5341_p7, %p6065_p10  ;;  %p5349_p3 = scmp.lt.s32.totalorder %s5347_s27, %s5340_s17 }
  0x65   : > { %p5344_p11 = pneg %p5343_p5  ;;  %p5350_p8 = por %p5349_p3, %p5348_p0 }
  0x67   : > { %p5351_p9 = pnand %p5350_p8, %p5344_p11 }
  0x69   : > { %5354 = shalt.err (!%p5351_p9)
}
  0x6a   : > { %s5797_s3 = smov 384   ;;  %s5798_s0 = smov 24  }
  0x6b   : > { %4717 = dma.hbm_to_vmem [thread:$0]  (!%p6008_p1), %s6052_s2, 12288, %s6054_s18, %s6059_s24, %s5797_s3, %s5797_s3, %s5798_s0  }
  0x6c   : > { %s4662_s26 = smul.u32 96, %s5783_s22  ;;  %s648_s28 = scalar_lea.vmem [#allocation8], %s4661_s16 }
  0x6d   : > { %s656_s9 = sshll.u32 %s648_s28, 4  ;;  %s4246_s17 = sshll.u32 %s6013_s19, 8  ;;  %s657_s9 = int_to_ptr.vmem [resolvable:$true] %s656_s9 }
  0x6e   : > { %s7056_s6 = sld [smem:[#allocation44_spill]] }
  0x74   : > { %s654_s1 = scalar_lea.hbm %s7056_s6, %s4662_s26  ;;  %s5360_s23 = scalar_lea.hbm %s7056_s6, 192 }
  0x75   : > { %s5355_s21 = scalar_lea.hbm %s654_s1, 96  ;;  %p5361_p6 = scmp.lt.u32.totalorder %s654_s1, %s7056_s6 }
  0x76   : > { %p5356_p11 = scmp.ne.s32.totalorder %s654_s1, %s5355_s21  ;;  %p5362_p12 = scmp.lt.u32.totalorder %s5360_s23, %s5355_s21 }
  0x77   : > { %p5364_p2 = scmp.lt.u32.totalorder %s5355_s21, %s654_s1 }
  0x78   : > { %p5358_p0 = pnand %p5356_p11, %p6065_p10  ;;  %p5363_p13 = por %p5362_p12, %p5361_p6 }
  0x7a   : > { %p5359_p3 = pneg %p5358_p0  ;;  %p5365_p4 = por %p5364_p2, %p5363_p13 }
  0x7c   : > { %p5366_p7 = pnand %p5365_p4, %p5359_p3 }
  0x7e   : > { %5369 = shalt.err (!%p5366_p7)
}
  0x7f   : > { %s5370_s16 = scalar_lea.vmem %s657_s9, 96  ;;  %s5799_s3 = smov [#allocation8]  }
  0x80   : > { %p5371_p5 = scmp.ne.s32.totalorder %s657_s9, %s5370_s16  ;;  %s5375_s0 = sshll.u32 %s5799_s3, 4  ;;  %s5376_s0 = int_to_ptr.vmem [resolvable:$false] %s5375_s0 }
  0x81   : > { %s5377_s5 = scalar_lea.vmem %s5376_s0, 192  ;;  %p5378_p11 = scmp.lt.s32.totalorder %s657_s9, %s5376_s0 }
  0x82   : > { %p5373_p8 = pnand %p5371_p5, %p6065_p10  ;;  %p5379_p0 = scmp.lt.s32.totalorder %s5377_s5, %s5370_s16 }
  0x84   : > { %p5374_p9 = pneg %p5373_p8  ;;  %p5380_p1 = por %p5379_p0, %p5378_p11 }
  0x86   : > { %p5381_p6 = pnand %p5380_p1, %p5374_p9 }
  0x88   : > { %5384 = shalt.err (!%p5381_p6)
}
  0x89   : > { %p7057_p12 = scmp.ne.s32.totalorder %s7050_s29, 0  ;;  %s4586_s8 = sshll.u32 %s5783_s22, 12 }
  0x8a   : > { %s7058_s7 = sld [smem:[#allocation45_spill]]  ;;  %s667_s28 = scalar_lea.vmem [#allocation9], %s4246_s17 }
  0x8b   : > { %4720 = dma.hbm_to_vmem [thread:$0]  (!%p7057_p12), %s654_s1, 96, %s657_s9, %s6059_s24  }
  0x8c   : > { %s674_s20 = sshll.u32 %s667_s28, 4  ;;  %s4249_s27 = sshll.u32 %s6013_s19, 2  ;;  %s6117_s20 = int_to_ptr.vmem [resolvable:$true] %s674_s20 }
  0x90   : > { %s6113_s26 = scalar_lea.hbm %s7058_s7, %s4586_s8  ;;  %s5390_s2 = scalar_lea.hbm %s7058_s7, 8192 }
  0x91   : > { %s5385_s18 = scalar_lea.hbm %s6113_s26, 4096  ;;  %p5391_p2 = scmp.lt.u32.totalorder %s6113_s26, %s7058_s7 }
  0x92   : > { %p5386_p1 = scmp.ne.s32.totalorder %s6113_s26, %s5385_s18  ;;  %p5392_p4 = scmp.lt.u32.totalorder %s5390_s2, %s5385_s18 }
  0x93   : > { %p5394_p5 = scmp.lt.u32.totalorder %s5385_s18, %s6113_s26 }
  0x94   : > { %p5388_p3 = pnand %p5386_p1, %p6065_p10  ;;  %p5393_p7 = por %p5392_p4, %p5391_p2 }
  0x96   : > { %p5389_p13 = pneg %p5388_p3  ;;  %p5395_p8 = por %p5394_p5, %p5393_p7 }
  0x98   : > { %p5396_p9 = pnand %p5395_p8, %p5389_p13 }
  0x9a   : > { %5399 = shalt.err (!%p5396_p9)
}
  0x9b   : > { %s5400_s17 = scalar_lea.vmem %s6117_s20, 4096  ;;  %s5800_s0 = smov [#allocation9]  }
  0x9c   : > { %p5401_p11 = scmp.ne.s32.totalorder %s6117_s20, %s5400_s17  ;;  %s5405_s5 = sshll.u32 %s5800_s0, 4  ;;  %s5406_s5 = int_to_ptr.vmem [resolvable:$false] %s5405_s5 }
  0x9d   : > { %s5407_s8 = scalar_lea.vmem %s5406_s5, 8192  ;;  %p5408_p1 = scmp.lt.s32.totalorder %s6117_s20, %s5406_s5 }
  0x9e   : > { %p5403_p0 = pnand %p5401_p11, %p6065_p10  ;;  %p5409_p3 = scmp.lt.s32.totalorder %s5407_s8, %s5400_s17 }
  0xa0   : > { %p5404_p6 = pneg %p5403_p0  ;;  %p5410_p2 = por %p5409_p3, %p5408_p1 }
  0xa2   : > { %p5411_p4 = pnand %p5410_p2, %p5404_p6 }
  0xa4   : > { %5414 = shalt.err (!%p5411_p4)
}
  0xa5   : > { %s7059_s23 = smov 8   ;;  %s7060_s21 = smov 128  }
  0xa6   : > { %4723 = dma.hbm_to_vmem [thread:$0]  (!%p7057_p12), %s6113_s26, 4096, %s6117_s20, %s6059_s24, %s7060_s21, %s7060_s21, %s7059_s23  }
  0xa7   : > { %s4587_s28 = sshll.u32 %s5783_s22, 6  ;;  %s7061_s10 = sld [smem:[#allocation48_spill]] }
  0xa8   : > { %s703_s2 = scalar_lea.vmem [#allocation10], %s4249_s27  ;;  %s4252_s3 = sshll.u32 %s6013_s19, 9 }
  0xa9   : > { %s711_s16 = sshll.u32 %s703_s2, 4  ;;  %s712_s16 = int_to_ptr.vmem [resolvable:$true] %s711_s16 }
  0xad   : > { %s6149_s9 = scalar_lea.hbm %s7061_s10, %s4587_s28  ;;  %s5420_s0 = scalar_lea.hbm %s7061_s10, 128 }
  0xae   : > { %s5415_s17 = scalar_lea.hbm %s6149_s9, 64  ;;  %p5421_p8 = scmp.lt.u32.totalorder %s6149_s9, %s7061_s10 }
  0xaf   : > { %p5416_p13 = scmp.ne.s32.totalorder %s6149_s9, %s5415_s17  ;;  %p5422_p9 = scmp.lt.u32.totalorder %s5420_s0, %s5415_s17 }
  0xb0   : > { %p5424_p0 = scmp.lt.u32.totalorder %s5415_s17, %s6149_s9 }
  0xb1   : > { %p5418_p7 = pnand %p5416_p13, %p6065_p10  ;;  %p5423_p11 = por %p5422_p9, %p5421_p8 }
  0xb3   : > { %p5419_p5 = pneg %p5418_p7  ;;  %p5425_p6 = por %p5424_p0, %p5423_p11 }
  0xb5   : > { %p5426_p1 = pnand %p5425_p6, %p5419_p5 }
  0xb7   : > { %5429 = shalt.err (!%p5426_p1)
}
  0xb8   : > { %s5430_s27 = scalar_lea.vmem %s712_s16, 64  ;;  %s5801_s28 = smov [#allocation10]  }
  0xb9   : > { %p5431_p3 = scmp.ne.s32.totalorder %s712_s16, %s5430_s27  ;;  %s5435_s18 = sshll.u32 %s5801_s28, 4  ;;  %s5436_s18 = int_to_ptr.vmem [resolvable:$false] %s5435_s18 }
  0xba   : > { %s5437_s1 = scalar_lea.vmem %s5436_s18, 128  ;;  %p5438_p13 = scmp.lt.s32.totalorder %s712_s16, %s5436_s18 }
  0xbb   : > { %p5433_p2 = pnand %p5431_p3, %p6065_p10  ;;  %p5439_p7 = scmp.lt.s32.totalorder %s5437_s1, %s5430_s27 }
  0xbd   : > { %p5434_p4 = pneg %p5433_p2  ;;  %p5440_p12 = por %p5439_p7, %p5438_p13 }
  0xbf   : > { %p5441_p8 = pnand %p5440_p12, %p5434_p4 }
  0xc1   : > { %5444 = shalt.err (!%p5441_p8)
}
  0xc2   : > { %p7062_p9 = scmp.ne.s32.totalorder %s7050_s29, 0  ;;  %s4588_s2 = sshll.u32 %s5783_s22, 13 }
  0xc3   : > { %s7063_s11 = sld [smem:[#allocation49_spill]]  ;;  %s722_s0 = scalar_lea.vmem [#allocation11], %s4252_s3 }
  0xc4   : > { %4726 = dma.hbm_to_vmem [thread:$0]  (!%p7062_p9), %s6149_s9, 64, %s712_s16, %s6059_s24  }
  0xc5   : > { %s729_s5 = sshll.u32 %s722_s0, 4  ;;  %s6183_s8 = sshll.u32 %s6013_s19, 1  ;;  %s6180_s5 = int_to_ptr.vmem [resolvable:$true] %s729_s5 }
  0xc9   : > { %s6176_s20 = scalar_lea.hbm %s7063_s11, %s4588_s2  ;;  %s5450_s28 = scalar_lea.hbm %s7063_s11, 16384 }
  0xca   : > { %s5445_s27 = scalar_lea.hbm %s6176_s20, 8192  ;;  %p5451_p0 = scmp.lt.u32.totalorder %s6176_s20, %s7063_s11 }
  0xcb   : > { %p5446_p12 = scmp.ne.s32.totalorder %s6176_s20, %s5445_s27  ;;  %p5452_p6 = scmp.lt.u32.totalorder %s5450_s28, %s5445_s27 }
  0xcc   : > { %p5454_p3 = scmp.lt.u32.totalorder %s5445_s27, %s6176_s20 }
  0xcd   : > { %p5448_p5 = pnand %p5446_p12, %p6065_p10  ;;  %p5453_p1 = por %p5452_p6, %p5451_p0 }
  0xcf   : > { %p5449_p11 = pneg %p5448_p5  ;;  %p5455_p2 = por %p5454_p3, %p5453_p1 }
  0xd1   : > { %p5456_p4 = pnand %p5455_p2, %p5449_p11 }
  0xd3   : > { %5459 = shalt.err (!%p5456_p4)
}
  0xd4   : > { %s5460_s19 = scalar_lea.vmem %s6180_s5, 8192  ;;  %s5802_s3 = smov [#allocation11]  }
  0xd5   : > { %p5461_p13 = scmp.ne.s32.totalorder %s6180_s5, %s5460_s19  ;;  %s5465_s2 = sshll.u32 %s5802_s3, 4  ;;  %s5466_s2 = int_to_ptr.vmem [resolvable:$false] %s5465_s2 }
  0xd6   : > { %s5467_s17 = scalar_lea.vmem %s5466_s2, 16384  ;;  %p5468_p12 = scmp.lt.s32.totalorder %s6180_s5, %s5466_s2 }
  0xd7   : > { %p5463_p7 = pnand %p5461_p13, %p6065_p10  ;;  %p5469_p5 = scmp.lt.s32.totalorder %s5467_s17, %s5460_s19 }
  0xd9   : > { %p5464_p8 = pneg %p5463_p7  ;;  %p5470_p0 = por %p5469_p5, %p5468_p12 }
  0xdb   : > { %p5471_p6 = pnand %p5470_p0, %p5464_p8 }
  0xdd   : > { %5474 = shalt.err (!%p5471_p6)
}
  0xde   : > { %4729 = dma.hbm_to_vmem [thread:$0]  (!%p7062_p9), %s6176_s20, 8192, %s6180_s5, %s6059_s24, %s7060_s21, %s7060_s21, %s7059_s23  }
  0xdf   : > { %s6211_s26 = sshll.u32 %s5783_s22, 5  ;;  %s7064_s12 = sld [smem:[#allocation50_spill]] }
  0xe0   : > { %s743_s16 = scalar_lea.vmem [#allocation12], %s6183_s8 }
  0xe1   : > { %s751_s28 = sshll.u32 %s743_s16, 4  ;;  %s752_s28 = int_to_ptr.vmem [resolvable:$true] %s751_s28 }
  0xe5   : > { %s6217_s9 = scalar_lea.hbm %s7064_s12, %s6211_s26  ;;  %s5480_s20 = scalar_lea.hbm %s7064_s12, 64 }
  0xe6   : > { %s5475_s18 = scalar_lea.hbm %s6217_s9, 32  ;;  %p5481_p2 = scmp.lt.u32.totalorder %s6217_s9, %s7064_s12 }
  0xe7   : > { %p5476_p11 = scmp.ne.s32.totalorder %s6217_s9, %s5475_s18  ;;  %p5482_p4 = scmp.lt.u32.totalorder %s5480_s20, %s5475_s18 }
  0xe8   : > { %p5484_p7 = scmp.lt.u32.totalorder %s5475_s18, %s6217_s9 }
  0xe9   : > { %p5478_p1 = pnand %p5476_p11, %p6065_p10  ;;  %p5483_p13 = por %p5482_p4, %p5481_p2 }
  0xeb   : > { %p5479_p3 = pneg %p5478_p1  ;;  %p5485_p8 = por %p5484_p7, %p5483_p13 }
  0xed   : > { %p5486_p12 = pnand %p5485_p8, %p5479_p3 }
  0xef   : > { %5489 = shalt.err (!%p5486_p12)
}
  0xf0   : > { %s5490_s19 = scalar_lea.vmem %s752_s28, 32  ;;  %s5803_s3 = smov [#allocation12]  }
  0xf1   : > { %p5491_p5 = scmp.ne.s32.totalorder %s752_s28, %s5490_s19  ;;  %s5495_s2 = sshll.u32 %s5803_s3, 4  ;;  %s5496_s2 = int_to_ptr.vmem [resolvable:$false] %s5495_s2 }
  0xf2   : > { %s5497_s17 = scalar_lea.vmem %s5496_s2, 64  ;;  %p5498_p11 = scmp.lt.s32.totalorder %s752_s28, %s5496_s2 }
  0xf3   : > { %p5493_p0 = pnand %p5491_p5, %p6065_p10  ;;  %p5499_p1 = scmp.lt.s32.totalorder %s5497_s17, %s5490_s19 }
  0xf5   : > { %p5494_p6 = pneg %p5493_p0  ;;  %p5500_p9 = por %p5499_p1, %p5498_p11 }
  0xf7   : > { %p5501_p2 = pnand %p5500_p9, %p5494_p6 }
  0xf9   : > { %5504 = shalt.err (!%p5501_p2)
}
  0xfa   : > { %p7065_p4 = scmp.ne.s32.totalorder %s7050_s29, 0  ;;  %s7066_s13 = sld [smem:[#allocation51_spill]] }
  0xfb   : > { %s762_s18 = scalar_lea.vmem [#allocation13], %s6183_s8 }
  0xfc   : > { %4732 = dma.hbm_to_vmem [thread:$0]  (!%p7065_p4), %s6217_s9, 32, %s752_s28, %s6059_s24  }
  0xfd   : > { %s770_s23 = sshll.u32 %s762_s18, 4  ;;  %s771_s23 = int_to_ptr.vmem [resolvable:$true] %s770_s23 }
 0x100   : > { %s6242_s16 = scalar_lea.hbm %s7066_s13, %s6211_s26  ;;  %s5510_s9 = scalar_lea.hbm %s7066_s13, 64 }
 0x101   : > { %s5505_s21 = scalar_lea.hbm %s6242_s16, 32  ;;  %p5511_p7 = scmp.lt.u32.totalorder %s6242_s16, %s7066_s13 }
 0x102   : > { %p5506_p9 = scmp.ne.s32.totalorder %s6242_s16, %s5505_s21  ;;  %p5512_p8 = scmp.lt.u32.totalorder %s5510_s9, %s5505_s21 }
 0x103   : > { %p5514_p5 = scmp.lt.u32.totalorder %s5505_s21, %s6242_s16 }
 0x104   : > { %p5508_p3 = pnand %p5506_p9, %p6065_p10  ;;  %p5513_p12 = por %p5512_p8, %p5511_p7 }
 0x106   : > { %p5509_p13 = pneg %p5508_p3  ;;  %p5515_p0 = por %p5514_p5, %p5513_p12 }
 0x108   : > { %p5516_p6 = pnand %p5515_p0, %p5509_p13 }
 0x10a   : > { %5519 = shalt.err (!%p5516_p6)
}
 0x10b   : > { %s5520_s19 = scalar_lea.vmem %s771_s23, 32  ;;  %s5804_s3 = smov [#allocation13]  }
 0x10c   : > { %p5521_p11 = scmp.ne.s32.totalorder %s771_s23, %s5520_s19  ;;  %s5525_s2 = sshll.u32 %s5804_s3, 4  ;;  %s5526_s2 = int_to_ptr.vmem [resolvable:$false] %s5525_s2 }
 0x10d   : > { %s5527_s17 = scalar_lea.vmem %s5526_s2, 64  ;;  %p5528_p9 = scmp.lt.s32.totalorder %s771_s23, %s5526_s2 }
 0x10e   : > { %p5523_p1 = pnand %p5521_p11, %p6065_p10  ;;  %p5529_p3 = scmp.lt.s32.totalorder %s5527_s17, %s5520_s19 }
 0x110   : > { %p5524_p2 = pneg %p5523_p1  ;;  %p5530_p4 = por %p5529_p3, %p5528_p9 }
 0x112   : > { %p5531_p7 = pnand %p5530_p4, %p5524_p2 }
 0x114   : > { %5534 = shalt.err (!%p5531_p7)
}
 0x115   : > { %p7067_p8 = scmp.ne.s32.totalorder %s7050_s29, 0  ;;  %s7068_s14 = sld [smem:[#allocation52_spill]] }
 0x116   : > { %s781_s21 = scalar_lea.vmem [#allocation14], %s6183_s8 }
 0x117   : > { %4735 = dma.hbm_to_vmem [thread:$0]  (!%p7067_p8), %s6242_s16, 32, %s771_s23, %s6059_s24  }
 0x118   : > { %s789_s20 = sshll.u32 %s781_s21, 4  ;;  %s790_s20 = int_to_ptr.vmem [resolvable:$true] %s789_s20 }
 0x11b   : > { %s6267_s18 = scalar_lea.hbm %s7068_s14, %s6211_s26  ;;  %s5540_s16 = scalar_lea.hbm %s7068_s14, 64 }
 0x11c   : > { %s5535_s5 = scalar_lea.hbm %s6267_s18, 32  ;;  %p5541_p5 = scmp.lt.u32.totalorder %s6267_s18, %s7068_s14 }
 0x11d   : > { %p5536_p4 = scmp.ne.s32.totalorder %s6267_s18, %s5535_s5  ;;  %p5542_p0 = scmp.lt.u32.totalorder %s5540_s16, %s5535_s5 }
 0x11e   : > { %p5544_p11 = scmp.lt.u32.totalorder %s5535_s5, %s6267_s18 }
 0x11f   : > { %p5538_p13 = pnand %p5536_p4, %p6065_p10  ;;  %p5543_p6 = por %p5542_p0, %p5541_p5 }
 0x121   : > { %p5539_p12 = pneg %p5538_p13  ;;  %p5545_p1 = por %p5544_p11, %p5543_p6 }
 0x123   : > { %p5546_p2 = pnand %p5545_p1, %p5539_p12 }
 0x125   : > { %5549 = shalt.err (!%p5546_p2)
}
 0x126   : > { %s5550_s19 = scalar_lea.vmem %s790_s20, 32  ;;  %s5805_s3 = smov [#allocation14]  }
 0x127   : > { %p5551_p9 = scmp.ne.s32.totalorder %s790_s20, %s5550_s19  ;;  %s5555_s2 = sshll.u32 %s5805_s3, 4  ;;  %s5556_s2 = int_to_ptr.vmem [resolvable:$false] %s5555_s2 }
 0x128   : > { %s5557_s17 = scalar_lea.vmem %s5556_s2, 64  ;;  %p5558_p4 = scmp.lt.s32.totalorder %s790_s20, %s5556_s2 }
 0x129   : > { %p5553_p3 = pnand %p5551_p9, %p6065_p10  ;;  %p5559_p13 = scmp.lt.s32.totalorder %s5557_s17, %s5550_s19 }
 0x12b   : > { %p5554_p7 = pneg %p5553_p3  ;;  %p5560_p8 = por %p5559_p13, %p5558_p4 }
 0x12d   : > { %p5561_p0 = pnand %p5560_p8, %p5554_p7 }
 0x12f   : > { %5564 = shalt.err (!%p5561_p0)
}
 0x130   : > { %p7069_p5 = scmp.ne.s32.totalorder %s7050_s29, 0  ;;  %s5806_s0 = smov [#allocation5]  }
 0x131   : > { %s573_s27 = sshll.u32 %s5806_s0, 4  ;;  %s7070_s15 = sld [smem:[#allocation53_spill]]  ;;  %s574_s27 = int_to_ptr.vmem [resolvable:$true] %s573_s27 }
 0x132   : > { %4738 = dma.hbm_to_vmem [thread:$0]  (!%p7069_p5), %s6267_s18, 32, %s790_s20, %s6059_s24  }
 0x133   : > { %s7071_s4 = sld [smem:[#allocation42_spill]]  ;;  %p7072_p12 = scmp.ne.s32.totalorder %s7052_s30, 0 }
 0x137   : > { %s6292_s9 = scalar_lea.hbm %s7070_s15, %s6211_s26 }
 0x139   : > { %s5565_s23 = scalar_lea.hbm %s7071_s4, 32 }
 0x13a   : > { %p5566_p8 = scmp.ne.s32.totalorder %s7071_s4, %s5565_s23  ;;  %p5572_p1 = scmp.lt.u32.totalorder %s5565_s23, %s7071_s4 }
 0x13c   : > { %p5568_p6 = pnand %p5566_p8, %p7072_p12 }
 0x13e   : > { %p5569_p11 = pneg %p5568_p6 }
 0x140   : > { %p5574_p2 = pnand %p5572_p1, %p5569_p11 }
 0x142   : > { %5577 = shalt.err (!%p5574_p2)
}
 0x143   : > { %s5578_s3 = scalar_lea.vmem %s574_s27, 32  ;;  %p5586_p4 = scmp.lt.s32.totalorder %s574_s27, %s574_s27 }
 0x144   : > { %p5579_p9 = scmp.ne.s32.totalorder %s574_s27, %s5578_s3  ;;  %p5587_p13 = scmp.lt.s32.totalorder %s5578_s3, %s5578_s3 }
 0x146   : > { %p5581_p3 = pnand %p5579_p9, %p7072_p12  ;;  %p5588_p0 = por %p5587_p13, %p5586_p4 }
 0x148   : > { %p5582_p7 = pneg %p5581_p3 }
 0x14a   : > { %p5589_p5 = pnand %p5588_p0, %p5582_p7 }
 0x14c   : > { %5592 = shalt.err (!%p5589_p5)
}
 0x14d   : > { %s7073_s2 = sld [smem:[#allocation37_spill]]  ;;  %s800_s21 = scalar_lea.vmem [#allocation15], %s6183_s8 }
 0x14e   : > { %s808_s5 = sshll.u32 %s800_s21, 4  ;;  %s5807_s28 = smov [#allocation17]   ;;  %s6313_s5 = int_to_ptr.vmem [resolvable:$true] %s808_s5 }
 0x14f   : > { %s583_s16 = sshll.u32 %s5807_s28, 4  ;;  %s5593_s23 = scalar_lea.hbm %s6292_s9, 32  ;;  %s584_s16 = int_to_ptr.vmem [resolvable:$true] %s583_s16 }
 0x150   : > { %p5594_p5 = scmp.ne.s32.totalorder %s6292_s9, %s5593_s23  ;;  %s5598_s18 = scalar_lea.hbm %s7070_s15, 64 }
 0x151   : > { %p5599_p1 = scmp.lt.u32.totalorder %s6292_s9, %s7070_s15  ;;  %p5600_p2 = scmp.lt.u32.totalorder %s5598_s18, %s5593_s23 }
 0x152   : > { %p5596_p6 = pnand %p5594_p5, %p6065_p10  ;;  %p5602_p3 = scmp.lt.u32.totalorder %s5593_s23, %s6292_s9 }
 0x153   : > { %p7074_p8 = scmp.ne.s32.totalorder %s7073_s2, 0  ;;  %p5601_p9 = por %p5600_p2, %p5599_p1 }
 0x154   : > { %p5597_p11 = pneg %p5596_p6 }
 0x155   : > { %4707 = dma.hbm_to_vmem [thread:$0]  (!%p7074_p8), %s7071_s4, 32, %s574_s27, [#allocation6]  }
 0x156   : > { %p5603_p7 = por %p5602_p3, %p5601_p9 }
 0x158   : > { %p5604_p4 = pnand %p5603_p7, %p5597_p11 }
 0x15a   : > { %5607 = shalt.err (!%p5604_p4)
}
 0x15b   : > { %s5608_s27 = scalar_lea.vmem %s6313_s5, 32  ;;  %s5808_s17 = smov [#allocation15]  }
 0x15c   : > { %p5609_p13 = scmp.ne.s32.totalorder %s6313_s5, %s5608_s27  ;;  %s5613_s0 = sshll.u32 %s5808_s17, 4  ;;  %s5614_s0 = int_to_ptr.vmem [resolvable:$false] %s5613_s0 }
 0x15d   : > { %s5615_s21 = scalar_lea.vmem %s5614_s0, 64  ;;  %p5616_p6 = scmp.lt.s32.totalorder %s6313_s5, %s5614_s0 }
 0x15e   : > { %p5611_p0 = pnand %p5609_p13, %p6065_p10  ;;  %p5617_p8 = scmp.lt.s32.totalorder %s5615_s21, %s5608_s27 }
 0x160   : > { %p5612_p5 = pneg %p5611_p0  ;;  %p5618_p1 = por %p5617_p8, %p5616_p6 }
 0x162   : > { %p5619_p2 = pnand %p5618_p1, %p5612_p5 }
 0x164   : > { %5622 = shalt.err (!%p5619_p2)
}
 0x165   : > { %p7075_p11 = scmp.ne.s32.totalorder %s7050_s29, 0  ;;  %s7076_s1 = sld [smem:[#allocation55_spill]] }
 0x167   : > { %4741 = dma.hbm_to_vmem [thread:$0]  (!%p7075_p11), %s6292_s9, 32, %s6313_s5, %s6059_s24  }
 0x16b   : > { %s7077_s19 = smov %s7076_s1  ;;  %s5623_s18 = scalar_lea.hbm %s7076_s1, 2048 }
 0x16c   : > { %p5624_p9 = scmp.ne.s32.totalorder %s7077_s19, %s5623_s18  ;;  %p5630_p7 = scmp.lt.u32.totalorder %s5623_s18, %s7077_s19 }
 0x16e   : > { %p5626_p8 = pnand %p5624_p9, %p7072_p12 }
 0x170   : > { %p5627_p3 = pneg %p5626_p8 }
 0x172   : > { %p5632_p4 = pnand %p5630_p7, %p5627_p3 }
 0x174   : > { %5635 = shalt.err (!%p5632_p4)
}
 0x175   : > { %s5636_s0 = scalar_lea.vmem %s584_s16, 2048  ;;  %p5644_p6 = scmp.lt.s32.totalorder %s584_s16, %s584_s16 }
 0x176   : > { %p5637_p13 = scmp.ne.s32.totalorder %s584_s16, %s5636_s0  ;;  %p5645_p1 = scmp.lt.s32.totalorder %s5636_s0, %s5636_s0 }
 0x178   : > { %p5639_p0 = pnand %p5637_p13, %p7072_p12  ;;  %p5646_p2 = por %p5645_p1, %p5644_p6 }
 0x17a   : > { %p5640_p5 = pneg %p5639_p0 }
 0x17c   : > { %p5647_p11 = pnand %p5646_p2, %p5640_p5 }
 0x17e   : > { %5650 = shalt.err (!%p5647_p11)
}
 0x17f   : > { %s5809_s9 = smov 64   ;;  %s5810_s5 = smov 4  }
 0x180   : > { %p7078_p9 = scmp.ne.s32.totalorder %s7073_s2, 0  ;;  %s5811_s23 = smov [#allocation18]  }
 0x181   : > { %s597_s1 = sshll.u32 %s5811_s23, 4  ;;  %s7079_s3 = sld [smem:[#allocation54_spill]]  ;;  %s598_s1 = int_to_ptr.vmem [resolvable:$true] %s597_s1 }
 0x182   : > { %4710 = dma.hbm_to_vmem [thread:$0]  (!%p7078_p9), %s7077_s19, 2048, %s584_s16, [#allocation6], %s5809_s9, %s5809_s9, %s5810_s5  }
 0x183   : > { %s7080_s4 = sld [smem:[#allocation56_spill]] }
 0x187   : > { %s6359_s27 = scalar_lea.hbm %s7079_s3, %s6211_s26 }
 0x189   : > { %s5651_s6 = scalar_lea.hbm %s7080_s4, 16 }
 0x18a   : > { %p5652_p11 = scmp.ne.s32.totalorder %s7080_s4, %s5651_s6  ;;  %p5658_p7 = scmp.lt.u32.totalorder %s5651_s6, %s7080_s4 }
 0x18c   : > { %p5654_p8 = pnand %p5652_p11, %p7072_p12 }
 0x18e   : > { %p5655_p3 = pneg %p5654_p8 }
 0x190   : > { %p5660_p4 = pnand %p5658_p7, %p5655_p3 }
 0x192   : > { %5663 = shalt.err (!%p5660_p4)
}
 0x193   : > { %s5664_s5 = scalar_lea.vmem %s598_s1, 16  ;;  %s5671_s26 = scalar_lea.vmem %s598_s1, 32 }
 0x194   : > { %p5665_p13 = scmp.ne.s32.totalorder %s598_s1, %s5664_s5  ;;  %p5672_p6 = scmp.lt.s32.totalorder %s598_s1, %s598_s1 }
 0x195   : > { %p5673_p1 = scmp.lt.s32.totalorder %s5671_s26, %s5664_s5 }
 0x196   : > { %p5667_p0 = pnand %p5665_p13, %p7072_p12 }
 0x197   : > { %p5674_p2 = por %p5673_p1, %p5672_p6 }
 0x198   : > { %p5668_p5 = pneg %p5667_p0 }
 0x19a   : > { %p5675_p10 = pnand %p5674_p2, %p5668_p5 }
 0x19c   : > { %5678 = shalt.err (!%p5675_p10)
}
 0x19d   : > { %4713 = dma.hbm_to_vmem [thread:$0]  (!%p7078_p9), %s7080_s4, 16, %s598_s1, [#allocation19]  }
 0x19e   : > { %s819_s6 = scalar_lea.vmem [#allocation16], %s6183_s8  ;;  %s5679_s21 = scalar_lea.hbm %s6359_s27, 32 }
 0x19f   : > { %s827_s30 = sshll.u32 %s819_s6, 4  ;;  %p5680_p12 = scmp.ne.s32.totalorder %s6359_s27, %s5679_s21  ;;  %s828_s30 = int_to_ptr.vmem [resolvable:$true] %s827_s30 }
 0x1a0   : > { %p7081_p11 = scmp.ne.s32.totalorder %s7055_s25, 0  ;;  %s5684_s23 = scalar_lea.hbm %s7079_s3, 64 }
 0x1a1   : > { %p5685_p3 = scmp.lt.u32.totalorder %s6359_s27, %s7079_s3  ;;  %p5686_p7 = scmp.lt.u32.totalorder %s5684_s23, %s5679_s21 }
 0x1a2   : > { %p5682_p8 = pnand %p5680_p12, %p7081_p11  ;;  %p5688_p13 = scmp.lt.u32.totalorder %s5679_s21, %s6359_s27 }
 0x1a3   : > { %p5687_p4 = por %p5686_p7, %p5685_p3 }
 0x1a4   : > { %p5683_p10 = pneg %p5682_p8 }
 0x1a5   : > { %p5689_p9 = por %p5688_p13, %p5687_p4 }
 0x1a7   : > { %p5690_p0 = pnand %p5689_p9, %p5683_p10 }
 0x1a9   : > { %5693 = shalt.err (!%p5690_p0)
}
 0x1aa   : > { %s5694_s8 = scalar_lea.vmem %s828_s30, 32  ;;  %s5812_s1 = smov [#allocation16]  }
 0x1ab   : > { %p5695_p5 = scmp.ne.s32.totalorder %s828_s30, %s5694_s8  ;;  %s5699_s17 = sshll.u32 %s5812_s1, 4  ;;  %s5700_s17 = int_to_ptr.vmem [resolvable:$false] %s5699_s17 }
 0x1ac   : > { %s5701_s0 = scalar_lea.vmem %s5700_s17, 64  ;;  %p5702_p2 = scmp.lt.s32.totalorder %s828_s30, %s5700_s17 }
 0x1ad   : > { %p5697_p6 = pnand %p5695_p5, %p7081_p11  ;;  %p5703_p12 = scmp.lt.s32.totalorder %s5701_s0, %s5694_s8 }
 0x1af   : > { %p5698_p1 = pneg %p5697_p6  ;;  %p5704_p8 = por %p5703_p12, %p5702_p2 }
 0x1b1   : > { %p5705_p3 = pnand %p5704_p8, %p5698_p1 }
 0x1b3   : > { %5708 = shalt.err (!%p5705_p3)
}
 0x1b4   : > { %p7082_p7 = scmp.ne.s32.totalorder %s7050_s29, 0  ;;  %s7083_s16 = sld [smem:[#allocation36_spill]] }
 0x1b6   : > { %4744 = dma.hbm_to_vmem [thread:$0]  (!%p7082_p7), %s6359_s27, 32, %s828_s30, %s6059_s24  }
 0x1ba   : > { %p7084_p10 = scmp.ne.s32.totalorder %s7083_s16, 0 }
 0x1bb   : > { %s7085_s25 = sld [smem:[#allocation34_spill]] (!%p7084_p10) }
 0x1bc   : > { %836 = sbr.rel (%p7084_p10) target bundleno = 3301 (0xce5), region = 96 }
 0x1c1   : > { %p7086_p11 = scmp.ne.s32.totalorder (!%p7084_p10), %s7085_s25, 0 }
 0x1c3   : > { %5742 = dma.done.wait (%p7086_p11), [#allocation4], 2048  }
 0x1c4   : > { %5744 = vsyncadd (%p7086_p11), [#allocation4], 4294965248 }
 0x1c5   : > { %5746 = dma.done.wait (%p7086_p11), [#allocation6], 32  }
 0x1c6   : > { %5748 = vsyncadd (%p7086_p11), [#allocation6], 4294967264  ;;  %s7087_s9 = sld [smem:[#allocation30_spill]]  ;;  %s7089_s5 = sld [smem:[#allocation25_spill]] }
 0x1c7   : > { %s7090_s26 = sld [smem:[#allocation35_spill]] }
 0x1cc   : > { %s7088_s29 = sadd.s32 4294967295, %s7087_s9   ;;  %s848_s27 = sand.u32 1, %s7089_s5  }
 0x1cd   : > { %s846_s24 = sand.u32 1, %s7088_s29   ;;  %s4663_s7 = smul.u32 768, %s848_s27 }
 0x1ce   : > { %s847_s10 = scalar_lea.sflag [#allocation4], %s846_s24  ;;  %p7091_p4 = scmp.ne.s32.totalorder %s7090_s26, 0 }
 0x1cf   : > { %s6411_s6 = scalar_lea.vmem [#allocation7], %s4663_s7 }
 0x1d0   : > { %5750 = dma.done.wait (%p7091_p4), %s847_s10, 24896  }
 0x1d1   : > { %5752 = vsyncadd (%p7091_p4), %s847_s10, 4294942400  ;;  %s4664_s30 = smul.u32 6, %s848_s27  ;;  %s4273_s21 = sshll.u32 %s848_s27, 8 }
 0x1d2   : > { %s4274_s28 = sshll.u32 %s848_s27, 2  ;;  %s4275_s2 = sshll.u32 %s848_s27, 9 }
 0x1d3   : > { %s6417_s23 = sshll.u32 %s848_s27, 1  ;;  %s6419_s18 = scalar_lea.vmem [#allocation8], %s4664_s30 }
 0x1d4   : > { %s6421_s20 = scalar_lea.vmem [#allocation9], %s4273_s21  ;;  %s6423_s8 = scalar_lea.vmem [#allocation10], %s4274_s28 }
 0x1d5   : > { %s6425_s1 = scalar_lea.vmem [#allocation11], %s4275_s2 }
 0x1d6   : > { %5754 = dma.done.wait (%p7086_p11), [#allocation6], 2048  }
 0x1d7   : > { %5756 = vsyncadd (%p7086_p11), [#allocation6], 4294965248 }
 0x1d8   : > { %5758 = dma.done.wait (%p7086_p11), [#allocation19], 16  }
 0x1d9   : > { %5760 = vsyncadd (%p7086_p11), [#allocation19], 4294967280  ;;  %s7092_s5 = sld [smem:[#allocation28_spill]]  ;;  %s7093_s26 = sld [smem:[#allocation27_spill]] }
 0x1da   : > { %s7094_s21 = sld [smem:[#allocation38_spill]]  ;;  %s7095_s9 = sld [smem:[#allocation39_spill]] }
 0x1db   : > { %s7096_s4 = sld [smem:[#allocation46_spill]] }
 0x1df   : > { %p1057_p13 = scmp.lt.s32.totalorder %s7092_s5, 1  ;;  %p1066_p9 = scmp.lt.s32.totalorder %s7093_s26, 1 }
 0x1e0   : > { %p4291_p0 = scmp.ne.s32.totalorder %s7093_s26, 0 }
 0x1e1   : > { %s7122_s5 = smov (!%p1057_p13, %s7092_s5), 1  ;;  %v4831_v0 = vld [vmem:[#allocation3 + $0x4] ss:$8 sps:$4 sm:$0xff] (!%p4291_p0)   ;;  %v4833_v1 = vld [vmem:[#allocation3] ss:$8 sps:$4 sm:$0xff] (!%p4291_p0)   ;;  %v5813_v2 = vmov (!%p4291_p0), 0   ;;  %v1106_v20 = vlaneseq (!%p4291_p0) }
 0x1e2   : > { %s1067_s24 = scalar_select %p1066_p9, %s7093_s26, 1 }
 0x1e3   : > { %s4594_s27 = sshll.u32 %s7122_s5, 4  ;;  %s4285_s7 = sshll.u32 %s7122_s5, 1  ;;  %1228 = vmatprep.mubr.bf16.mxu0 (!%p4291_p0), %v5813_v2  ;;  %1196 = vmatprep.subr.bf16.mxu0 (!%p4291_p0), %v4831_v0  ;;  %v4834_v3 = vld [vmem:[#allocation3 + $0x14] ss:$8 sps:$4 sm:$0xff] (!%p4291_p0)   ;;  %v4836_v4 = vld [vmem:[#allocation3 + $0x10] ss:$8 sps:$4 sm:$0xff] (!%p4291_p0)  }
 0x1e4   : > { %s6447_s28 = scalar_lea.vmem %s7094_s21, %s4594_s27  ;;  %s6452_s25 = scalar_lea.vmem %s7095_s9, %s4285_s7  ;;  %1197 = vmatpush1.bf16.msra.mxu0 (!%p4291_p0), %v4833_v1  ;;  %v4837_v5 = vld [vmem:[#allocation3 + $0x24] ss:$8 sps:$4 sm:$0xff] (!%p4291_p0)   ;;  %v4839_v6 = vld [vmem:[#allocation3 + $0x20] ss:$8 sps:$4 sm:$0xff] (!%p4291_p0)   ;;  %v4840_v7 = vld [vmem:[#allocation3 + $0x34] ss:$8 sps:$4 sm:$0xff] (!%p4291_p0)  }
 0x1e5   : > { %s4286_s17 = sshll.u32 %s1067_s24, 1  ;;  %s4595_s16 = sshll.u32 %s1067_s24, 9  ;;  %1198 = vmatprep.subr.bf16.mxu0 (!%p4291_p0), %v4834_v3  ;;  %v4842_v8 = vld [vmem:[#allocation3 + $0x30] ss:$8 sps:$4 sm:$0xff] (!%p4291_p0)   ;;  %v4843_v9 = vld [vmem:[#allocation3 + $0x44] ss:$8 sps:$4 sm:$0xff] (!%p4291_p0)  }
 0x1e6   : > { %s6457_s11 = scalar_lea.vmem %s7096_s4, %s4286_s17  ;;  %s7097_s5 = sld [smem:[#allocation47_spill]]  ;;  %v4845_v10 = vld [vmem:[#allocation3 + $0x40] ss:$8 sps:$4 sm:$0xff] (!%p4291_p0)   ;;  %v4846_v11 = vld [vmem:[#allocation3 + $0x54] ss:$8 sps:$4 sm:$0xff] (!%p4291_p0)   ;;  %v1107_v21 = vshrl.u32 (!%p4291_p0), %v1106_v20, 7 }
 0x1e7   : > { %s7098_s21 = sld [smem:[#allocation57_spill]]  ;;  %1084 = sbr.rel (%p4291_p0) target bundleno = 738 (0x2e2), region = 156  ;;  %v4848_v12 = vld [vmem:[#allocation3 + $0x50] ss:$8 sps:$4 sm:$0xff] (!%p4291_p0)   ;;  %v4849_v13 = vld [vmem:[#allocation3 + $0x64] ss:$8 sps:$4 sm:$0xff] (!%p4291_p0)  }
 0x1e8   : > { %1199 = vmatpush1.bf16.msra.mxu0 (!%p4291_p0), %v4836_v4  ;;  %v4851_v14 = vld [vmem:[#allocation3 + $0x60] ss:$8 sps:$4 sm:$0xff] (!%p4291_p0)   ;;  %v4852_v15 = vld [vmem:[#allocation3 + $0x74] ss:$8 sps:$4 sm:$0xff] (!%p4291_p0)   ;;  %v4854_v16 = vld [vmem:[#allocation3 + $0x70] ss:$8 sps:$4 sm:$0xff] (!%p4291_p0)  }
 0x1e9   : > { %1200 = vmatprep.subr.bf16.mxu0 (!%p4291_p0), %v4837_v5  ;;  %v1085_v17 = vld [vmem:[%s6447_s28] sm:$0xff] (!%p4291_p0)  ;;  %v1086_v18 = vld [vmem:[%s6447_s28 + $0x8] sm:$0x7f] (!%p4291_p0)  ;;  %v1108_v22 = vsub.s32 (!%p4291_p0), 0, %v1107_v21  ;;  %v1112_v24 = vsub.s32 (!%p4291_p0), 1, %v1107_v21  ;;  %vm1255_vm0 = vcmask (!%p4291_p0), 1040384  }
 0x1ea   : > { %v1087_v19 = vpack.c.bf16 (!%p4291_p0), %v1086_v18, %v1085_v17  ;;  %v1104_v23 = vld [vmem:[#allocation5] sm:$0x3] (!%p4291_p0)  ;;  %s7099_s13 = sld [smem:[#allocation40_spill]] (!%p4291_p0) }
 0x1eb   : > { %v1109_v25 = vrot.slane (!%p4291_p0), %v1104_v23, %v1108_v22  ;;  %v1239_v26 = vld [vmem:[%s6452_s25] sm:$0x3] (!%p4291_p0)  ;;  %v1113_v27 = vrot.slane (!%p4291_p0), %v1104_v23, %v1112_v24 }
 0x1ec   : > { %s6462_s14 = scalar_lea.vmem %s7097_s5, %s4595_s16  ;;  %1201 = vmatpush1.bf16.msra.mxu0 (!%p4291_p0), %v4839_v6  ;;  %v1244_v30 = vrot.slane (!%p4291_p0), %v1239_v26, %v1108_v22  ;;  %v1248_v33 = vrot.slane (!%p4291_p0), %v1239_v26, %v1112_v24 }
 0x1ed   : > { %s6467_s15 = scalar_lea.vmem %s7098_s21, %s4594_s27  ;;  %1202 = vmatprep.subr.bf16.mxu0 (!%p4291_p0), %v4840_v7 }
 0x1f0   : > { %1203 = vmatpush1.bf16.msra.mxu0 %v4842_v8  ;;  %v1268_v36 = vld [vmem:[%s7099_s13] sm:$0xff]  ;;  %v1269_v40 = vld [vmem:[%s7099_s13 + $0x8] sm:$0xff]  ;;  %v1270_v44 = vld [vmem:[%s7099_s13 + $0x10] sm:$0xff] }
 0x1f1   : > { %1204 = vmatprep.subr.bf16.mxu0 %v4843_v9  ;;  %v1271_v48 = vld [vmem:[%s7099_s13 + $0x18] sm:$0xff] }
 0x1f4   : > { %1205 = vmatpush1.bf16.msra.mxu0 %v4845_v10 }
 0x1f5   : > { %1206 = vmatprep.subr.bf16.mxu0 %v4846_v11 }
 0x1f8   : > { %1207 = vmatpush1.bf16.msra.mxu0 %v4848_v12 }
 0x1f9   : > { %1208 = vmatprep.subr.bf16.mxu0 %v4849_v13 }
 0x1fc   : > { %1209 = vmatpush1.bf16.msra.mxu0 %v4851_v14 }
 0x1fd   : > { %1210 = vmatprep.subr.bf16.mxu0 %v4852_v15 }
 0x200   : > { %1211 = vmatpush1.bf16.msra.mxu0 %v4854_v16 }
 0x203   : > { %1229 = vmatmul.mubr.bf16.vlgmr.msra.gmra.mrb[0].mxu0 %v1087_v19 }
 0x2d6   : > { %v1230_v28 = vpop.f32.mrb[0].mxu0 }
 0x2d7   : > { %v1231_v29 = vadd.f32 %v1230_v28, %v1109_v25  ;;  %v1232_v31 = vpop.f32.mrb[1].mxu0 }
 0x2d8   : > { %v1233_v32 = vadd.f32 %v1232_v31, %v1113_v27  ;;  %v1234_v34 = vpop.f32.mrb[2].mxu0 }
 0x2d9   : > { %v1256_v35 = vrot.slane %v1231_v29, 7  ;;  %v1235_v37 = vadd.f32 %v1234_v34, %v1109_v25  ;;  %v1236_v38 = vpop.f32.mrb[3].mxu0 }
 0x2da   : > { %v1257_v39 = vrot.slane %v1233_v32, 7  ;;  %v1237_v41 = vadd.f32 %v1236_v38, %v1113_v27 }
 0x2db   : > { %v1266_v42 = vsel %vm1255_vm0, %v1244_v30, %v1256_v35  ;;  %v1258_v43 = vrot.slane %v1235_v37, 7 }
 0x2dc   : > { %v1272_v45 = vadd.f32 %v1268_v36, %v1266_v42  ;;  %v1267_v46 = vsel %vm1255_vm0, %v1248_v33, %v1257_v39  ;;  %v1260_v47 = vrot.slane %v1237_v41, 7 }
 0x2dd   : > { %v1273_v49 = vadd.f32 %v1269_v40, %v1267_v46  ;;  %v1259_v50 = vsel %vm1255_vm0, %v1256_v35, %v1258_v43 }
 0x2de   : > { %1276 = vst [vmem:[#allocation2] sm:$0xff] %v1272_v45  ;;  %v1274_v51 = vadd.f32 %v1270_v44, %v1259_v50  ;;  %v1261_v52 = vsel %vm1255_vm0, %v1257_v39, %v1260_v47 }
 0x2df   : > { %1277 = vst [vmem:[#allocation2 + $0x8] sm:$0xff] %v1273_v49  ;;  %v1275_v53 = vadd.f32 %v1271_v48, %v1261_v52 }
 0x2e0   : > { %1278 = vst [vmem:[#allocation2 + $0x10] sm:$0xff] %v1274_v51 }
 0x2e1   : > { %1279 = vst [vmem:[#allocation2 + $0x18] sm:$0xff] %v1275_v53 }
 0x2e2 PF: > { %v4855_v54 = vld [vmem:[%s6411_s6 + $0x4] ss:$24 sps:$4 sm:$0xff]   ;;  %v4857_v55 = vld [vmem:[%s6411_s6] ss:$24 sps:$4 sm:$0xff]   ;;  %v4858_v56 = vld [vmem:[%s6411_s6 + $0x34] ss:$24 sps:$4 sm:$0xff]  }
 0x2e3   : > { %1894 = vmatprep.subr.bf16.mxu1 %v4855_v54  ;;  %v4860_v57 = vld [vmem:[%s6411_s6 + $0x30] ss:$24 sps:$4 sm:$0xff]   ;;  %v4861_v58 = vld [vmem:[%s6411_s6 + $0x64] ss:$24 sps:$4 sm:$0xff]   ;;  %v4863_v59 = vld [vmem:[%s6411_s6 + $0x60] ss:$24 sps:$4 sm:$0xff]  }
 0x2e4   : > { %1895 = vmatpush1.bf16.msra.mxu1 %v4857_v55  ;;  %v4864_v60 = vld [vmem:[%s6411_s6 + $0x94] ss:$24 sps:$4 sm:$0xff]   ;;  %v4866_v61 = vld [vmem:[%s6411_s6 + $0x90] ss:$24 sps:$4 sm:$0xff]   ;;  %v4867_v62 = vld [vmem:[%s6411_s6 + $0xc4] ss:$24 sps:$4 sm:$0xff]  }
 0x2e5   : > { %1896 = vmatprep.subr.bf16.mxu1 %v4858_v56  ;;  %v4869_v63 = vld [vmem:[%s6411_s6 + $0xc0] ss:$24 sps:$4 sm:$0xff]   ;;  %v4870_v0 = vld [vmem:[%s6411_s6 + $0xf4] ss:$24 sps:$4 sm:$0xff]   ;;  %v4872_v1 = vld [vmem:[%s6411_s6 + $0xf0] ss:$24 sps:$4 sm:$0xff]  }
 0x2e6   : > { %v4873_v2 = vld [vmem:[%s6411_s6 + $0x124] ss:$24 sps:$4 sm:$0xff]   ;;  %v4875_v6 = vld [vmem:[%s6411_s6 + $0x120] ss:$24 sps:$4 sm:$0xff]   ;;  %v4876_v7 = vld [vmem:[%s6411_s6 + $0x154] ss:$24 sps:$4 sm:$0xff]  }
 0x2e7   : > { %v1281_v3 = vld [vmem:[#allocation2 + $0x8] sm:$0xff]  ;;  %v4881_v10 = vld [vmem:[%s6411_s6 + $0x180] ss:$24 sps:$4 sm:$0xff]   ;;  %v6523_v26 = vld [vmem:[#allocation2 + $0x10] sm:$0xff]  ;;  %vm5815_vm1 = vmmov 0   ;;  %vm2069_vm2 = vcmask 130048  }
 0x2e8   : > { %1897 = vmatpush1.bf16.msra.mxu1 %v4860_v57  ;;  %v1283_v4 = vld [vmem:[#allocation2 + $0x18] sm:$0xff]  ;;  %v4878_v8 = vld [vmem:[%s6411_s6 + $0x150] ss:$24 sps:$4 sm:$0xff]   ;;  %v6521_v25 = vld [vmem:[#allocation2] sm:$0xff] }
 0x2e9   : > { %1898 = vmatprep.subr.bf16.mxu1 %v4861_v58  ;;  %v1285_v5 = vpack.c.bf16 %v1283_v4, %v1281_v3  ;;  %v4879_v9 = vld [vmem:[%s6411_s6 + $0x184] ss:$24 sps:$4 sm:$0xff]   ;;  %v4882_v11 = vld [vmem:[%s6411_s6 + $0x1b4] ss:$24 sps:$4 sm:$0xff]   ;;  %v4884_v12 = vld [vmem:[%s6411_s6 + $0x1b0] ss:$24 sps:$4 sm:$0xff]   ;;  %v6529_v29 = vpack.c.bf16 %v6523_v26, %v6521_v25 }
 0x2ea   : > { %v4885_v13 = vld [vmem:[%s6411_s6 + $0x1e4] ss:$24 sps:$4 sm:$0xff]   ;;  %v4887_v14 = vld [vmem:[%s6411_s6 + $0x1e0] ss:$24 sps:$4 sm:$0xff]   ;;  %v4888_v15 = vld [vmem:[%s6411_s6 + $0x214] ss:$24 sps:$4 sm:$0xff]  }
 0x2eb   : > { %1926 = vmatprep.mubr.bf16.mxu1 %v1285_v5  ;;  %2012 = vmatprep.mubr.bf16.mxu0 %v1285_v5  ;;  %v4890_v16 = vld [vmem:[%s6411_s6 + $0x210] ss:$24 sps:$4 sm:$0xff]   ;;  %v4891_v17 = vld [vmem:[%s6411_s6 + $0x244] ss:$24 sps:$4 sm:$0xff]   ;;  %v4893_v18 = vld [vmem:[%s6411_s6 + $0x240] ss:$24 sps:$4 sm:$0xff]  }
 0x2ec   : > { %1899 = vmatpush1.bf16.msra.mxu1 %v4863_v59  ;;  %v4894_v19 = vld [vmem:[%s6411_s6 + $0x274] ss:$24 sps:$4 sm:$0xff]   ;;  %v4896_v20 = vld [vmem:[%s6411_s6 + $0x270] ss:$24 sps:$4 sm:$0xff]   ;;  %v4897_v21 = vld [vmem:[%s6411_s6 + $0x2a4] ss:$24 sps:$4 sm:$0xff]  }
 0x2ed   : > { %1900 = vmatprep.subr.bf16.mxu1 %v4864_v60  ;;  %v4899_v22 = vld [vmem:[%s6411_s6 + $0x2a0] ss:$24 sps:$4 sm:$0xff]   ;;  %v4900_v23 = vld [vmem:[%s6411_s6 + $0x2d4] ss:$24 sps:$4 sm:$0xff]   ;;  %v4902_v24 = vld [vmem:[%s6411_s6 + $0x2d0] ss:$24 sps:$4 sm:$0xff]  }
 0x2ee   : > { %v4905_v27 = vld [vmem:[%s6411_s6 + $0xc] ss:$24 sps:$4 sm:$0xff]   ;;  %v4903_v28 = vld [vmem:[%s6411_s6 + $0x8] ss:$24 sps:$4 sm:$0xff]   ;;  %v4908_v30 = vld [vmem:[%s6411_s6 + $0x3c] ss:$24 sps:$4 sm:$0xff]  }
 0x2ef   : > { %v4906_v31 = vld [vmem:[%s6411_s6 + $0x38] ss:$24 sps:$4 sm:$0xff]   ;;  %v4911_v32 = vld [vmem:[%s6411_s6 + $0x6c] ss:$24 sps:$4 sm:$0xff]   ;;  %v4909_v33 = vld [vmem:[%s6411_s6 + $0x68] ss:$24 sps:$4 sm:$0xff]  }
 0x2f0   : > { %1901 = vmatpush1.bf16.msra.mxu1 %v4866_v61  ;;  %v4914_v34 = vld [vmem:[%s6411_s6 + $0x9c] ss:$24 sps:$4 sm:$0xff]   ;;  %v4912_v35 = vld [vmem:[%s6411_s6 + $0x98] ss:$24 sps:$4 sm:$0xff]   ;;  %v4917_v36 = vld [vmem:[%s6411_s6 + $0xcc] ss:$24 sps:$4 sm:$0xff]  }
 0x2f1   : > { %1902 = vmatprep.subr.bf16.mxu1 %v4867_v62  ;;  %v4915_v37 = vld [vmem:[%s6411_s6 + $0xc8] ss:$24 sps:$4 sm:$0xff]   ;;  %v4920_v38 = vld [vmem:[%s6411_s6 + $0xfc] ss:$24 sps:$4 sm:$0xff]   ;;  %v4918_v39 = vld [vmem:[%s6411_s6 + $0xf8] ss:$24 sps:$4 sm:$0xff]  }
 0x2f2   : > { %v4923_v40 = vld [vmem:[%s6411_s6 + $0x12c] ss:$24 sps:$4 sm:$0xff]   ;;  %v4921_v41 = vld [vmem:[%s6411_s6 + $0x128] ss:$24 sps:$4 sm:$0xff]   ;;  %v4926_v42 = vld [vmem:[%s6411_s6 + $0x15c] ss:$24 sps:$4 sm:$0xff]  }
 0x2f3   : > { %v4924_v43 = vld [vmem:[%s6411_s6 + $0x158] ss:$24 sps:$4 sm:$0xff]   ;;  %v4929_v44 = vld [vmem:[%s6411_s6 + $0x18c] ss:$24 sps:$4 sm:$0xff]   ;;  %v4927_v45 = vld [vmem:[%s6411_s6 + $0x188] ss:$24 sps:$4 sm:$0xff]  }
 0x2f4   : > { %1903 = vmatpush1.bf16.msra.mxu1 %v4869_v63  ;;  %v4932_v46 = vld [vmem:[%s6411_s6 + $0x1bc] ss:$24 sps:$4 sm:$0xff]   ;;  %v4930_v47 = vld [vmem:[%s6411_s6 + $0x1b8] ss:$24 sps:$4 sm:$0xff]   ;;  %v4935_v48 = vld [vmem:[%s6411_s6 + $0x1ec] ss:$24 sps:$4 sm:$0xff]  }
 0x2f5   : > { %1904 = vmatprep.subr.bf16.mxu1 %v4870_v0  ;;  %v4933_v49 = vld [vmem:[%s6411_s6 + $0x1e8] ss:$24 sps:$4 sm:$0xff]   ;;  %v4938_v50 = vld [vmem:[%s6411_s6 + $0x21c] ss:$24 sps:$4 sm:$0xff]   ;;  %v4936_v51 = vld [vmem:[%s6411_s6 + $0x218] ss:$24 sps:$4 sm:$0xff]  }
 0x2f6   : > { %v4941_v52 = vld [vmem:[%s6411_s6 + $0x24c] ss:$24 sps:$4 sm:$0xff]   ;;  %v4939_v53 = vld [vmem:[%s6411_s6 + $0x248] ss:$24 sps:$4 sm:$0xff]   ;;  %v4944_v54 = vld [vmem:[%s6411_s6 + $0x27c] ss:$24 sps:$4 sm:$0xff]  }
 0x2f7   : > { %v4942_v55 = vld [vmem:[%s6411_s6 + $0x278] ss:$24 sps:$4 sm:$0xff]   ;;  %v4947_v56 = vld [vmem:[%s6411_s6 + $0x2ac] ss:$24 sps:$4 sm:$0xff]   ;;  %v4945_v57 = vld [vmem:[%s6411_s6 + $0x2a8] ss:$24 sps:$4 sm:$0xff]  }
 0x2f8   : > { %1905 = vmatpush1.bf16.msra.mxu1 %v4872_v1  ;;  %v4950_v58 = vld [vmem:[%s6411_s6 + $0x2dc] ss:$24 sps:$4 sm:$0xff]   ;;  %v4948_v59 = vld [vmem:[%s6411_s6 + $0x2d8] ss:$24 sps:$4 sm:$0xff]  }
 0x2f9   : > { %1906 = vmatprep.subr.bf16.mxu1 %v4873_v2  ;;  %v4951_v60 = vld [vmem:[%s6411_s6 + $0x14] ss:$24 sps:$4 sm:$0xff]   ;;  %v4953_v61 = vld [vmem:[%s6411_s6 + $0x10] ss:$24 sps:$4 sm:$0xff]   ;;  %v4954_v62 = vld [vmem:[%s6411_s6 + $0x44] ss:$24 sps:$4 sm:$0xff]  }
 0x2fa   : > { %1980 = vmatprep.subr.bf16.mxu0 %v4951_v60  ;;  %v4956_v63 = vld [vmem:[%s6411_s6 + $0x40] ss:$24 sps:$4 sm:$0xff]   ;;  %v4957_v0 = vld [vmem:[%s6411_s6 + $0x74] ss:$24 sps:$4 sm:$0xff]   ;;  %v4959_v1 = vld [vmem:[%s6411_s6 + $0x70] ss:$24 sps:$4 sm:$0xff]  }
 0x2fb   : > { %1981 = vmatpush1.bf16.msra.mxu0 %v4953_v61  ;;  %v4960_v2 = vld [vmem:[%s6411_s6 + $0xa4] ss:$24 sps:$4 sm:$0xff]   ;;  %v4962_v3 = vld [vmem:[%s6411_s6 + $0xa0] ss:$24 sps:$4 sm:$0xff]   ;;  %v4963_v4 = vld [vmem:[%s6411_s6 + $0xd4] ss:$24 sps:$4 sm:$0xff]  }
 0x2fc   : > { %1907 = vmatpush1.bf16.msra.mxu1 %v4875_v6  ;;  %1982 = vmatprep.subr.bf16.mxu0 %v4954_v62  ;;  %v4966_v6 = vld [vmem:[%s6411_s6 + $0x104] ss:$24 sps:$4 sm:$0xff]  }
 0x2fd   : > { %1908 = vmatprep.subr.bf16.mxu1 %v4876_v7  ;;  %v4968_v7 = vld [vmem:[%s6411_s6 + $0x100] ss:$24 sps:$4 sm:$0xff]  }
 0x2ff   : > { %1983 = vmatpush1.bf16.msra.mxu0 %v4956_v63 }
 0x300   : > { %1909 = vmatpush1.bf16.msra.mxu1 %v4878_v8  ;;  %1984 = vmatprep.subr.bf16.mxu0 %v4957_v0  ;;  %v4969_v8 = vld [vmem:[%s6411_s6 + $0x134] ss:$24 sps:$4 sm:$0xff]  }
 0x301   : > { %1910 = vmatprep.subr.bf16.mxu1 %v4879_v9  ;;  %v4971_v9 = vld [vmem:[%s6411_s6 + $0x130] ss:$24 sps:$4 sm:$0xff]  }
 0x303   : > { %1985 = vmatpush1.bf16.msra.mxu0 %v4959_v1 }
 0x304   : > { %1911 = vmatpush1.bf16.msra.mxu1 %v4881_v10  ;;  %1986 = vmatprep.subr.bf16.mxu0 %v4960_v2  ;;  %v4972_v10 = vld [vmem:[%s6411_s6 + $0x164] ss:$24 sps:$4 sm:$0xff]  }
 0x305   : > { %1912 = vmatprep.subr.bf16.mxu1 %v4882_v11  ;;  %v4974_v11 = vld [vmem:[%s6411_s6 + $0x160] ss:$24 sps:$4 sm:$0xff]  }
 0x307   : > { %1987 = vmatpush1.bf16.msra.mxu0 %v4962_v3 }
 0x308   : > { %1913 = vmatpush1.bf16.msra.mxu1 %v4884_v12  ;;  %1988 = vmatprep.subr.bf16.mxu0 %v4963_v4  ;;  %v4975_v12 = vld [vmem:[%s6411_s6 + $0x194] ss:$24 sps:$4 sm:$0xff]  }
 0x309   : > { %1914 = vmatprep.subr.bf16.mxu1 %v4885_v13  ;;  %v4977_v13 = vld [vmem:[%s6411_s6 + $0x190] ss:$24 sps:$4 sm:$0xff]  }
 0x30c   : > { %1915 = vmatpush1.bf16.msra.mxu1 %v4887_v14  ;;  %v4978_v14 = vld [vmem:[%s6411_s6 + $0x1c4] ss:$24 sps:$4 sm:$0xff]  }
 0x30d   : > { %1916 = vmatprep.subr.bf16.mxu1 %v4888_v15  ;;  %v4980_v15 = vld [vmem:[%s6411_s6 + $0x1c0] ss:$24 sps:$4 sm:$0xff]  }
 0x310   : > { %1917 = vmatpush1.bf16.msra.mxu1 %v4890_v16  ;;  %v4981_v16 = vld [vmem:[%s6411_s6 + $0x1f4] ss:$24 sps:$4 sm:$0xff]  }
 0x311   : > { %1918 = vmatprep.subr.bf16.mxu1 %v4891_v17  ;;  %v4983_v17 = vld [vmem:[%s6411_s6 + $0x1f0] ss:$24 sps:$4 sm:$0xff]  }
 0x314   : > { %1919 = vmatpush1.bf16.msra.mxu1 %v4893_v18  ;;  %v4984_v18 = vld [vmem:[%s6411_s6 + $0x224] ss:$24 sps:$4 sm:$0xff]  }
 0x315   : > { %1920 = vmatprep.subr.bf16.mxu1 %v4894_v19  ;;  %v4986_v19 = vld [vmem:[%s6411_s6 + $0x220] ss:$24 sps:$4 sm:$0xff]  }
 0x318   : > { %1921 = vmatpush1.bf16.msra.mxu1 %v4896_v20  ;;  %v4987_v20 = vld [vmem:[%s6411_s6 + $0x254] ss:$24 sps:$4 sm:$0xff]  }
 0x319   : > { %1922 = vmatprep.subr.bf16.mxu1 %v4897_v21  ;;  %v4989_v21 = vld [vmem:[%s6411_s6 + $0x250] ss:$24 sps:$4 sm:$0xff]  }
 0x31c   : > { %1923 = vmatpush1.bf16.msra.mxu1 %v4899_v22  ;;  %v4990_v22 = vld [vmem:[%s6411_s6 + $0x284] ss:$24 sps:$4 sm:$0xff]  }
 0x31d   : > { %1924 = vmatprep.subr.bf16.mxu1 %v4900_v23  ;;  %v4992_v23 = vld [vmem:[%s6411_s6 + $0x280] ss:$24 sps:$4 sm:$0xff]  }
 0x320   : > { %1925 = vmatpush1.bf16.msra.mxu1 %v4902_v24  ;;  %v4993_v24 = vld [vmem:[%s6411_s6 + $0x2b4] ss:$24 sps:$4 sm:$0xff]  }
 0x321   : > { %1937 = vmatprep.subr.bf16.mxu1 %v4905_v27  ;;  %v4995_v27 = vld [vmem:[%s6411_s6 + $0x2b0] ss:$24 sps:$4 sm:$0xff]  }
 0x323   : > { %1927 = vmatmul.mubr.bf16.vlgmr.msra.gmra.mrb[0].mxu1 %v6529_v29 }
 0x324   : > { %1938 = vmatpush1.bf16.msra.mxu1 %v4903_v28  ;;  %1969 = vmatprep.mubr.bf16.mxu1 %v1285_v5  ;;  %v4965_v5 = vld [vmem:[%s6411_s6 + $0xd0] ss:$24 sps:$4 sm:$0xff]   ;;  %v4996_v28 = vld [vmem:[%s6411_s6 + $0x2e4] ss:$24 sps:$4 sm:$0xff]  }
 0x325   : > { %1939 = vmatprep.subr.bf16.mxu1 %v4908_v30  ;;  %1989 = vmatpush1.bf16.msra.mxu0 %v4965_v5  ;;  %v4998_v30 = vld [vmem:[%s6411_s6 + $0x2e0] ss:$24 sps:$4 sm:$0xff]   ;;  %s7101_s6 = scalar_lea.vmem [#allocation14], %s6417_s23 }
 0x326   : > { %1990 = vmatprep.subr.bf16.mxu0 %v4966_v6 }
 0x328   : > { %1940 = vmatpush1.bf16.msra.mxu1 %v4906_v31  ;;  %v5814_v31 = vmov 0.0  }
 0x329   : > { %1941 = vmatprep.subr.bf16.mxu1 %v4911_v32  ;;  %1991 = vmatpush1.bf16.msra.mxu0 %v4968_v7  ;;  %v1384_v32 = vlaneseq }
 0x32a   : > { %1992 = vmatprep.subr.bf16.mxu0 %v4969_v8 }
 0x32c   : > { %1942 = vmatpush1.bf16.msra.mxu1 %v4909_v33  ;;  %v6598_v33 = vshrl.u32 %v1384_v32, 7 }
 0x32d   : > { %1943 = vmatprep.subr.bf16.mxu1 %v4914_v34  ;;  %1993 = vmatpush1.bf16.msra.mxu0 %v4971_v9 }
 0x32e   : > { %1994 = vmatprep.subr.bf16.mxu0 %v4972_v10  ;;  %v6601_v34 = vsub.s32 0, %v6598_v33  ;;  %v1402_v62 = vsub.s32 4, %v6598_v33  ;;  %v1406_v63 = vsub.s32 5, %v6598_v33 }
 0x330   : > { %1944 = vmatpush1.bf16.msra.mxu1 %v4912_v35  ;;  %v1382_v35 = vld [vmem:[%s6419_s18] sm:$0x3f]  ;;  %s7103_s18 = scalar_lea.vmem [#allocation15], %s6417_s23 }
 0x331   : > { %1945 = vmatprep.subr.bf16.mxu1 %v4917_v36  ;;  %1995 = vmatpush1.bf16.msra.mxu0 %v4974_v11  ;;  %v6605_v36 = vsub.s32 1, %v6598_v33  ;;  %v1403_v0 = vrot.slane %v1382_v35, %v1402_v62  ;;  %v1407_v1 = vrot.slane %v1382_v35, %v1406_v63  ;;  %v5005_v62 = vld [vmem:[%s6421_s20 + $0x20] ss:$8 sps:$4 sm:$0xff]   ;;  %v5010_v63 = vld [vmem:[%s6421_s20 + $0x34] ss:$8 sps:$4 sm:$0xff]  }
 0x332   : > { %1996 = vmatprep.subr.bf16.mxu0 %v4975_v12 }
 0x334   : > { %1946 = vmatpush1.bf16.msra.mxu1 %v4915_v37 }
 0x335   : > { %1947 = vmatprep.subr.bf16.mxu1 %v4920_v38  ;;  %1997 = vmatpush1.bf16.msra.mxu0 %v4977_v13  ;;  %v1391_v38 = vrot.slane %v1382_v35, %v6605_v36 }
 0x336   : > { %1998 = vmatprep.subr.bf16.mxu0 %v4978_v14 }
 0x338   : > { %1948 = vmatpush1.bf16.msra.mxu1 %v4918_v39 }
 0x339   : > { %1949 = vmatprep.subr.bf16.mxu1 %v4923_v40  ;;  %1999 = vmatpush1.bf16.msra.mxu0 %v4980_v15 }
 0x33a   : > { %2000 = vmatprep.subr.bf16.mxu0 %v4981_v16 }
 0x33c   : > { %1950 = vmatpush1.bf16.msra.mxu1 %v4921_v41 }
 0x33d   : > { %1951 = vmatprep.subr.bf16.mxu1 %v4926_v42  ;;  %2001 = vmatpush1.bf16.msra.mxu0 %v4983_v17 }
 0x33e   : > { %2002 = vmatprep.subr.bf16.mxu0 %v4984_v18 }
 0x340   : > { %1952 = vmatpush1.bf16.msra.mxu1 %v4924_v43 }
 0x341   : > { %1953 = vmatprep.subr.bf16.mxu1 %v4929_v44  ;;  %2003 = vmatpush1.bf16.msra.mxu0 %v4986_v19 }
 0x342   : > { %2004 = vmatprep.subr.bf16.mxu0 %v4987_v20 }
 0x344   : > { %1954 = vmatpush1.bf16.msra.mxu1 %v4927_v45 }
 0x345   : > { %1955 = vmatprep.subr.bf16.mxu1 %v4932_v46  ;;  %2005 = vmatpush1.bf16.msra.mxu0 %v4989_v21 }
 0x346   : > { %2006 = vmatprep.subr.bf16.mxu0 %v4990_v22 }
 0x348   : > { %1956 = vmatpush1.bf16.msra.mxu1 %v4930_v47 }
 0x349   : > { %1957 = vmatprep.subr.bf16.mxu1 %v4935_v48  ;;  %2007 = vmatpush1.bf16.msra.mxu0 %v4992_v23  ;;  %v1394_v48 = vsub.s32 2, %v6598_v33 }
 0x34a   : > { %2008 = vmatprep.subr.bf16.mxu0 %v4993_v24 }
 0x34c   : > { %1958 = vmatpush1.bf16.msra.mxu1 %v4933_v49  ;;  %v1398_v49 = vsub.s32 3, %v6598_v33 }
 0x34d   : > { %1959 = vmatprep.subr.bf16.mxu1 %v4938_v50  ;;  %2009 = vmatpush1.bf16.msra.mxu0 %v4995_v27  ;;  %v1395_v50 = vrot.slane %v1382_v35, %v1394_v48 }
 0x34e   : > { %2010 = vmatprep.subr.bf16.mxu0 %v4996_v28 }
 0x350   : > { %1960 = vmatpush1.bf16.msra.mxu1 %v4936_v51 }
 0x351   : > { %1961 = vmatprep.subr.bf16.mxu1 %v4941_v52  ;;  %2011 = vmatpush1.bf16.msra.mxu0 %v4998_v30  ;;  %v1399_v52 = vrot.slane %v1382_v35, %v1398_v49 }
 0x352   : > { %4627 = vmatprep.subr.bf16.mxu0 %v5814_v31 }
 0x354   : > { %1962 = vmatpush1.bf16.msra.mxu1 %v4939_v53  ;;  %2013 = vmatmul.mubr.bf16.vlgmr.msra.gmra.mrb[0].mxu0 %v6529_v29 }
 0x355   : > { %1963 = vmatprep.subr.bf16.mxu1 %v4944_v54  ;;  %4629 = vmatprep.mubr.msk.bf16.mxu0 %vm5815_vm1, %v5814_v31 }
 0x358   : > { %1964 = vmatpush1.bf16.msra.mxu1 %v4942_v55 }
 0x359   : > { %1965 = vmatprep.subr.bf16.mxu1 %v4947_v56 }
 0x35c   : > { %1966 = vmatpush1.bf16.msra.mxu1 %v4945_v57 }
 0x35d   : > { %1967 = vmatprep.subr.bf16.mxu1 %v4950_v58 }
 0x360   : > { %1968 = vmatpush1.bf16.msra.mxu1 %v4948_v59 }
 0x361   : > { %4639 = vmatprep.subr.bf16.mxu1 %v5814_v31 }
 0x363   : > { %1970 = vmatmul.mubr.bf16.vlgmr.msra.gmra.mrb[4].mxu1 %v6529_v29  ;;  %v1387_v29 = vrot.slane %v1382_v35, %v6601_v34 }
 0x364   : > { %4641 = vmatprep.mubr.msk.bf16.mxu1 %vm5815_vm1, %v5814_v31 }
 0x3f6   : > { %v1928_v37 = vpop.f32.mrb[0].mxu1 }
 0x3f7   : > { %v1929_v39 = vadd.f32 %v1928_v37, %v1387_v29  ;;  %v1930_v40 = vpop.f32.mrb[1].mxu1 }
 0x3f8   : > { %v1932_v41 = vpop.f32.mrb[2].mxu1  ;;  %v1931_v44 = vadd.f32 %v1930_v40, %v1391_v38 }
 0x3f9   : > { %v1933_v42 = vadd.f32 %v1932_v41, %v1387_v29  ;;  %v1934_v43 = vpop.f32.mrb[3].mxu1 }
 0x3fa   : > { %v1935_v45 = vadd.f32 %v1934_v43, %v1391_v38 }
 0x3fb   : > { %v2023_v46 = vpack.c.bf16 %v1933_v42, %v1929_v39 }
 0x3fc   : > { %v2137_v47 = vpack.c.bf16 %v1935_v45, %v1931_v44 }
 0x427   : > { %v2014_v2 = vpop.f32.mrb[0].mxu0 }
 0x428   : > { %v2015_v3 = vadd.f32 %v2014_v2, %v1403_v0  ;;  %v2016_v4 = vpop.f32.mrb[1].mxu0  ;;  %v5011_v2 = vld [vmem:[%s6421_s20 + $0x40] ss:$8 sps:$4 sm:$0xff]  }
 0x429   : > { %v2017_v5 = vadd.f32 %v2016_v4, %v1407_v1  ;;  %v2018_v6 = vpop.f32.mrb[2].mxu0  ;;  %v5014_v4 = vld [vmem:[%s6421_s20 + $0x50] ss:$8 sps:$4 sm:$0xff]  }
 0x42a   : > { %v2019_v7 = vadd.f32 %v2018_v6, %v1403_v0  ;;  %v2020_v8 = vpop.f32.mrb[3].mxu0  ;;  %v5008_v0 = vld [vmem:[%s6421_s20 + $0x30] ss:$8 sps:$4 sm:$0xff]   ;;  %v5017_v6 = vld [vmem:[%s6421_s20 + $0x60] ss:$8 sps:$4 sm:$0xff]  }
 0x42b   : > { %v2021_v9 = vadd.f32 %v2020_v8, %v1407_v1  ;;  %v5013_v1 = vld [vmem:[%s6421_s20 + $0x44] ss:$8 sps:$4 sm:$0xff]   ;;  %v5020_v8 = vld [vmem:[%s6421_s20 + $0x70] ss:$8 sps:$4 sm:$0xff]  }
 0x42c   : > { %v2025_v10 = vpack.c.bf16 %v2019_v7, %v2015_v3  ;;  %v5016_v3 = vld [vmem:[%s6421_s20 + $0x54] ss:$8 sps:$4 sm:$0xff]  }
 0x42d   : > { %v2139_v11 = vpack.c.bf16 %v2021_v9, %v2017_v5  ;;  %v5019_v5 = vld [vmem:[%s6421_s20 + $0x64] ss:$8 sps:$4 sm:$0xff]   ;;  %v5022_v7 = vld [vmem:[%s6421_s20 + $0x74] ss:$8 sps:$4 sm:$0xff]  }
 0x42e   : > { %v5025_v9 = vld [vmem:[%s6421_s20 + $0x84] ss:$8 sps:$4 sm:$0xff]  }
 0x436   : > { %v1971_v51 = vpop.f32.mrb[4].mxu1 }
 0x437   : > { %v1973_v53 = vpop.f32.mrb[5].mxu1  ;;  %v1972_v55 = vadd.f32 %v1971_v51, %v1395_v50 }
 0x438   : > { %v1975_v54 = vpop.f32.mrb[6].mxu1  ;;  %v1974_v58 = vadd.f32 %v1973_v53, %v1399_v52 }
 0x439   : > { %v1976_v56 = vadd.f32 %v1975_v54, %v1395_v50  ;;  %v1977_v57 = vpop.f32.mrb[7].mxu1 }
 0x43a   : > { %v1978_v59 = vadd.f32 %v1977_v57, %v1399_v52  ;;  %v4999_v57 = vld [vmem:[%s6421_s20] ss:$8 sps:$4 sm:$0xff]  }
 0x43b   : > { %v2024_v60 = vpack.c.bf16 %v1976_v56, %v1972_v55 }
 0x43c   : > { %v2138_v61 = vpack.c.bf16 %v1978_v59, %v1974_v58  ;;  %v5001_v58 = vld [vmem:[%s6421_s20 + $0x4] ss:$8 sps:$4 sm:$0xff]   ;;  %v5004_v59 = vld [vmem:[%s6421_s20 + $0x14] ss:$8 sps:$4 sm:$0xff]  }
 0x43d   : > { %4628 = vmatpush3.bf16.xpose.msra.mxu0 %v2024_v60  ;;  %v5002_v60 = vld [vmem:[%s6421_s20 + $0x10] ss:$8 sps:$4 sm:$0xff]  }
 0x43e   : > { %4640 = vmatpush3.bf16.xpose.msra.mxu1 %v2138_v61  ;;  %4633 = vmatprep.subr.bf16.mxu0 %v5814_v31  ;;  %v5007_v61 = vld [vmem:[%s6421_s20 + $0x24] ss:$8 sps:$4 sm:$0xff]  }
 0x43f   : > { %4645 = vmatprep.subr.bf16.mxu1 %v5814_v31 }
 0x444   : > { %4630 = vmatmul.mubr.bf16.vlgmr.msra.gmra.mrb[4].mxu0 %v2023_v46 }
 0x445   : > { %4642 = vmatmul.mubr.bf16.vlgmr.msra.gmra.mrb[8].mxu1 %v2137_v47  ;;  %4635 = vmatprep.mubr.msk.bf16.mxu0 %vm5815_vm1, %v5814_v31 }
 0x446   : > { %4647 = vmatprep.mubr.msk.bf16.mxu1 %vm5815_vm1, %v5814_v31  ;;  %4634 = vmatpush3.bf16.msra.mxu0 %v2025_v10  ;;  %v5023_v10 = vld [vmem:[%s6421_s20 + $0x80] ss:$8 sps:$4 sm:$0xff]  }
 0x447   : > { %4646 = vmatpush3.bf16.msra.mxu1 %v2139_v11  ;;  %v5028_v11 = vld [vmem:[%s6421_s20 + $0x94] ss:$8 sps:$4 sm:$0xff]  }
 0x448   : > { %2456 = vmatprep.subr.bf16.mxu1 %v5001_v58 }
 0x517   : > { %v2060_v12 = vpop.f32.mrb[4].mxu0 }
 0x518   : > { %v2067_v13 = vmul.f32 0.088388346, %v2060_v12  ;;  %v4631_v14 = vpop.f32.mrb[5].mxu0  ;;  %v2174_v15 = vpop.f32.mrb[8].mxu1  ;;  %v5026_v12 = vld [vmem:[%s6421_s20 + $0x90] ss:$8 sps:$4 sm:$0xff]  }
 0x519   : > { %v2181_v16 = vmul.f32 0.088388346, %v2174_v15  ;;  %v2063_v17 = vpop.f32.mrb[6].mxu0  ;;  %v4643_v18 = vpop.f32.mrb[9].mxu1  ;;  %v5029_v14 = vld [vmem:[%s6421_s20 + $0xa0] ss:$8 sps:$4 sm:$0xff]  }
 0x51a   : > { %v2068_v19 = vmul.f32 0.088388346, %v2063_v17  ;;  %v4632_v20 = vpop.f32.mrb[7].mxu0  ;;  %v2177_v21 = vpop.f32.mrb[10].mxu1  ;;  %v2070_v22 = vsel %vm2069_vm2, %v2067_v13, -inf }
 0x51b   : > { %v2182_v23 = vmul.f32 0.088388346, %v2177_v21  ;;  %v4644_v24 = vpop.f32.mrb[11].mxu1  ;;  %2071 = vmax.xlane.f32.xlu1 %v2070_v22  ;;  %v2183_v27 = vsel %vm2069_vm2, %v2181_v16, -inf  ;;  %v5034_v15 = vld [vmem:[%s6421_s20 + $0xb4] ss:$8 sps:$4 sm:$0xff]  }
 0x51c   : > { %2184 = vmax.xlane.f32.xlu0 %v2183_v27  ;;  %v2073_v28 = vsel %vm2069_vm2, %v2068_v19, -inf  ;;  %v5037_v17 = vld [vmem:[%s6421_s20 + $0xc4] ss:$8 sps:$4 sm:$0xff]   ;;  %v5035_v18 = vld [vmem:[%s6421_s20 + $0xc0] ss:$8 sps:$4 sm:$0xff]  }
 0x51d   : > { %v2186_v30 = vsel %vm2069_vm2, %v2182_v23, -inf  ;;  %v5038_v20 = vld [vmem:[%s6421_s20 + $0xd0] ss:$8 sps:$4 sm:$0xff]   ;;  %v5043_v21 = vld [vmem:[%s6421_s20 + $0xe4] ss:$8 sps:$4 sm:$0xff]  }
 0x51e   : > { %v5041_v22 = vld [vmem:[%s6421_s20 + $0xe0] ss:$8 sps:$4 sm:$0xff]   ;;  %v5044_v24 = vld [vmem:[%s6421_s20 + $0xf0] ss:$8 sps:$4 sm:$0xff]  }
 0x51f   : > { %2074 = vmax.xlane.f32.xlu1 %v2073_v28 }
 0x520   : > { %2187 = vmax.xlane.f32.xlu0 %v2186_v30 }
 0x5a8   : > { %v2072_v31 = vpop.xlane.xlu1 %2071 }
 0x5a9   : > { %v2076_v32 = vsub.f32 %v2067_v13, %v2072_v31  ;;  %v2185_v35 = vpop.xlane.xlu0 %2184  ;;  %v5031_v13 = vld [vmem:[%s6421_s20 + $0xa4] ss:$8 sps:$4 sm:$0xff]  }
 0x5aa   : > { %v2189_v29 = vsub.f32 %v2181_v16, %v2185_v35  ;;  %v5032_v16 = vld [vmem:[%s6421_s20 + $0xb0] ss:$8 sps:$4 sm:$0xff]  }
 0x5ab   : > { %v2078_v37 = vmul.f32 1.442695, %v2076_v32 }
 0x5ac   : > { %v2191_v38 = vmul.f32 1.442695, %v2189_v29  ;;  %v2075_v39 = vpop.xlane.xlu1 %2074 }
 0x5ad   : > { %v2077_v40 = vsub.f32 %v2068_v19, %v2075_v39  ;;  %v2188_v41 = vpop.xlane.xlu0 %2187  ;;  %v5040_v19 = vld [vmem:[%s6421_s20 + $0xd4] ss:$8 sps:$4 sm:$0xff]  }
 0x5ae   : > { %5239 = vpow2.f32 %v2191_v38  ;;  %v2190_v42 = vsub.f32 %v2182_v23, %v2188_v41  ;;  %v5046_v23 = vld [vmem:[%s6421_s20 + $0xf4] ss:$8 sps:$4 sm:$0xff]   ;;  %s7104_s20 = scalar_lea.vmem [#allocation16], %s6417_s23 }
 0x5af   : > { %v2080_v43 = vmul.f32 1.442695, %v2077_v40  ;;  %5241 = vpow2.f32 %v2078_v37 }
 0x5b0   : > { %v2193_v44 = vmul.f32 1.442695, %v2190_v42 }
 0x5b1   : > { %5243 = vpow2.f32 %v2080_v43 }
 0x5b2   : > { %5245 = vpow2.f32 %v2193_v44 }
 0x5b8   : > { %v5240_v45 = vpop.eup %5239 }
 0x5b9   : > { %v2195_v46 = vsel %vm2069_vm2, %v5240_v45, 0.0  ;;  %v5242_v47 = vpop.eup %5241 }
 0x5ba   : > { %2196 = vadd.xlane.f32.xlu0 %v2195_v46  ;;  %v2082_v53 = vsel %vm2069_vm2, %v5242_v47, 0.0 }
 0x5bb   : > { %v5244_v50 = vpop.eup %5243 }
 0x5bc   : > { %v5246_v51 = vpop.eup %5245  ;;  %v2088_v52 = vpack.c.bf16 %v5244_v50, %v5242_v47  ;;  %v2085_v56 = vsel %vm2069_vm2, %v5244_v50, 0.0 }
 0x5bd   : > { %v2198_v54 = vsel %vm2069_vm2, %v5246_v51, 0.0  ;;  %v2201_v55 = vpack.c.bf16 %v5246_v51, %v5240_v45 }
 0x5be   : > { %2083 = vadd.xlane.f32.xlu0 %v2082_v53  ;;  %2199 = vadd.xlane.f32.xlu1 %v2198_v54  ;;  %v2284_v54 = vld [vmem:[%s6457_s11] sm:$0x3]  ;;  %s7100_s11 = scalar_lea.vmem [#allocation13], %s6417_s23 }
 0x5bf   : > { %4636 = vmatmul.mubr.msk.bf16.vlgmr.msra.gmra.mrb[8].mxu0 %vm2069_vm2, %v2088_v52  ;;  %4648 = vmatmul.mubr.msk.bf16.vlgmr.msra.gmra.mrb[12].mxu1 %vm2069_vm2, %v2201_v55  ;;  %v2289_v55 = vrot.slane %v2284_v54, %v6601_v34 }
 0x5c0   : > { %2457 = vmatpush1.bf16.msra.mxu1 %v4999_v57 }
 0x5c1   : > { %2458 = vmatprep.subr.bf16.mxu1 %v5004_v59 }
 0x5c2   : > { %2086 = vadd.xlane.f32.xlu1 %v2085_v56  ;;  %v2293_v56 = vrot.slane %v2284_v54, %v6605_v36 }
 0x5c4   : > { %2459 = vmatpush1.bf16.msra.mxu1 %v5002_v60 }
 0x5c5   : > { %2460 = vmatprep.subr.bf16.mxu1 %v5007_v61 }
 0x5c8   : > { %2461 = vmatpush1.bf16.msra.mxu1 %v5005_v62 }
 0x5c9   : > { %2462 = vmatprep.subr.bf16.mxu1 %v5010_v63 }
 0x5cc   : > { %2463 = vmatpush1.bf16.msra.mxu1 %v5008_v0 }
 0x5cd   : > { %2464 = vmatprep.subr.bf16.mxu1 %v5013_v1  ;;  %v5279_v1 = vld [vmem:[#allocation2 + $0x8] sm:$0xff] }
 0x5d0   : > { %2465 = vmatpush1.bf16.msra.mxu1 %v5011_v2 }
 0x5d1   : > { %2466 = vmatprep.subr.bf16.mxu1 %v5016_v3 }
 0x5d4   : > { %2467 = vmatpush1.bf16.msra.mxu1 %v5014_v4 }
 0x5d5   : > { %2468 = vmatprep.subr.bf16.mxu1 %v5019_v5  ;;  %v5280_v5 = vld [vmem:[#allocation2 + $0x18] sm:$0xff] }
 0x5d8   : > { %2469 = vmatpush1.bf16.msra.mxu1 %v5017_v6 }
 0x5d9   : > { %2470 = vmatprep.subr.bf16.mxu1 %v5022_v7 }
 0x5dc   : > { %2471 = vmatpush1.bf16.msra.mxu1 %v5020_v8  ;;  %v5047_v8 = vld [vmem:[%s6462_s14] ss:$16 sps:$4 sm:$0xff]  }
 0x5dd   : > { %2472 = vmatprep.subr.bf16.mxu1 %v5025_v9  ;;  %v5049_v9 = vld [vmem:[%s6462_s14 + $0x4] ss:$16 sps:$4 sm:$0xff]  }
 0x5de   : > { %2976 = vmatprep.subr.bf16.mxu0 %v5049_v9  ;;  %v5113_v9 = vld [vmem:[%s6462_s14 + $0x160] ss:$16 sps:$4 sm:$0xff]  }
 0x5df   : > { %2977 = vmatpush1.bf16.msra.mxu0 %v5047_v8  ;;  %v5118_v8 = vld [vmem:[%s6462_s14 + $0x16c] ss:$16 sps:$4 sm:$0xff]  }
 0x5e0   : > { %2473 = vmatpush1.bf16.msra.mxu1 %v5023_v10  ;;  %v5052_v10 = vld [vmem:[%s6462_s14 + $0xc] ss:$16 sps:$4 sm:$0xff]  }
 0x5e1   : > { %2474 = vmatprep.subr.bf16.mxu1 %v5028_v11  ;;  %v5055_v11 = vld [vmem:[%s6462_s14 + $0x24] ss:$16 sps:$4 sm:$0xff]  }
 0x5e2   : > { %2978 = vmatprep.subr.bf16.mxu0 %v5055_v11  ;;  %v5124_v11 = vld [vmem:[%s6462_s14 + $0x18c] ss:$16 sps:$4 sm:$0xff]  }
 0x5e4   : > { %2475 = vmatpush1.bf16.msra.mxu1 %v5026_v12  ;;  %v5058_v12 = vld [vmem:[%s6462_s14 + $0x2c] ss:$16 sps:$4 sm:$0xff]  }
 0x5e5   : > { %2476 = vmatprep.subr.bf16.mxu1 %v5031_v13  ;;  %v5053_v13 = vld [vmem:[%s6462_s14 + $0x20] ss:$16 sps:$4 sm:$0xff]  }
 0x5e6   : > { %2979 = vmatpush1.bf16.msra.mxu0 %v5053_v13  ;;  %v5122_v13 = vld [vmem:[%s6462_s14 + $0x188] ss:$16 sps:$4 sm:$0xff]  }
 0x5e8   : > { %2477 = vmatpush1.bf16.msra.mxu1 %v5029_v14  ;;  %v5056_v14 = vld [vmem:[%s6462_s14 + $0x28] ss:$16 sps:$4 sm:$0xff]  }
 0x5e9   : > { %2478 = vmatprep.subr.bf16.mxu1 %v5034_v15  ;;  %v5061_v15 = vld [vmem:[%s6462_s14 + $0x44] ss:$16 sps:$4 sm:$0xff]  }
 0x5ea   : > { %2980 = vmatprep.subr.bf16.mxu0 %v5061_v15  ;;  %v5130_v15 = vld [vmem:[%s6462_s14 + $0x1ac] ss:$16 sps:$4 sm:$0xff]  }
 0x5ec   : > { %2479 = vmatpush1.bf16.msra.mxu1 %v5032_v16  ;;  %v5064_v16 = vld [vmem:[%s6462_s14 + $0x4c] ss:$16 sps:$4 sm:$0xff]  }
 0x5ed   : > { %2480 = vmatprep.subr.bf16.mxu1 %v5037_v17  ;;  %v5059_v17 = vld [vmem:[%s6462_s14 + $0x40] ss:$16 sps:$4 sm:$0xff]  }
 0x5ee   : > { %2981 = vmatpush1.bf16.msra.mxu0 %v5059_v17  ;;  %v5128_v17 = vld [vmem:[%s6462_s14 + $0x1a8] ss:$16 sps:$4 sm:$0xff]  }
 0x5f0   : > { %2481 = vmatpush1.bf16.msra.mxu1 %v5035_v18  ;;  %v5062_v18 = vld [vmem:[%s6462_s14 + $0x48] ss:$16 sps:$4 sm:$0xff]  }
 0x5f1   : > { %2482 = vmatprep.subr.bf16.mxu1 %v5040_v19  ;;  %v5067_v19 = vld [vmem:[%s6462_s14 + $0x64] ss:$16 sps:$4 sm:$0xff]  }
 0x5f2   : > { %2982 = vmatprep.subr.bf16.mxu0 %v5067_v19  ;;  %v5133_v19 = vld [vmem:[%s6462_s14 + $0x1c4] ss:$16 sps:$4 sm:$0xff]  }
 0x5f4   : > { %2483 = vmatpush1.bf16.msra.mxu1 %v5038_v20  ;;  %v5070_v20 = vld [vmem:[%s6462_s14 + $0x6c] ss:$16 sps:$4 sm:$0xff]  }
 0x5f5   : > { %2484 = vmatprep.subr.bf16.mxu1 %v5043_v21  ;;  %v5065_v21 = vld [vmem:[%s6462_s14 + $0x60] ss:$16 sps:$4 sm:$0xff]  }
 0x5f6   : > { %2983 = vmatpush1.bf16.msra.mxu0 %v5065_v21  ;;  %v5136_v21 = vld [vmem:[%s6462_s14 + $0x1cc] ss:$16 sps:$4 sm:$0xff]  }
 0x5f8   : > { %2485 = vmatpush1.bf16.msra.mxu1 %v5041_v22  ;;  %v5068_v22 = vld [vmem:[%s6462_s14 + $0x68] ss:$16 sps:$4 sm:$0xff]  }
 0x5f9   : > { %2486 = vmatprep.subr.bf16.mxu1 %v5046_v23  ;;  %v5073_v23 = vld [vmem:[%s6462_s14 + $0x84] ss:$16 sps:$4 sm:$0xff]  }
 0x5fa   : > { %2984 = vmatprep.subr.bf16.mxu0 %v5073_v23  ;;  %v5142_v23 = vld [vmem:[%s6462_s14 + $0x1ec] ss:$16 sps:$4 sm:$0xff]  }
 0x5fc   : > { %2487 = vmatpush1.bf16.msra.mxu1 %v5044_v24  ;;  %v5076_v24 = vld [vmem:[%s6462_s14 + $0x8c] ss:$16 sps:$4 sm:$0xff]  }
 0x5fd   : > { %3019 = vmatprep.subr.bf16.mxu1 %v5052_v10  ;;  %v5121_v10 = vld [vmem:[%s6462_s14 + $0x184] ss:$16 sps:$4 sm:$0xff]  }
 0x647   : > { %v2197_v27 = vpop.xlane.xlu0 %2196 }
 0x648   : > { %5247 = vrcp.f32 %v2197_v27  ;;  %v5071_v27 = vld [vmem:[%s6462_s14 + $0x80] ss:$16 sps:$4 sm:$0xff]  }
 0x649   : > { %2985 = vmatpush1.bf16.msra.mxu0 %v5071_v27  ;;  %v5140_v27 = vld [vmem:[%s6462_s14 + $0x1e8] ss:$16 sps:$4 sm:$0xff]  }
 0x64b   : > { %v2200_v28 = vpop.xlane.xlu1 %2199  ;;  %v2084_v30 = vpop.xlane.xlu0 %2083 }
 0x64c   : > { %5249 = vrcp.f32 %v2084_v30  ;;  %v5079_v30 = vld [vmem:[%s6462_s14 + $0xa4] ss:$16 sps:$4 sm:$0xff]  }
 0x64d   : > { %5251 = vrcp.f32 %v2200_v28  ;;  %v5074_v28 = vld [vmem:[%s6462_s14 + $0x88] ss:$16 sps:$4 sm:$0xff]   ;;  %2986 = vmatprep.subr.bf16.mxu0 %v5079_v30 }
 0x64f   : > { %v2087_v31 = vpop.xlane.xlu1 %2086 }
 0x650   : > { %5253 = vrcp.f32 %v2087_v31  ;;  %v5082_v31 = vld [vmem:[%s6462_s14 + $0xac] ss:$16 sps:$4 sm:$0xff]  }
 0x652   : > { %v5248_v32 = vpop.eup %5247 }
 0x656   : > { %v5250_v35 = vpop.eup %5249 }
 0x657   : > { %v5252_v38 = vpop.eup %5251 }
 0x65a   : > { %v5254_v41 = vpop.eup %5253 }
 0x692   : > { %v2126_v29 = vpop.f32.mrb[8].mxu0  ;;  %v2239_v37 = vpop.f32.mrb[12].mxu1 }
 0x693   : > { %v4637_v39 = vpop.f32.mrb[9].mxu0  ;;  %v4649_v40 = vpop.f32.mrb[13].mxu1  ;;  %v2135_v44 = vmul.f32 %v5250_v35, %v2126_v29  ;;  %v2248_v45 = vmul.f32 %v5248_v32, %v2239_v37  ;;  %v5077_v32 = vld [vmem:[%s6462_s14 + $0xa0] ss:$16 sps:$4 sm:$0xff]   ;;  %v5080_v35 = vld [vmem:[%s6462_s14 + $0xa8] ss:$16 sps:$4 sm:$0xff]  }
 0x694   : > { %v2129_v42 = vpop.f32.mrb[10].mxu0  ;;  %v2242_v43 = vpop.f32.mrb[14].mxu1  ;;  %v5085_v29 = vld [vmem:[%s6462_s14 + $0xc4] ss:$16 sps:$4 sm:$0xff]   ;;  %v5088_v37 = vld [vmem:[%s6462_s14 + $0xcc] ss:$16 sps:$4 sm:$0xff]   ;;  %2987 = vmatpush1.bf16.msra.mxu0 %v5077_v32 }
 0x695   : > { %v2136_v46 = vmul.f32 %v5254_v41, %v2129_v42  ;;  %v4638_v47 = vpop.f32.mrb[11].mxu0  ;;  %v2249_v50 = vmul.f32 %v5252_v38, %v2242_v43  ;;  %v4650_v51 = vpop.f32.mrb[15].mxu1  ;;  %v5083_v38 = vld [vmem:[%s6462_s14 + $0xc0] ss:$16 sps:$4 sm:$0xff]   ;;  %2988 = vmatprep.subr.bf16.mxu0 %v5085_v29  ;;  %v5086_v39 = vld [vmem:[%s6462_s14 + $0xc8] ss:$16 sps:$4 sm:$0xff]  }
 0x696   : > { %v5091_v40 = vld [vmem:[%s6462_s14 + $0xe4] ss:$16 sps:$4 sm:$0xff]   ;;  %v5094_v41 = vld [vmem:[%s6462_s14 + $0xec] ss:$16 sps:$4 sm:$0xff]   ;;  %v5089_v42 = vld [vmem:[%s6462_s14 + $0xe0] ss:$16 sps:$4 sm:$0xff]  }
 0x697   : > { %v2250_v52 = vpack.c.bf16 %v2136_v46, %v2135_v44  ;;  %v2251_v53 = vpack.c.bf16 %v2249_v50, %v2248_v45  ;;  %v5092_v43 = vld [vmem:[%s6462_s14 + $0xe8] ss:$16 sps:$4 sm:$0xff]   ;;  %v5097_v44 = vld [vmem:[%s6462_s14 + $0x104] ss:$16 sps:$4 sm:$0xff]   ;;  %v5100_v45 = vld [vmem:[%s6462_s14 + $0x10c] ss:$16 sps:$4 sm:$0xff]  }
 0x698   : > { %2989 = vmatpush1.bf16.msra.mxu0 %v5083_v38  ;;  %v5095_v46 = vld [vmem:[%s6462_s14 + $0x100] ss:$16 sps:$4 sm:$0xff]   ;;  %v5098_v47 = vld [vmem:[%s6462_s14 + $0x108] ss:$16 sps:$4 sm:$0xff]   ;;  %v5103_v50 = vld [vmem:[%s6462_s14 + $0x124] ss:$16 sps:$4 sm:$0xff]  }
 0x699   : > { %2488 = vmatprep.mubr.bf16.mxu1 %v2251_v53  ;;  %2990 = vmatprep.subr.bf16.mxu0 %v5091_v40  ;;  %v5106_v51 = vld [vmem:[%s6462_s14 + $0x12c] ss:$16 sps:$4 sm:$0xff]   ;;  %v5104_v53 = vld [vmem:[%s6462_s14 + $0x128] ss:$16 sps:$4 sm:$0xff]  }
 0x69a   : > { %2489 = vmatmul.mubr.bf16.vlgmr.msra.gmra.mrb[16].mxu1 %v2250_v52  ;;  %v5101_v52 = vld [vmem:[%s6462_s14 + $0x120] ss:$16 sps:$4 sm:$0xff]   ;;  %v2503_v38 = vld [vmem:[%s7100_s11] sm:$0x3] }
 0x69b   : > { %v2542_v40 = vrot.slane %v2503_v38, %v6601_v34 }
 0x69c   : > { %2991 = vmatpush1.bf16.msra.mxu0 %v5089_v42 }
 0x69d   : > { %2992 = vmatprep.subr.bf16.mxu0 %v5097_v44 }
 0x6a0   : > { %2993 = vmatpush1.bf16.msra.mxu0 %v5095_v46 }
 0x6a1   : > { %2994 = vmatprep.subr.bf16.mxu0 %v5103_v50 }
 0x6a4   : > { %2995 = vmatpush1.bf16.msra.mxu0 %v5101_v52 }
 0x76d   : > { %v2490_v57 = vpop.f32.mrb[16].mxu1 }
 0x76e   : > { %v2491_v58 = vadd.f32 %v2490_v57, %v2289_v55  ;;  %v2492_v59 = vpop.f32.mrb[17].mxu1 }
 0x76f   : > { %v2493_v60 = vadd.f32 %v2492_v59, %v2293_v56  ;;  %v2494_v61 = vpop.f32.mrb[18].mxu1 }
 0x770   : > { %v6665_v62 = vadd.f32 %v2491_v58, %v6521_v25  ;;  %v2495_v63 = vadd.f32 %v2494_v61, %v2289_v55  ;;  %v2496_v0 = vpop.f32.mrb[19].mxu1 }
 0x771   : > { %v6667_v2 = vadd.f32 %v5279_v1, %v2493_v60  ;;  %v2497_v3 = vadd.f32 %v2496_v0, %v2293_v56 }
 0x772   : > { %v6670_v4 = vadd.f32 %v2495_v63, %v6523_v26  ;;  %v5050_v26 = vld [vmem:[%s6462_s14 + $0x8] ss:$16 sps:$4 sm:$0xff]  }
 0x773   : > { %v6672_v6 = vadd.f32 %v5280_v5, %v2497_v3  ;;  %v2505_v25 = vadd.f32 %v6667_v2, %v6665_v62  ;;  %3020 = vmatpush1.bf16.msra.mxu1 %v5050_v26  ;;  %v5112_v5 = vld [vmem:[%s6462_s14 + $0x14c] ss:$16 sps:$4 sm:$0xff]   ;;  %v5116_v26 = vld [vmem:[%s6462_s14 + $0x168] ss:$16 sps:$4 sm:$0xff]  }
 0x774   : > { %3021 = vmatprep.subr.bf16.mxu1 %v5058_v12  ;;  %v5119_v12 = vld [vmem:[%s6462_s14 + $0x180] ss:$16 sps:$4 sm:$0xff]  }
 0x775   : > { %2506 = vadd.xlane.f32.xlu0 %v2505_v25  ;;  %v2508_v7 = vadd.f32 %v6672_v6, %v6670_v4  ;;  %v5110_v25 = vld [vmem:[%s6462_s14 + $0x148] ss:$16 sps:$4 sm:$0xff]  }
 0x777   : > { %2509 = vadd.xlane.f32.xlu1 %v2508_v7  ;;  %3022 = vmatpush1.bf16.msra.mxu1 %v5056_v14  ;;  %v5115_v7 = vld [vmem:[%s6462_s14 + $0x164] ss:$16 sps:$4 sm:$0xff]  }
 0x778   : > { %3023 = vmatprep.subr.bf16.mxu1 %v5064_v16  ;;  %v5127_v14 = vld [vmem:[%s6462_s14 + $0x1a4] ss:$16 sps:$4 sm:$0xff]   ;;  %v5125_v16 = vld [vmem:[%s6462_s14 + $0x1a0] ss:$16 sps:$4 sm:$0xff]  }
 0x77b   : > { %3024 = vmatpush1.bf16.msra.mxu1 %v5062_v18  ;;  %v5131_v18 = vld [vmem:[%s6462_s14 + $0x1c0] ss:$16 sps:$4 sm:$0xff]  }
 0x77c   : > { %3025 = vmatprep.subr.bf16.mxu1 %v5070_v20  ;;  %v5134_v20 = vld [vmem:[%s6462_s14 + $0x1c8] ss:$16 sps:$4 sm:$0xff]  }
 0x77f   : > { %3026 = vmatpush1.bf16.msra.mxu1 %v5068_v22  ;;  %v5139_v22 = vld [vmem:[%s6462_s14 + $0x1e4] ss:$16 sps:$4 sm:$0xff]  }
 0x780   : > { %3027 = vmatprep.subr.bf16.mxu1 %v5076_v24  ;;  %v5137_v24 = vld [vmem:[%s6462_s14 + $0x1e0] ss:$16 sps:$4 sm:$0xff]  }
 0x783   : > { %3028 = vmatpush1.bf16.msra.mxu1 %v5074_v28  ;;  %v5145_v28 = vld [vmem:[%s6425_s1 + $0x4] ss:$8 sps:$4 sm:$0xff]  }
 0x784   : > { %3029 = vmatprep.subr.bf16.mxu1 %v5082_v31 }
 0x787   : > { %3030 = vmatpush1.bf16.msra.mxu1 %v5080_v35 }
 0x788   : > { %3031 = vmatprep.subr.bf16.mxu1 %v5088_v37 }
 0x78b   : > { %3032 = vmatpush1.bf16.msra.mxu1 %v5086_v39  ;;  %v2504_v39 = vld [vmem:[%s7101_s6] sm:$0x3] }
 0x78c   : > { %3033 = vmatprep.subr.bf16.mxu1 %v5094_v41  ;;  %v2546_v41 = vrot.slane %v2503_v38, %v6605_v36  ;;  %v2557_v46 = vrot.slane %v2504_v39, %v6601_v34 }
 0x78f   : > { %3034 = vmatpush1.bf16.msra.mxu1 %v5092_v43 }
 0x790   : > { %3035 = vmatprep.subr.bf16.mxu1 %v5100_v45 }
 0x793   : > { %3036 = vmatpush1.bf16.msra.mxu1 %v5098_v47  ;;  %v2561_v47 = vrot.slane %v2504_v39, %v6605_v36 }
 0x794   : > { %3037 = vmatprep.subr.bf16.mxu1 %v5106_v51 }
 0x797   : > { %3038 = vmatpush1.bf16.msra.mxu1 %v5104_v53 }
 0x798   : > { %3039 = vmatprep.subr.bf16.mxu1 %v5112_v5  ;;  %v5157_v5 = vld [vmem:[%s6425_s1 + $0x44] ss:$8 sps:$4 sm:$0xff]  }
 0x79b   : > { %3040 = vmatpush1.bf16.msra.mxu1 %v5110_v25  ;;  %v5160_v25 = vld [vmem:[%s6425_s1 + $0x54] ss:$8 sps:$4 sm:$0xff]  }
 0x79c   : > { %3041 = vmatprep.subr.bf16.mxu1 %v5118_v8  ;;  %v5163_v8 = vld [vmem:[%s6425_s1 + $0x64] ss:$8 sps:$4 sm:$0xff]  }
 0x79f   : > { %3042 = vmatpush1.bf16.msra.mxu1 %v5116_v26  ;;  %v5166_v26 = vld [vmem:[%s6425_s1 + $0x74] ss:$8 sps:$4 sm:$0xff]  }
 0x7a0   : > { %3043 = vmatprep.subr.bf16.mxu1 %v5124_v11  ;;  %v5169_v11 = vld [vmem:[%s6425_s1 + $0x84] ss:$8 sps:$4 sm:$0xff]  }
 0x7a3   : > { %3044 = vmatpush1.bf16.msra.mxu1 %v5122_v13  ;;  %v5172_v13 = vld [vmem:[%s6425_s1 + $0x94] ss:$8 sps:$4 sm:$0xff]  }
 0x7a4   : > { %3045 = vmatprep.subr.bf16.mxu1 %v5130_v15  ;;  %v5175_v15 = vld [vmem:[%s6425_s1 + $0xa4] ss:$8 sps:$4 sm:$0xff]  }
 0x7a7   : > { %3046 = vmatpush1.bf16.msra.mxu1 %v5128_v17  ;;  %v5178_v17 = vld [vmem:[%s6425_s1 + $0xb4] ss:$8 sps:$4 sm:$0xff]  }
 0x7a8   : > { %3047 = vmatprep.subr.bf16.mxu1 %v5136_v21  ;;  %v5184_v21 = vld [vmem:[%s6425_s1 + $0xd4] ss:$8 sps:$4 sm:$0xff]  }
 0x7ab   : > { %3048 = vmatpush1.bf16.msra.mxu1 %v5134_v20  ;;  %v5181_v20 = vld [vmem:[%s6425_s1 + $0xc4] ss:$8 sps:$4 sm:$0xff]  }
 0x7ac   : > { %3049 = vmatprep.subr.bf16.mxu1 %v5142_v23  ;;  %v5187_v23 = vld [vmem:[%s6425_s1 + $0xe4] ss:$8 sps:$4 sm:$0xff]  }
 0x7af   : > { %3050 = vmatpush1.bf16.msra.mxu1 %v5140_v27  ;;  %v5190_v27 = vld [vmem:[%s6425_s1 + $0xf4] ss:$8 sps:$4 sm:$0xff]  }
 0x802   : > { %v2507_v54 = vpop.xlane.xlu0 %2506 }
 0x803   : > { %v2512_v55 = vmul.f32 0.00390625, %v2507_v54 }
 0x804   : > { %v2510_v56 = vpop.xlane.xlu1 %2509 }
 0x805   : > { %v6719_v57 = vsub.f32 %v6665_v62, %v2512_v55  ;;  %v6722_v58 = vsub.f32 %v6667_v2, %v2512_v55  ;;  %v2513_v59 = vmul.f32 0.00390625, %v2510_v56 }
 0x807   : > { %v6725_v60 = vsub.f32 %v6670_v4, %v2513_v59  ;;  %v6728_v61 = vsub.f32 %v6672_v6, %v2513_v59  ;;  %v2518_v63 = vmul.f32 %v6719_v57, %v6719_v57  ;;  %v2519_v0 = vmul.f32 %v6722_v58, %v6722_v58  ;;  %v5109_v4 = vld [vmem:[%s6462_s14 + $0x144] ss:$16 sps:$4 sm:$0xff]   ;;  %v5107_v6 = vld [vmem:[%s6462_s14 + $0x140] ss:$16 sps:$4 sm:$0xff]   ;;  %s7102_s14 = scalar_lea.vmem [#allocation12], %s6417_s23  ;;  %s7105_s23 = sld [smem:[#allocation27_spill]] }
 0x808   : > { %2996 = vmatprep.subr.bf16.mxu0 %v5109_v4  ;;  %v5152_v4 = vld [vmem:[%s6425_s1 + $0x30] ss:$8 sps:$4 sm:$0xff]  }
 0x809   : > { %v2522_v62 = vadd.f32 %v2519_v0, %v2518_v63  ;;  %v2520_v1 = vmul.f32 %v6725_v60, %v6725_v60  ;;  %v2521_v2 = vmul.f32 %v6728_v61, %v6728_v61  ;;  %2997 = vmatpush1.bf16.msra.mxu0 %v5107_v6  ;;  %v5143_v63 = vld [vmem:[%s6425_s1] ss:$8 sps:$4 sm:$0xff]   ;;  %v5148_v0 = vld [vmem:[%s6425_s1 + $0x14] ss:$8 sps:$4 sm:$0xff]  }
 0x80a   : > { %2998 = vmatprep.subr.bf16.mxu0 %v5115_v7  ;;  %v5155_v6 = vld [vmem:[%s6425_s1 + $0x40] ss:$8 sps:$4 sm:$0xff]   ;;  %v5158_v7 = vld [vmem:[%s6425_s1 + $0x50] ss:$8 sps:$4 sm:$0xff]  }
 0x80b   : > { %2523 = vadd.xlane.f32.xlu0 %v2522_v62  ;;  %v2525_v3 = vadd.f32 %v2521_v2, %v2520_v1  ;;  %v5146_v62 = vld [vmem:[%s6425_s1 + $0x10] ss:$8 sps:$4 sm:$0xff]   ;;  %v5151_v1 = vld [vmem:[%s6425_s1 + $0x24] ss:$8 sps:$4 sm:$0xff]   ;;  %v5149_v2 = vld [vmem:[%s6425_s1 + $0x20] ss:$8 sps:$4 sm:$0xff]  }
 0x80d   : > { %2526 = vadd.xlane.f32.xlu1 %v2525_v3  ;;  %2999 = vmatpush1.bf16.msra.mxu0 %v5113_v9  ;;  %v5154_v3 = vld [vmem:[%s6425_s1 + $0x34] ss:$8 sps:$4 sm:$0xff]   ;;  %v5161_v9 = vld [vmem:[%s6425_s1 + $0x60] ss:$8 sps:$4 sm:$0xff]   ;;  %p4566_p5 = scmp.ne.s32.totalorder %s7105_s23, 1 }
 0x80e   : > { %3000 = vmatprep.subr.bf16.mxu0 %v5121_v10  ;;  %v5164_v10 = vld [vmem:[%s6425_s1 + $0x70] ss:$8 sps:$4 sm:$0xff]  }
 0x811   : > { %3001 = vmatpush1.bf16.msra.mxu0 %v5119_v12  ;;  %v5167_v12 = vld [vmem:[%s6425_s1 + $0x80] ss:$8 sps:$4 sm:$0xff]  }
 0x812   : > { %3002 = vmatprep.subr.bf16.mxu0 %v5127_v14  ;;  %v5170_v14 = vld [vmem:[%s6425_s1 + $0x90] ss:$8 sps:$4 sm:$0xff]  }
 0x815   : > { %3003 = vmatpush1.bf16.msra.mxu0 %v5125_v16  ;;  %v5173_v16 = vld [vmem:[%s6425_s1 + $0xa0] ss:$8 sps:$4 sm:$0xff]  }
 0x816   : > { %3004 = vmatprep.subr.bf16.mxu0 %v5133_v19  ;;  %v5179_v19 = vld [vmem:[%s6425_s1 + $0xc0] ss:$8 sps:$4 sm:$0xff]  }
 0x819   : > { %3005 = vmatpush1.bf16.msra.mxu0 %v5131_v18  ;;  %v5176_v18 = vld [vmem:[%s6425_s1 + $0xb0] ss:$8 sps:$4 sm:$0xff]  }
 0x81a   : > { %3006 = vmatprep.subr.bf16.mxu0 %v5139_v22  ;;  %v5182_v22 = vld [vmem:[%s6425_s1 + $0xd0] ss:$8 sps:$4 sm:$0xff]  }
 0x81d   : > { %3007 = vmatpush1.bf16.msra.mxu0 %v5137_v24  ;;  %v5185_v24 = vld [vmem:[%s6425_s1 + $0xe0] ss:$8 sps:$4 sm:$0xff]  }
 0x81e   : > { %3534 = vmatprep.subr.bf16.mxu0 %v5145_v28  ;;  %v5188_v28 = vld [vmem:[%s6425_s1 + $0xf0] ss:$8 sps:$4 sm:$0xff]  }
 0x898   : > { %v2524_v30 = vpop.xlane.xlu0 %2523 }
 0x899   : > { %v2528_v31 = vmul.f32 0.00390625, %v2524_v30  ;;  %v5193_v30 = vld [vmem:[%s6425_s1 + $0x104] ss:$8 sps:$4 sm:$0xff]  }
 0x89a   : > { %v2527_v32 = vpop.xlane.xlu1 %2526 }
 0x89b   : > { %v2530_v35 = vadd.f32 1e-05, %v2528_v31  ;;  %v2529_v29 = vmul.f32 0.00390625, %v2527_v32  ;;  %v2634_v31 = vld [vmem:[%s6423_s8] sm:$0xf] }
 0x89c   : > { %v2639_v32 = vrot.slane %v2634_v31, %v6601_v34 }
 0x89d   : > { %5255 = vrsqrt.f32 %v2530_v35  ;;  %v2531_v37 = vadd.f32 1e-05, %v2529_v29  ;;  %v2647_v35 = vrot.slane %v2634_v31, %v1394_v48  ;;  %v2643_v29 = vrot.slane %v2634_v31, %v6605_v36 }
 0x89f   : > { %5257 = vrsqrt.f32 %v2531_v37  ;;  %v2651_v37 = vrot.slane %v2634_v31, %v1398_v49 }
 0x8a7   : > { %v5256_v42 = vpop.eup %5255 }
 0x8a8   : > { %v2534_v43 = vmul.f32 %v5256_v42, %v6719_v57  ;;  %v2535_v44 = vmul.f32 %v5256_v42, %v6722_v58 }
 0x8a9   : > { %v5258_v45 = vpop.eup %5257 }
 0x8aa   : > { %v2536_v50 = vmul.f32 %v5258_v45, %v6725_v60  ;;  %v2537_v51 = vmul.f32 %v5258_v45, %v6728_v61  ;;  %v2550_v52 = vmul.f32 %v2546_v41, %v2535_v44  ;;  %v2549_v53 = vmul.f32 %v2542_v40, %v2534_v43 }
 0x8ac   : > { %v2552_v54 = vmul.f32 %v2546_v41, %v2537_v51  ;;  %v2551_v55 = vmul.f32 %v2542_v40, %v2536_v50  ;;  %v6775_v56 = vadd.f32 %v2561_v47, %v2550_v52  ;;  %v6779_v58 = vadd.f32 %v2557_v46, %v2549_v53 }
 0x8ae   : > { %v6777_v57 = vadd.f32 %v2561_v47, %v2552_v54  ;;  %v6781_v59 = vadd.f32 %v2557_v46, %v2551_v55 }
 0x8b0   : > { %v2569_v60 = vpack.c.bf16 %v6777_v57, %v6775_v56  ;;  %v2568_v61 = vpack.c.bf16 %v6781_v59, %v6779_v58 }
 0x8b2   : > { %3008 = vmatprep.mubr.bf16.mxu0 %v2569_v60  ;;  %3051 = vmatprep.mubr.bf16.mxu1 %v2569_v60 }
 0x8b3   : > { %3009 = vmatmul.mubr.bf16.vlgmr.msra.gmra.mrb[12].mxu0 %v2568_v61  ;;  %3052 = vmatmul.mubr.bf16.vlgmr.msra.gmra.mrb[20].mxu1 %v2568_v61 }
 0x8b4   : > { %3535 = vmatpush1.bf16.msra.mxu0 %v5143_v63 }
 0x8b5   : > { %3536 = vmatprep.subr.bf16.mxu0 %v5148_v0 }
 0x8b8   : > { %3537 = vmatpush1.bf16.msra.mxu0 %v5146_v62 }
 0x8b9   : > { %3538 = vmatprep.subr.bf16.mxu0 %v5151_v1 }
 0x8bc   : > { %3539 = vmatpush1.bf16.msra.mxu0 %v5149_v2 }
 0x8bd   : > { %3540 = vmatprep.subr.bf16.mxu0 %v5154_v3 }
 0x8c0   : > { %3541 = vmatpush1.bf16.msra.mxu0 %v5152_v4 }
 0x8c1   : > { %3542 = vmatprep.subr.bf16.mxu0 %v5157_v5 }
 0x8c4   : > { %3543 = vmatpush1.bf16.msra.mxu0 %v5155_v6 }
 0x8c5   : > { %3544 = vmatprep.subr.bf16.mxu0 %v5160_v25 }
 0x8c8   : > { %3545 = vmatpush1.bf16.msra.mxu0 %v5158_v7 }
 0x8c9   : > { %3546 = vmatprep.subr.bf16.mxu0 %v5163_v8 }
 0x8cc   : > { %3547 = vmatpush1.bf16.msra.mxu0 %v5161_v9 }
 0x8cd   : > { %3548 = vmatprep.subr.bf16.mxu0 %v5166_v26 }
 0x8d0   : > { %3549 = vmatpush1.bf16.msra.mxu0 %v5164_v10 }
 0x8d1   : > { %3550 = vmatprep.subr.bf16.mxu0 %v5169_v11 }
 0x8d4   : > { %3551 = vmatpush1.bf16.msra.mxu0 %v5167_v12 }
 0x8d5   : > { %3552 = vmatprep.subr.bf16.mxu0 %v5172_v13 }
 0x8d8   : > { %3553 = vmatpush1.bf16.msra.mxu0 %v5170_v14 }
 0x8d9   : > { %3554 = vmatprep.subr.bf16.mxu0 %v5175_v15 }
 0x8dc   : > { %3555 = vmatpush1.bf16.msra.mxu0 %v5173_v16 }
 0x8dd   : > { %3556 = vmatprep.subr.bf16.mxu0 %v5178_v17 }
 0x8e0   : > { %3557 = vmatpush1.bf16.msra.mxu0 %v5176_v18 }
 0x8e1   : > { %3558 = vmatprep.subr.bf16.mxu0 %v5181_v20 }
 0x8e4   : > { %3559 = vmatpush1.bf16.msra.mxu0 %v5179_v19 }
 0x8e5   : > { %3560 = vmatprep.subr.bf16.mxu0 %v5184_v21 }
 0x8e8   : > { %3561 = vmatpush1.bf16.msra.mxu0 %v5182_v22 }
 0x8e9   : > { %3562 = vmatprep.subr.bf16.mxu0 %v5187_v23 }
 0x8ec   : > { %3563 = vmatpush1.bf16.msra.mxu0 %v5185_v24 }
 0x8ed   : > { %3564 = vmatprep.subr.bf16.mxu0 %v5190_v27 }
 0x8f0   : > { %3565 = vmatpush1.bf16.msra.mxu0 %v5188_v28 }
 0x8f1   : > { %3577 = vmatprep.subr.bf16.mxu0 %v5193_v30 }
 0x986   : > { %v3010_v38 = vpop.f32.mrb[12].mxu0  ;;  %v3053_v39 = vpop.f32.mrb[20].mxu1 }
 0x987   : > { %v6826_v40 = vadd.f32 %v3010_v38, %v2639_v32  ;;  %v6828_v41 = vadd.f32 %v3053_v39, %v2647_v35  ;;  %v3012_v42 = vpop.f32.mrb[13].mxu0  ;;  %v3055_v43 = vpop.f32.mrb[21].mxu1 }
 0x988   : > { %v6830_v44 = vadd.f32 %v3012_v42, %v2643_v29  ;;  %v6832_v45 = vadd.f32 %v3055_v43, %v2651_v37  ;;  %v3014_v46 = vpop.f32.mrb[14].mxu0  ;;  %v3057_v47 = vpop.f32.mrb[22].mxu1 }
 0x989   : > { %v3070_v48 = vmul.f32 0.044715, %v6826_v40  ;;  %v3072_v50 = vmul.f32 0.044715, %v6828_v41  ;;  %v3015_v33 = vadd.f32 %v3014_v46, %v2639_v32  ;;  %v3058_v49 = vadd.f32 %v3057_v47, %v2647_v35  ;;  %v3016_v51 = vpop.f32.mrb[15].mxu0  ;;  %v3059_v52 = vpop.f32.mrb[23].mxu1 }
 0x98a   : > { %v3071_v53 = vmul.f32 0.044715, %v6830_v44  ;;  %v3073_v54 = vmul.f32 0.044715, %v6832_v45  ;;  %v6838_v55 = vadd.f32 %v3016_v51, %v2643_v29  ;;  %v6840_v60 = vadd.f32 %v3059_v52, %v2651_v37 }
 0x98b   : > { %v3078_v61 = vmul.f32 %v3070_v48, %v6826_v40  ;;  %v3080_v63 = vmul.f32 %v3072_v50, %v6828_v41  ;;  %v3074_v0 = vmul.f32 0.044715, %v3015_v33  ;;  %v3076_v62 = vmul.f32 0.044715, %v3058_v49 }
 0x98c   : > { %v3079_v1 = vmul.f32 %v3071_v53, %v6830_v44  ;;  %v3081_v2 = vmul.f32 %v3073_v54, %v6832_v45  ;;  %v3075_v3 = vmul.f32 0.044715, %v6838_v55  ;;  %v3077_v4 = vmul.f32 0.044715, %v6840_v60 }
 0x98d   : > { %v3086_v5 = vmul.f32 %v3078_v61, %v6826_v40  ;;  %v3088_v6 = vmul.f32 %v3080_v63, %v6828_v41  ;;  %v3082_v25 = vmul.f32 %v3074_v0, %v3015_v33  ;;  %v3084_v7 = vmul.f32 %v3076_v62, %v3058_v49 }
 0x98e   : > { %v3087_v8 = vmul.f32 %v3079_v1, %v6830_v44  ;;  %v3083_v9 = vmul.f32 %v3075_v3, %v6838_v55  ;;  %v3085_v26 = vmul.f32 %v3077_v4, %v6840_v60  ;;  %v3089_v14 = vmul.f32 %v3081_v2, %v6832_v45 }
 0x98f   : > { %v3094_v10 = vadd.f32 %v3086_v5, %v6826_v40  ;;  %v3096_v11 = vadd.f32 %v3088_v6, %v6828_v41  ;;  %v3090_v12 = vmul.f32 %v3082_v25, %v3015_v33  ;;  %v3092_v13 = vmul.f32 %v3084_v7, %v3058_v49 }
 0x990   : > { %v3091_v15 = vmul.f32 %v3083_v9, %v6838_v55  ;;  %v3093_v16 = vmul.f32 %v3085_v26, %v6840_v60  ;;  %v3095_v21 = vadd.f32 %v3087_v8, %v6830_v44  ;;  %v3097_v30 = vadd.f32 %v3089_v14, %v6832_v45  ;;  %v5191_v9 = vld [vmem:[%s6425_s1 + $0x100] ss:$8 sps:$4 sm:$0xff]   ;;  %v5202_v14 = vld [vmem:[%s6425_s1 + $0x134] ss:$8 sps:$4 sm:$0xff]  }
 0x991   : > { %v3102_v17 = vmul.f32 0.7978846, %v3094_v10  ;;  %v3104_v18 = vmul.f32 0.7978846, %v3096_v11  ;;  %v3098_v19 = vadd.f32 %v3090_v12, %v3015_v33  ;;  %v3100_v20 = vadd.f32 %v3092_v13, %v3058_v49  ;;  %v5196_v11 = vld [vmem:[%s6425_s1 + $0x114] ss:$8 sps:$4 sm:$0xff]  }
 0x992   : > { %v3099_v22 = vadd.f32 %v3091_v15, %v6838_v55  ;;  %v3103_v27 = vmul.f32 0.7978846, %v3095_v21  ;;  %v3101_v31 = vadd.f32 %v3093_v16, %v6840_v60  ;;  %v3105_v32 = vmul.f32 0.7978846, %v3097_v30  ;;  %v5199_v12 = vld [vmem:[%s6425_s1 + $0x124] ss:$8 sps:$4 sm:$0xff]  }
 0x993   : > { %5259 = vtanh.f32 %v3102_v17  ;;  %v3106_v23 = vmul.f32 0.7978846, %v3098_v19  ;;  %v3108_v24 = vmul.f32 0.7978846, %v3100_v20  ;;  %v3062_v46 = vmul.f32 0.5, %v6826_v40 }
 0x994   : > { %5261 = vtanh.f32 %v3104_v18  ;;  %v3107_v28 = vmul.f32 0.7978846, %v3099_v22  ;;  %v3109_v35 = vmul.f32 0.7978846, %v3101_v31  ;;  %v3066_v47 = vmul.f32 0.5, %v3015_v33 }
 0x995   : > { %5263 = vtanh.f32 %v3106_v23  ;;  %v3064_v51 = vmul.f32 0.5, %v6828_v41  ;;  %v3068_v52 = vmul.f32 0.5, %v3058_v49  ;;  %v3063_v61 = vmul.f32 0.5, %v6830_v44  ;;  %v5197_v13 = vld [vmem:[%s6425_s1 + $0x120] ss:$8 sps:$4 sm:$0xff]  }
 0x996   : > { %5265 = vtanh.f32 %v3108_v24  ;;  %v3067_v2 = vmul.f32 0.5, %v6838_v55  ;;  %v3065_v49 = vmul.f32 0.5, %v6832_v45  ;;  %v3069_v5 = vmul.f32 0.5, %v6840_v60  ;;  %v5194_v60 = vld [vmem:[%s6425_s1 + $0x110] ss:$8 sps:$4 sm:$0xff]  }
 0x997   : > { %5267 = vtanh.f32 %v3103_v27  ;;  %v5200_v15 = vld [vmem:[%s6425_s1 + $0x130] ss:$8 sps:$4 sm:$0xff]   ;;  %v5205_v16 = vld [vmem:[%s6425_s1 + $0x144] ss:$8 sps:$4 sm:$0xff]   ;;  %v5203_v17 = vld [vmem:[%s6425_s1 + $0x140] ss:$8 sps:$4 sm:$0xff]  }
 0x998   : > { %5269 = vtanh.f32 %v3107_v28  ;;  %v5208_v18 = vld [vmem:[%s6425_s1 + $0x154] ss:$8 sps:$4 sm:$0xff]   ;;  %v5206_v19 = vld [vmem:[%s6425_s1 + $0x150] ss:$8 sps:$4 sm:$0xff]   ;;  %v5211_v20 = vld [vmem:[%s6425_s1 + $0x164] ss:$8 sps:$4 sm:$0xff]  }
 0x999   : > { %5271 = vtanh.f32 %v3105_v32  ;;  %v5209_v21 = vld [vmem:[%s6425_s1 + $0x160] ss:$8 sps:$4 sm:$0xff]   ;;  %v5214_v22 = vld [vmem:[%s6425_s1 + $0x174] ss:$8 sps:$4 sm:$0xff]   ;;  %v5212_v23 = vld [vmem:[%s6425_s1 + $0x170] ss:$8 sps:$4 sm:$0xff]  }
 0x99a   : > { %5273 = vtanh.f32 %v3109_v35  ;;  %v5217_v24 = vld [vmem:[%s6425_s1 + $0x184] ss:$8 sps:$4 sm:$0xff]   ;;  %v5215_v27 = vld [vmem:[%s6425_s1 + $0x180] ss:$8 sps:$4 sm:$0xff]   ;;  %v5220_v28 = vld [vmem:[%s6425_s1 + $0x194] ss:$8 sps:$4 sm:$0xff]  }
 0x99b   : > { %v5218_v30 = vld [vmem:[%s6425_s1 + $0x190] ss:$8 sps:$4 sm:$0xff]   ;;  %v5223_v31 = vld [vmem:[%s6425_s1 + $0x1a4] ss:$8 sps:$4 sm:$0xff]   ;;  %v5221_v32 = vld [vmem:[%s6425_s1 + $0x1a0] ss:$8 sps:$4 sm:$0xff]  }
 0x99c   : > { %v5226_v35 = vld [vmem:[%s6425_s1 + $0x1b4] ss:$8 sps:$4 sm:$0xff]  }
 0x99d   : > { %v5260_v29 = vpop.eup %5259 }
 0x99e   : > { %v5262_v37 = vpop.eup %5261  ;;  %v3118_v38 = vadd.f32 1.0, %v5260_v29  ;;  %v5224_v29 = vld [vmem:[%s6425_s1 + $0x1b0] ss:$8 sps:$4 sm:$0xff]  }
 0x99f   : > { %v5264_v39 = vpop.eup %5263  ;;  %v3120_v42 = vadd.f32 1.0, %v5262_v37  ;;  %v5229_v37 = vld [vmem:[%s6425_s1 + $0x1c4] ss:$8 sps:$4 sm:$0xff]  }
 0x9a0   : > { %v5266_v43 = vpop.eup %5265  ;;  %v3122_v48 = vadd.f32 1.0, %v5264_v39  ;;  %v3126_v0 = vmul.f32 %v3118_v38, %v3062_v46  ;;  %v5227_v38 = vld [vmem:[%s6425_s1 + $0x1c0] ss:$8 sps:$4 sm:$0xff]   ;;  %v5232_v39 = vld [vmem:[%s6425_s1 + $0x1d4] ss:$8 sps:$4 sm:$0xff]  }
 0x9a1   : > { %v5268_v50 = vpop.eup %5267  ;;  %v3124_v53 = vadd.f32 1.0, %v5266_v43  ;;  %v6866_v40 = vmul.f32 %v3120_v42, %v3064_v51  ;;  %v5230_v42 = vld [vmem:[%s6425_s1 + $0x1d0] ss:$8 sps:$4 sm:$0xff]   ;;  %v5235_v43 = vld [vmem:[%s6425_s1 + $0x1e4] ss:$8 sps:$4 sm:$0xff]  }
 0x9a2   : > { %v5270_v54 = vpop.eup %5269  ;;  %v3119_v63 = vadd.f32 1.0, %v5268_v50  ;;  %v3130_v62 = vmul.f32 %v3122_v48, %v3066_v47  ;;  %v5233_v46 = vld [vmem:[%s6425_s1 + $0x1e0] ss:$8 sps:$4 sm:$0xff]   ;;  %v5238_v47 = vld [vmem:[%s6425_s1 + $0x1f4] ss:$8 sps:$4 sm:$0xff]  }
 0x9a3   : > { %v5272_v1 = vpop.eup %5271  ;;  %v3123_v3 = vadd.f32 1.0, %v5270_v54  ;;  %v6868_v33 = vmul.f32 %v3124_v53, %v3068_v52  ;;  %v5236_v48 = vld [vmem:[%s6425_s1 + $0x1f0] ss:$8 sps:$4 sm:$0xff]   ;;  %v3202_v50 = vld [vmem:[%s7102_s14] sm:$0x3] }
 0x9a4   : > { %v5274_v4 = vpop.eup %5273  ;;  %v3134_v41 = vpack.c.bf16 %v3130_v62, %v3126_v0  ;;  %v3121_v44 = vadd.f32 1.0, %v5272_v1  ;;  %v3127_v6 = vmul.f32 %v3119_v63, %v3063_v61  ;;  %v3207_v51 = vrot.slane %v3202_v50, %v6601_v34 }
 0x9a5   : > { %v3131_v25 = vmul.f32 %v3123_v3, %v3067_v2  ;;  %v3125_v7 = vadd.f32 1.0, %v5274_v4  ;;  %v3136_v55 = vpack.c.bf16 %v6868_v33, %v6866_v40  ;;  %v3211_v52 = vrot.slane %v3202_v50, %v6605_v36  ;;  %v5285_v50 = vld [vmem:[#allocation17 + $0x50] sm:$0xff] (!%p4566_p5)  }
 0x9a6   : > { %v3129_v26 = vmul.f32 %v3121_v44, %v3065_v49 }
 0x9a7   : > { %v3135_v8 = vpack.c.bf16 %v3131_v25, %v3127_v6  ;;  %v3133_v10 = vmul.f32 %v3125_v7, %v3069_v5 }
 0x9a9   : > { %3566 = vmatprep.mubr.bf16.mxu0 %v3135_v8  ;;  %v3137_v45 = vpack.c.bf16 %v3133_v10, %v3129_v26 }
 0x9aa   : > { %3567 = vmatmul.mubr.bf16.vlgmr.msra.gmra.mrb[16].mxu0 %v3134_v41 }
 0x9ab   : > { %3578 = vmatpush1.bf16.msra.mxu0 %v5191_v9  ;;  %3609 = vmatprep.mubr.bf16.mxu0 %v3137_v45 }
 0x9ac   : > { %3579 = vmatprep.subr.bf16.mxu0 %v5196_v11 }
 0x9af   : > { %3580 = vmatpush1.bf16.msra.mxu0 %v5194_v60 }
 0x9b0   : > { %3581 = vmatprep.subr.bf16.mxu0 %v5199_v12 }
 0x9b3   : > { %3582 = vmatpush1.bf16.msra.mxu0 %v5197_v13 }
 0x9b4   : > { %3583 = vmatprep.subr.bf16.mxu0 %v5202_v14 }
 0x9b7   : > { %3584 = vmatpush1.bf16.msra.mxu0 %v5200_v15  ;;  %v3624_v15 = vld [vmem:[%s7103_s18] sm:$0x3] }
 0x9b8   : > { %3585 = vmatprep.subr.bf16.mxu0 %v5205_v16  ;;  %v3625_v16 = vld [vmem:[%s7104_s20] sm:$0x3] }
 0x9bb   : > { %3586 = vmatpush1.bf16.msra.mxu0 %v5203_v17  ;;  %v3662_v17 = vrot.slane %v3624_v15, %v6601_v34 }
 0x9bc   : > { %3587 = vmatprep.subr.bf16.mxu0 %v5208_v18  ;;  %v3666_v18 = vrot.slane %v3624_v15, %v6605_v36 }
 0x9bf   : > { %3588 = vmatpush1.bf16.msra.mxu0 %v5206_v19 }
 0x9c0   : > { %3589 = vmatprep.subr.bf16.mxu0 %v5211_v20  ;;  %v3677_v20 = vrot.slane %v3625_v16, %v6601_v34  ;;  %v5281_v34 = vld [vmem:[#allocation17 + $0x40] sm:$0xff] (!%p4566_p5)  }
 0x9c3   : > { %3590 = vmatpush1.bf16.msra.mxu0 %v5209_v21  ;;  %v3681_v21 = vrot.slane %v3625_v16, %v6605_v36 }
 0x9c4   : > { %3591 = vmatprep.subr.bf16.mxu0 %v5214_v22 }
 0x9c7   : > { %3592 = vmatpush1.bf16.msra.mxu0 %v5212_v23 }
 0x9c8   : > { %3593 = vmatprep.subr.bf16.mxu0 %v5217_v24 }
 0x9cb   : > { %3594 = vmatpush1.bf16.msra.mxu0 %v5215_v27 }
 0x9cc   : > { %3595 = vmatprep.subr.bf16.mxu0 %v5220_v28 }
 0x9cf   : > { %3596 = vmatpush1.bf16.msra.mxu0 %v5218_v30 }
 0x9d0   : > { %3597 = vmatprep.subr.bf16.mxu0 %v5223_v31 }
 0x9d3   : > { %3598 = vmatpush1.bf16.msra.mxu0 %v5221_v32 }
 0x9d4   : > { %3599 = vmatprep.subr.bf16.mxu0 %v5226_v35 }
 0x9d7   : > { %3600 = vmatpush1.bf16.msra.mxu0 %v5224_v29 }
 0x9d8   : > { %3601 = vmatprep.subr.bf16.mxu0 %v5229_v37 }
 0x9db   : > { %3602 = vmatpush1.bf16.msra.mxu0 %v5227_v38 }
 0x9dc   : > { %3603 = vmatprep.subr.bf16.mxu0 %v5232_v39 }
 0x9df   : > { %3604 = vmatpush1.bf16.msra.mxu0 %v5230_v42  ;;  %v5282_v42 = vld [vmem:[#allocation17] sm:$0xff] (!%p4566_p5)  }
 0x9e0   : > { %3605 = vmatprep.subr.bf16.mxu0 %v5235_v43  ;;  %v5283_v43 = vld [vmem:[#allocation17 + $0x48] sm:$0xff] (!%p4566_p5)  }
 0x9e3   : > { %3606 = vmatpush1.bf16.msra.mxu0 %v5233_v46 }
 0x9e4   : > { %3607 = vmatprep.subr.bf16.mxu0 %v5238_v47  ;;  %v5284_v47 = vld [vmem:[#allocation17 + $0x8] sm:$0xff] (!%p4566_p5)  }
 0x9e7   : > { %3608 = vmatpush1.bf16.msra.mxu0 %v5236_v48 }
 0x9e8   : > { %4605 = vmatprep.subr.bf16.mxu0 (!%p4566_p5), %v5281_v34 }
 0x9ea   : > { %3610 = vmatmul.mubr.bf16.vlgmr.msra.gmra.mrb[16].mxu0 %v3136_v55 }
 0x9eb   : > { %4606 = vmatpush3.bf16.msra.mxu0 (!%p4566_p5), %v5282_v42 }
 0x9ec   : > { %4607 = vmatprep.subr.bf16.mxu0 (!%p4566_p5), %v5283_v43 }
 0x9ef   : > { %4608 = vmatpush3.bf16.msra.mxu0 (!%p4566_p5), %v5284_v47 }
 0x9f0   : > { %4609 = vmatprep.subr.bf16.mxu0 (!%p4566_p5), %v5285_v50 }
 0xabd   : > { %v3611_v53 = vpop.f32.mrb[16].mxu0 }
 0xabe   : > { %v4651_v54 = vadd.f32 %v3611_v53, %v3207_v51  ;;  %v3613_v61 = vpop.f32.mrb[17].mxu0 }
 0xabf   : > { %v4652_v63 = vadd.f32 %v3613_v61, %v3211_v52  ;;  %v3615_v0 = vpop.f32.mrb[18].mxu0  ;;  %v5288_v61 = vld [vmem:[#allocation17 + $0x18] sm:$0xff] (!%p4566_p5)  }
 0xac0   : > { %v3620_v62 = vadd.f32 %v4651_v54, %v6779_v58  ;;  %v4653_v1 = vadd.f32 %v3615_v0, %v3207_v51  ;;  %v3617_v2 = vpop.f32.mrb[19].mxu0  ;;  %v5287_v54 = vld [vmem:[#allocation17 + $0x58] sm:$0xff] (!%p4566_p5)   ;;  %v5290_v0 = vld [vmem:[#allocation17 + $0x20] sm:$0xff] (!%p4566_p5)  }
 0xac1   : > { %v3621_v3 = vadd.f32 %v4652_v63, %v6775_v56  ;;  %v4654_v4 = vadd.f32 %v3617_v2, %v3211_v52  ;;  %v5286_v52 = vld [vmem:[#allocation17 + $0x10] sm:$0xff] (!%p4566_p5)   ;;  %v5289_v63 = vld [vmem:[#allocation17 + $0x60] sm:$0xff] (!%p4566_p5)   ;;  %v5292_v2 = vld [vmem:[#allocation17 + $0x28] sm:$0xff] (!%p4566_p5)  }
 0xac2   : > { %v3622_v40 = vadd.f32 %v4653_v1, %v6781_v59  ;;  %4610 = vmatpush3.bf16.msra.mxu0 (!%p4566_p5), %v5286_v52 }
 0xac3   : > { %v3623_v33 = vadd.f32 %v4654_v4, %v6777_v57  ;;  %v3626_v41 = vadd.f32 %v3621_v3, %v3620_v62  ;;  %4611 = vmatprep.subr.bf16.mxu0 (!%p4566_p5), %v5287_v54 }
 0xac5   : > { %3627 = vadd.xlane.f32.xlu0 %v3626_v41  ;;  %v3629_v49 = vadd.f32 %v3623_v33, %v3622_v40 }
 0xac6   : > { %4612 = vmatpush3.bf16.msra.mxu0 (!%p4566_p5), %v5288_v61 }
 0xac7   : > { %3630 = vadd.xlane.f32.xlu1 %v3629_v49  ;;  %4613 = vmatprep.subr.bf16.mxu0 (!%p4566_p5), %v5289_v63 }
 0xaca   : > { %4614 = vmatpush3.bf16.msra.mxu0 (!%p4566_p5), %v5290_v0 }
 0xb52   : > { %v3628_v5 = vpop.xlane.xlu0 %3627 }
 0xb53   : > { %v3632_v44 = vmul.f32 0.00390625, %v3628_v5  ;;  %v5296_v5 = vld [vmem:[#allocation17 + $0x38] sm:$0xff] (!%p4566_p5)  }
 0xb54   : > { %v3631_v6 = vpop.xlane.xlu1 %3630 }
 0xb55   : > { %v3634_v25 = vsub.f32 %v3620_v62, %v3632_v44  ;;  %v3635_v7 = vsub.f32 %v3621_v3, %v3632_v44  ;;  %v3633_v55 = vmul.f32 0.00390625, %v3631_v6  ;;  %v5291_v62 = vld [vmem:[#allocation17 + $0x68] sm:$0xff] (!%p4566_p5)   ;;  %v5293_v3 = vld [vmem:[#allocation17 + $0x70] sm:$0xff] (!%p4566_p5)  }
 0xb56   : > { %4615 = vmatprep.subr.bf16.mxu0 (!%p4566_p5), %v5291_v62 }
 0xb57   : > { %v3636_v58 = vsub.f32 %v3622_v40, %v3633_v55  ;;  %v3637_v8 = vsub.f32 %v3623_v33, %v3633_v55  ;;  %v3638_v9 = vmul.f32 %v3634_v25, %v3634_v25  ;;  %v3639_v56 = vmul.f32 %v3635_v7, %v3635_v7  ;;  %4616 = vmatpush3.bf16.msra.mxu0 (!%p4566_p5), %v5292_v2  ;;  %v5294_v40 = vld [vmem:[#allocation17 + $0x30] sm:$0xff] (!%p4566_p5)   ;;  %v5295_v33 = vld [vmem:[#allocation17 + $0x78] sm:$0xff] (!%p4566_p5)  }
 0xb58   : > { %4617 = vmatprep.subr.bf16.mxu0 (!%p4566_p5), %v5293_v3 }
 0xb59   : > { %v3642_v26 = vadd.f32 %v3639_v56, %v3638_v9  ;;  %v3640_v59 = vmul.f32 %v3636_v58, %v3636_v58  ;;  %v3641_v10 = vmul.f32 %v3637_v8, %v3637_v8 }
 0xb5b   : > { %3643 = vadd.xlane.f32.xlu0 %v3642_v26  ;;  %v3645_v57 = vadd.f32 %v3641_v10, %v3640_v59  ;;  %4618 = vmatpush3.bf16.msra.mxu0 (!%p4566_p5), %v5294_v40 }
 0xb5c   : > { %4619 = vmatprep.subr.bf16.mxu0 (!%p4566_p5), %v5295_v33 }
 0xb5d   : > { %3646 = vadd.xlane.f32.xlu1 %v3645_v57 }
 0xb5f   : > { %4620 = vmatpush3.bf16.msra.mxu0 (!%p4566_p5), %v5296_v5 }
 0xbe8   : > { %v3644_v11 = vpop.xlane.xlu0 %3643 }
 0xbe9   : > { %v3648_v45 = vmul.f32 0.00390625, %v3644_v11 }
 0xbea   : > { %v3647_v60 = vpop.xlane.xlu1 %3646 }
 0xbeb   : > { %v3650_v12 = vadd.f32 1e-05, %v3648_v45  ;;  %v3649_v13 = vmul.f32 0.00390625, %v3647_v60 }
 0xbed   : > { %5275 = vrsqrt.f32 %v3650_v12  ;;  %v3651_v14 = vadd.f32 1e-05, %v3649_v13 }
 0xbef   : > { %5277 = vrsqrt.f32 %v3651_v14 }
 0xbf7   : > { %v5276_v19 = vpop.eup %5275 }
 0xbf8   : > { %v3654_v22 = vmul.f32 %v5276_v19, %v3634_v25  ;;  %v3655_v23 = vmul.f32 %v5276_v19, %v3635_v7  ;;  %v4567_v25 = vld [vmem:[#allocation18] ss:$0 sm:$0xff] (!%p4566_p5) }
 0xbf9   : > { %v5278_v24 = vpop.eup %5277 }
 0xbfa   : > { %v3669_v27 = vmul.f32 %v3662_v17, %v3654_v22  ;;  %v3670_v28 = vmul.f32 %v3666_v18, %v3655_v23  ;;  %v3656_v30 = vmul.f32 %v5278_v24, %v3636_v58  ;;  %v3657_v31 = vmul.f32 %v5278_v24, %v3637_v8  ;;  %3695 = sbr.rel (%p4566_p5) target bundleno = 3301 (0xce5), region = 160 }
 0xbfc   : > { %v3684_v32 = vadd.f32 %v3677_v20, %v3669_v27  ;;  %v3685_v35 = vadd.f32 %v3681_v21, %v3670_v28  ;;  %v3671_v29 = vmul.f32 %v3662_v17, %v3656_v30  ;;  %v3672_v37 = vmul.f32 %v3666_v18, %v3657_v31 }
 0xbfe   : > { %3688 = vst [vmem:[#allocation2] sm:$0xff] %v3684_v32  ;;  %3689 = vst [vmem:[#allocation2 + $0x8] sm:$0xff] %v3685_v35  ;;  %v3686_v38 = vadd.f32 %v3677_v20, %v3671_v29  ;;  %v3687_v39 = vadd.f32 %v3681_v21, %v3672_v37 }
 0xc00   : > { %3690 = vst [vmem:[#allocation2 + $0x10] sm:$0xff] %v3686_v38  ;;  %3691 = vst [vmem:[#allocation2 + $0x18] sm:$0xff] %v3687_v39  ;;  %v3697_v36 = vpack.c.bf16 (!%p4566_p5), %v3687_v39, %v3685_v35  ;;  %v3696_v1 = vpack.c.bf16 (!%p4566_p5), %v3686_v38, %v3684_v32 }
 0xc02   : > { %v3745_v46 = vshrl.u32 %v3697_v36, 16  ;;  %v3747_v48 = vshll.u32 %v3697_v36, 16  ;;  %v3740_v4 = vshll.u32 %v3696_v1, 16  ;;  %v3738_v41 = vshrl.u32 %v3696_v1, 16 }
 0xc04   : > { %v3749_v51 = vrot.slane %v3747_v48, 1  ;;  %v3742_v49 = vrot.slane %v3740_v4, 1 }
 0xc06   : > { %v3750_v53 = vor.u32 %v3749_v51, %v3745_v46  ;;  %v3743_v44 = vor.u32 %v3742_v49, %v3738_v41 }
 0xc08   : > { %3881 = vmatprep.mubr.bf16.mxu0 %v3750_v53 }
 0xc09   : > { %3882 = vmatmul.mubr.bf16.vlgmr.msra.gmra.mrb[0].mxu0 %v3743_v44 }
 0xcdc   : > { %v4621_v6 = vpop.f32.mrb[0].mxu0 }
 0xcdd   : > { %v4622_v7 = vpop.f32.mrb[1].mxu0 }
 0xcde   : > { %v4623_v55 = vadd.f32 %v4622_v7, %v4621_v6  ;;  %v4624_v58 = vpop.f32.mrb[2].mxu0 }
 0xcdf   : > { %v4625_v8 = vpop.f32.mrb[3].mxu0 }
 0xce0   : > { %v3884_v9 = vadd.f32 %v4623_v55, %v4567_v25  ;;  %v4626_v56 = vadd.f32 %v4625_v8, %v4624_v58 }
 0xce2   : > { %3890 = vst [vmem:[%s6467_s15] sm:$0xff] %v3884_v9  ;;  %v3887_v26 = vadd.f32 %v4626_v56, %v4567_v25 }
 0xce4   : > { %3891 = vst [vmem:[%s6467_s15 + $0x8] sm:$0x7f] %v3887_v26 }
 0xce5 PF: > { %s7106_s8 = sld [smem:[#allocation30_spill]]  ;;  %s7107_s0 = sld [smem:[#allocation25_spill]] }
 0xce6   : > { %s7108_s30 = sld [smem:[#allocation26_spill]]  ;;  %s7109_s20 = sld [smem:[#allocation33_spill]] }
 0xce7   : > { %s7110_s1 = sld [smem:[#allocation29_spill]]  ;;  %s7111_s26 = sld [smem:[#allocation31_spill]] }
 0xce8   : > { %s7112_s2 = sld [smem:[#allocation32_spill]]  ;;  %s7113_s21 = smov %s5783_s22 }
 0xceb   : > { %s32_s23 = sadd.s32 1, %s7106_s8  }
 0xcec   : > { %p29_p6 = scmp.ge.s32.totalorder %s32_s23, 6  }
 0xced   : > { %s7114_s22 = smov %s7111_s26 }
 0xcee   :  { %31 = sbr.rel (!%p29_p6) target bundleno = 27 (0x1b), region = 270 }
 0xcf5   :  { %3913 = vsyncpa [#allocation4], 1 }
 0xcf6   :  { %3915 = vsyncpa [#allocation4 + $0x1], 1 }
 0xcf7   :  { %3916 = vsyncpa [#allocation6], 1 }
 0xcf8   :  { %3917 = vsyncpa [#allocation19], 1 }

</bundles_post_ra>
